<compile_context>
chip_gen: v7x
topology: tpu7x:2x2x1
jax: 0.10.0
libtpu: 0.0.40
codegen_flags: <defaults>
</compile_context>

<pallas_src>
import functools

import jax
import jax.numpy as jnp
from jax import lax
from jax.experimental import pallas as pl
from jax.experimental.pallas import tpu as pltpu


def _bottleneck_kernel(x_ref, w1_ref, b1_ref, w2_ref, b2_ref, w3_ref, b3_ref,
                       o_ref, h1p_ref, acc_ref, *, TH, W, Cin, width, Cout):
    r = pl.program_id(1)
    num_r = pl.num_programs(1)
    row0 = pl.multiple_of(r * TH, TH)

    w1 = w1_ref[...]                       # (Cin, width)   bf16
    b1 = b1_ref[...]                       # (1, width)     f32

    def conv1_rows(start, nrows):
        # 1x1 conv + folded bn1 bias + relu on `nrows` image rows.
        xm = x_ref[:, pl.ds(start, nrows), :, :]            # (1, nrows, W, Cin)
        xm = xm.reshape(nrows * W, Cin).astype(jnp.bfloat16)
        h = jnp.dot(xm, w1, preferred_element_type=jnp.float32)
        h = jnp.maximum(h + b1, 0.0)
        return h.astype(jnp.bfloat16).reshape(nrows, W, width)

    # ---- conv1 -> zero-padded h1 scratch (zero border = conv2 padding) -----
    h1p_ref[...] = jnp.zeros_like(h1p_ref)
    h1p_ref[1:TH + 1, 1:W + 1, :] = conv1_rows(row0, TH)

    @pl.when(r > 0)                         # top halo row (recomputed, cheap)
    def _():
        h1p_ref[0:1, 1:W + 1, :] = conv1_rows(row0 - 1, 1)

    @pl.when(r < num_r - 1)                 # bottom halo row
    def _():
        h1p_ref[TH + 1:TH + 2, 1:W + 1, :] = conv1_rows(row0 + TH, 1)

    # ---- conv2 (3x3, pad=1) + bn2 + relu ------------------------------------
    acc_ref[...] = jnp.zeros_like(acc_ref)
    if width % 128 == 0:
        # Fold the 3 dx taps into the contraction dim: 3 matmuls, K = 3*width.
        for dy in range(3):
            lhs = jnp.concatenate(
                [h1p_ref[dy:dy + TH, 0:W, :],
                 h1p_ref[dy:dy + TH, 1:W + 1, :],
                 h1p_ref[dy:dy + TH, 2:W + 2, :]], axis=-1)   # (TH, W, 3*width)
            acc_ref[...] += jnp.dot(lhs.reshape(TH * W, 3 * width), w2_ref[dy],
                                    preferred_element_type=jnp.float32)
    else:
        # Lane-unaligned width: 9 taps with K = width (no lane-dim concat).
        for dy in range(3):
            for dx in range(3):
                patch = h1p_ref[dy:dy + TH, dx:dx + W, :]      # (TH, W, width)
                acc_ref[...] += jnp.dot(
                    patch.reshape(TH * W, width),
                    w2_ref[dy, dx * width:(dx + 1) * width, :],
                    preferred_element_type=jnp.float32)

    h2 = jnp.maximum(acc_ref[...] + b2_ref[...], 0.0).astype(jnp.bfloat16)

    # ---- conv3 (1x1) + bn3 + residual add + relu ----------------------------
    h3 = jnp.dot(h2, w3_ref[...], preferred_element_type=jnp.float32)
    h3 = h3 + b3_ref[...]
    # Re-read the residual from the (resident) input block only now.
    xres = x_ref[:, pl.ds(row0, TH), :, :].reshape(TH * W, Cin).astype(jnp.float32)
    out = jnp.maximum(h3 + xres, 0.0)
    o_ref[...] = out.reshape(1, TH, W, Cout).astype(o_ref.dtype)


def bottleneck_pallas_nhwc(x_nhwc, params, *, row_block=8):
    """Channels-last entry point (no layout transposes).  x_nhwc: (N,H,W,Cin)."""
    w1, b1, w2, b2, w3, b3 = params
    N, H, W, Cin = x_nhwc.shape
    width = w1.shape[1]
    Cout = w3.shape[1]
    assert Cout == Cin, "downsample is None -> inplanes must equal planes*4"
    TH = min(row_block, H)
    assert H % TH == 0, "row_block must divide H"
    R = H // TH

    kernel = functools.partial(_bottleneck_kernel, TH=TH, W=W,
                               Cin=Cin, width=width, Cout=Cout)
    const = lambda shape: pl.BlockSpec(shape, lambda n, r: (0,) * len(shape))

    return pl.pallas_call(
        kernel,
        out_shape=jax.ShapeDtypeStruct((N, H, W, Cout), x_nhwc.dtype),
        grid_spec=pltpu.PrefetchScalarGridSpec(
            num_scalar_prefetch=0,
            grid=(N, R),
            in_specs=[
                # Input block index is constant in r, so it stays resident in
                # VMEM across the row-block axis (halo rows read from VMEM).
                pl.BlockSpec((1, H, W, Cin), lambda n, r: (n, 0, 0, 0)),
                const(w1.shape), const(b1.shape),
                const(w2.shape), const(b2.shape),
                const(w3.shape), const(b3.shape),
            ],
            out_specs=pl.BlockSpec((1, TH, W, Cout), lambda n, r: (n, r, 0, 0)),
            scratch_shapes=[
                pltpu.VMEM((TH + 2, W + 2, width), jnp.bfloat16),  # padded h1
                pltpu.VMEM((TH * W, width), jnp.float32),          # conv2 acc
            ]),
        compiler_params=pltpu.CompilerParams(
            dimension_semantics=("parallel", "parallel")),
    )(x_nhwc, w1, b1, w2, b2, w3, b3)


def bottleneck_pallas(x_nchw, params, *, row_block=8):
    """PyTorch-layout wrapper.  Prefer bottleneck_pallas_nhwc in a real
    pipeline: these two transposes are extra HBM round trips."""
    x_nhwc = jnp.transpose(x_nchw, (0, 2, 3, 1))
    out = bottleneck_pallas_nhwc(x_nhwc, params, row_block=row_block)
    return jnp.transpose(out, (0, 3, 1, 2))


# ----------------------------- parameters -----------------------------------

def make_module_params(key, inplanes, planes):
    """Synthetic Bottleneck parameters (conv weights + eval-mode BN stats)."""
    width = planes                                   # base_width=64, groups=1
    outc = planes * 4
    ks = jax.random.split(key, 6)
    w1 = 0.05 * jax.random.normal(ks[0], (inplanes, width), jnp.float32)     # (Cin, Cout)
    w2 = 0.05 * jax.random.normal(ks[1], (3, 3, width, width), jnp.float32)  # HWIO
    w3 = 0.05 * jax.random.normal(ks[2], (width, outc), jnp.float32)

    def bn(k, c):
        kg, kb, km, kv = jax.random.split(k, 4)
        gamma = 1.0 + 0.2 * jax.random.normal(kg, (c,), jnp.float32)
        beta = 0.3 * jax.random.normal(kb, (c,), jnp.float32)
        mean = 0.3 * jax.random.normal(km, (c,), jnp.float32)
        var = jax.random.uniform(kv, (c,), jnp.float32, 0.5, 1.5)
        return gamma, beta, mean, var

    return dict(w1=w1, w2=w2, w3=w3,
                bn1=bn(ks[3], width), bn2=bn(ks[4], width), bn3=bn(ks[5], outc))


def fold_params(mp, eps=1e-5):
    """Fold eval-mode BN into conv weights (bf16) + per-channel f32 biases."""
    def fold(gamma, beta, mean, var):
        scale = gamma / jnp.sqrt(var + eps)
        return scale, beta - mean * scale

    s1, b1 = fold(*mp["bn1"])
    s2, b2 = fold(*mp["bn2"])
    s3, b3 = fold(*mp["bn3"])
    width = mp["w2"].shape[2]
    w1f = (mp["w1"] * s1[None, :]).astype(jnp.bfloat16)
    # HWIO (3,3,ci,co) -> (3, 3*ci, co); rows ordered [dx=0 ci.., dx=1 ci.., dx=2 ci..]
    w2f = (mp["w2"] * s2[None, None, None, :]).reshape(3, 3 * width, width)
    w2f = w2f.astype(jnp.bfloat16)
    w3f = (mp["w3"] * s3[None, :]).astype(jnp.bfloat16)
    return (w1f, b1.reshape(1, -1), w2f, b2.reshape(1, -1), w3f, b3.reshape(1, -1))


# ----------------------------- reference -------------------------------------

def bottleneck_ref(x_nchw, mp, eps=1e-5):
    """Pure-JAX f32 reference mirroring the PyTorch module (eval-mode BN)."""
    x = jnp.transpose(x_nchw, (0, 2, 3, 1))                     # NHWC
    dn = lax.conv_dimension_numbers(x.shape, (1, 1, 1, 1),
                                    ("NHWC", "HWIO", "NHWC"))

    def conv(inp, w_hwio, pad):
        return lax.conv_general_dilated(inp, w_hwio, (1, 1), pad,
                                        dimension_numbers=dn)

    def bn(h, p):
        gamma, beta, mean, var = p
        return (h - mean) * gamma / jnp.sqrt(var + eps) + beta

    w1 = mp["w1"].reshape(1, 1, *mp["w1"].shape)
    w3 = mp["w3"].reshape(1, 1, *mp["w3"].shape)
    h = jax.nn.relu(bn(conv(x, w1, "VALID"), mp["bn1"]))
    h = jax.nn.relu(bn(conv(h, mp["w2"], "SAME"), mp["bn2"]))
    h = bn(conv(h, w3, "VALID"), mp["bn3"])
    out = jax.nn.relu(h + x)
    return jnp.transpose(out, (0, 3, 1, 2))


if __name__ == "__main__":
    # Real-ish bottleneck config kept small: planes=128 -> width=128 (lane
    # dense), inplanes = planes*4 = 512 (downsample=None), 16x16 spatial, N=2.
    N, planes = 2, 128
    inplanes = planes * 4
    H = W = 16

    key = jax.random.PRNGKey(0)
    kx, kp = jax.random.split(key)
    x = jax.random.normal(kx, (N, inplanes, H, W), jnp.float32)
    mp = make_module_params(kp, inplanes, planes)
    kparams = fold_params(mp)

    out = jax.block_until_ready(bottleneck_pallas(x, kparams, row_block=8))
    ref = jax.block_until_ready(bottleneck_ref(x, mp))

    assert out.shape == (N, inplanes, H, W)
    max_err = float(jnp.max(jnp.abs(out - ref)))
    # bf16 matmul operands vs the f32 reference -> loosened tolerance.
    assert jnp.allclose(out, ref, atol=8e-2, rtol=5e-2), f"mismatch: {max_err}"
    print("KERNEL_OK")
</pallas_src>

<mosaic_0001>
module attributes {stable_mosaic.version = 11 : i64} {
  func.func @_bottleneck_kernel(%arg0: i32, %arg1: i32, %arg2: memref<1x16x16x512xf32, #tpu.memory_space<vmem>>, %arg3: memref<512x128xbf16, #tpu.memory_space<vmem>>, %arg4: memref<1x128xf32, #tpu.memory_space<vmem>>, %arg5: memref<3x384x128xbf16, #tpu.memory_space<vmem>>, %arg6: memref<1x128xf32, #tpu.memory_space<vmem>>, %arg7: memref<128x512xbf16, #tpu.memory_space<vmem>>, %arg8: memref<1x512xf32, #tpu.memory_space<vmem>>, %arg9: memref<1x8x16x512xf32, #tpu.memory_space<vmem>>, %arg10: memref<10x18x128xbf16, #tpu.memory_space<vmem>>, %arg11: memref<128x128xf32, #tpu.memory_space<vmem>>) attributes {dimension_semantics = [#tpu.dimension_semantics<parallel>, #tpu.dimension_semantics<parallel>], iteration_bounds = array<i64: 2, 2>, scalar_prefetch = 0 : i64, scratch_operands = 2 : i64, tpu.core_type = #tpu.core_type<tc>, window_params = [{transform_indices = @transform_0, window_bounds = array<i64: 1, 16, 16, 512>}, {pipeline_mode = #tpu.pipeline_mode<synchronous>, transform_indices = @transform_1, window_bounds = array<i64: 512, 128>}, {pipeline_mode = #tpu.pipeline_mode<synchronous>, transform_indices = @transform_2, window_bounds = array<i64: 1, 128>}, {pipeline_mode = #tpu.pipeline_mode<synchronous>, transform_indices = @transform_3, window_bounds = array<i64: 3, 384, 128>}, {pipeline_mode = #tpu.pipeline_mode<synchronous>, transform_indices = @transform_4, window_bounds = array<i64: 1, 128>}, {pipeline_mode = #tpu.pipeline_mode<synchronous>, transform_indices = @transform_5, window_bounds = array<i64: 128, 512>}, {pipeline_mode = #tpu.pipeline_mode<synchronous>, transform_indices = @transform_6, window_bounds = array<i64: 1, 512>}, {transform_indices = @transform_7, window_bounds = array<i64: 1, 8, 16, 512>}]} {
    %c8_i32 = arith.constant 8 : i32
    %0 = arith.muli %arg1, %c8_i32 : i32
    %1 = tpu.assume_multiple %0, 8 : i32
    %c0 = arith.constant 0 : index
    %c0_0 = arith.constant 0 : index
    %2 = vector.load %arg3[%c0, %c0_0] : memref<512x128xbf16, #tpu.memory_space<vmem>>, vector<512x128xbf16>
    %c0_1 = arith.constant 0 : index
    %c0_2 = arith.constant 0 : index
    %3 = vector.load %arg4[%c0_1, %c0_2] : memref<1x128xf32, #tpu.memory_space<vmem>>, vector<1x128xf32>
    %cst = arith.constant 0.000000e+00 : bf16
    %4 = vector.broadcast %cst : bf16 to vector<10x18x128xbf16>
    %c0_3 = arith.constant 0 : index
    %c0_4 = arith.constant 0 : index
    %c0_5 = arith.constant 0 : index
    %5 = vector.load %arg10[%c0_3, %c0_4, %c0_5] : memref<10x18x128xbf16, #tpu.memory_space<vmem>>, vector<10x18x128xbf16>
    tpu.vector_store %arg10[%c0_3, %c0_4, %c0_5], %4 {strides = array<i32>} : memref<10x18x128xbf16, #tpu.memory_space<vmem>>, vector<10x18x128xbf16>,
    %c0_6 = arith.constant 0 : index
    %6 = arith.index_cast %1 : i32 to index
    %c0_7 = arith.constant 0 : index
    %c0_8 = arith.constant 0 : index
    %7 = vector.load %arg2[%c0_6, %6, %c0_7, %c0_8] : memref<1x16x16x512xf32, #tpu.memory_space<vmem>>, vector<1x8x16x512xf32>
    %8 = vector.shape_cast %7 : vector<1x8x16x512xf32> to vector<128x512xf32>
    %9 = arith.truncf %8 : vector<128x512xf32> to vector<128x512xbf16>
    %cst_9 = arith.constant dense<0.000000e+00> : vector<128x128xf32>
    %10 = tpu.matmul %9, %2, %cst_9 {dimension_numbers = #tpu.dot_dimension_numbers<[1], [0], [0], [1], [0, 0, 1, 1], [], []>} : vector<128x512xbf16>, vector<512x128xbf16>, vector<128x128xf32> -> vector<128x128xf32>
    %11 = vector.broadcast %3 : vector<1x128xf32> to vector<128x128xf32>
    %12 = arith.addf %10, %11 : vector<128x128xf32>
    %cst_10 = arith.constant 0.000000e+00 : f32
    %13 = vector.broadcast %cst_10 : f32 to vector<128x128xf32>
    %14 = arith.maximumf %12, %13 : vector<128x128xf32>
    %15 = arith.truncf %14 : vector<128x128xf32> to vector<128x128xbf16>
    %16 = vector.shape_cast %15 : vector<128x128xbf16> to vector<8x16x128xbf16>
    %c1 = arith.constant 1 : index
    %c1_11 = arith.constant 1 : index
    %c0_12 = arith.constant 0 : index
    %17 = vector.load %arg10[%c1, %c1_11, %c0_12] : memref<10x18x128xbf16, #tpu.memory_space<vmem>>, vector<8x16x128xbf16>
    tpu.vector_store %arg10[%c1, %c1_11, %c0_12], %16 {strides = array<i32>} : memref<10x18x128xbf16, #tpu.memory_space<vmem>>, vector<8x16x128xbf16>,
    %c0_i32 = arith.constant 0 : i32
    %18 = arith.cmpi sgt, %arg1, %c0_i32 : i32
    %19 = arith.extui %18 : i1 to i32
    %c0_i32_13 = arith.constant 0 : i32
    %20 = arith.cmpi ne, %19, %c0_i32_13 : i32
    scf.if %20 {
      %c1_i32_86 = arith.constant 1 : i32
      %79 = arith.subi %1, %c1_i32_86 : i32
      %c0_87 = arith.constant 0 : index
      %80 = arith.index_cast %79 : i32 to index
      %c0_88 = arith.constant 0 : index
      %c0_89 = arith.constant 0 : index
      %81 = vector.load %arg2[%c0_87, %80, %c0_88, %c0_89] : memref<1x16x16x512xf32, #tpu.memory_space<vmem>>, vector<1x1x16x512xf32>
      %82 = vector.shape_cast %81 : vector<1x1x16x512xf32> to vector<16x512xf32>
      %83 = arith.truncf %82 : vector<16x512xf32> to vector<16x512xbf16>
      %cst_90 = arith.constant dense<0.000000e+00> : vector<16x128xf32>
      %84 = tpu.matmul %83, %2, %cst_90 {dimension_numbers = #tpu.dot_dimension_numbers<[1], [0], [0], [1], [0, 0, 1, 1], [], []>} : vector<16x512xbf16>, vector<512x128xbf16>, vector<16x128xf32> -> vector<16x128xf32>
      %85 = vector.broadcast %3 : vector<1x128xf32> to vector<16x128xf32>
      %86 = arith.addf %84, %85 : vector<16x128xf32>
      %cst_91 = arith.constant 0.000000e+00 : f32
      %87 = vector.broadcast %cst_91 : f32 to vector<16x128xf32>
      %88 = arith.maximumf %86, %87 : vector<16x128xf32>
      %89 = arith.truncf %88 : vector<16x128xf32> to vector<16x128xbf16>
      %90 = vector.shape_cast %89 : vector<16x128xbf16> to vector<1x16x128xbf16>
      %c0_92 = arith.constant 0 : index
      %c1_93 = arith.constant 1 : index
      %c0_94 = arith.constant 0 : index
      %91 = vector.load %arg10[%c0_92, %c1_93, %c0_94] : memref<10x18x128xbf16, #tpu.memory_space<vmem>>, vector<1x16x128xbf16>
      tpu.vector_store %arg10[%c0_92, %c1_93, %c0_94], %90 {strides = array<i32>} : memref<10x18x128xbf16, #tpu.memory_space<vmem>>, vector<1x16x128xbf16>,
    } else {
    }
    %c1_i32 = arith.constant 1 : i32
    %21 = arith.cmpi slt, %arg1, %c1_i32 : i32
    %22 = arith.extui %21 : i1 to i32
    %c0_i32_14 = arith.constant 0 : i32
    %23 = arith.cmpi ne, %22, %c0_i32_14 : i32
    scf.if %23 {
      %c8_i32_86 = arith.constant 8 : i32
      %79 = arith.addi %1, %c8_i32_86 : i32
      %c0_87 = arith.constant 0 : index
      %80 = arith.index_cast %79 : i32 to index
      %c0_88 = arith.constant 0 : index
      %c0_89 = arith.constant 0 : index
      %81 = vector.load %arg2[%c0_87, %80, %c0_88, %c0_89] : memref<1x16x16x512xf32, #tpu.memory_space<vmem>>, vector<1x1x16x512xf32>
      %82 = vector.shape_cast %81 : vector<1x1x16x512xf32> to vector<16x512xf32>
      %83 = arith.truncf %82 : vector<16x512xf32> to vector<16x512xbf16>
      %cst_90 = arith.constant dense<0.000000e+00> : vector<16x128xf32>
      %84 = tpu.matmul %83, %2, %cst_90 {dimension_numbers = #tpu.dot_dimension_numbers<[1], [0], [0], [1], [0, 0, 1, 1], [], []>} : vector<16x512xbf16>, vector<512x128xbf16>, vector<16x128xf32> -> vector<16x128xf32>
      %85 = vector.broadcast %3 : vector<1x128xf32> to vector<16x128xf32>
      %86 = arith.addf %84, %85 : vector<16x128xf32>
      %cst_91 = arith.constant 0.000000e+00 : f32
      %87 = vector.broadcast %cst_91 : f32 to vector<16x128xf32>
      %88 = arith.maximumf %86, %87 : vector<16x128xf32>
      %89 = arith.truncf %88 : vector<16x128xf32> to vector<16x128xbf16>
      %90 = vector.shape_cast %89 : vector<16x128xbf16> to vector<1x16x128xbf16>
      %c9 = arith.constant 9 : index
      %c1_92 = arith.constant 1 : index
      %c0_93 = arith.constant 0 : index
      %91 = vector.load %arg10[%c9, %c1_92, %c0_93] : memref<10x18x128xbf16, #tpu.memory_space<vmem>>, vector<1x16x128xbf16>
      tpu.vector_store %arg10[%c9, %c1_92, %c0_93], %90 {strides = array<i32>} : memref<10x18x128xbf16, #tpu.memory_space<vmem>>, vector<1x16x128xbf16>,
    } else {
    }
    %cst_15 = arith.constant 0.000000e+00 : f32
    %24 = vector.broadcast %cst_15 : f32 to vector<128x128xf32>
    %c0_16 = arith.constant 0 : index
    %c0_17 = arith.constant 0 : index
    %25 = vector.load %arg11[%c0_16, %c0_17] : memref<128x128xf32, #tpu.memory_space<vmem>>, vector<128x128xf32>
    tpu.vector_store %arg11[%c0_16, %c0_17], %24 {strides = array<i32>} : memref<128x128xf32, #tpu.memory_space<vmem>>, vector<128x128xf32>,
    %c0_18 = arith.constant 0 : index
    %c0_19 = arith.constant 0 : index
    %c0_20 = arith.constant 0 : index
    %26 = vector.load %arg10[%c0_18, %c0_19, %c0_20] : memref<10x18x128xbf16, #tpu.memory_space<vmem>>, vector<8x16x128xbf16>
    %c0_21 = arith.constant 0 : index
    %c1_22 = arith.constant 1 : index
    %c0_23 = arith.constant 0 : index
    %27 = vector.load %arg10[%c0_21, %c1_22, %c0_23] : memref<10x18x128xbf16, #tpu.memory_space<vmem>>, vector<8x16x128xbf16>
    %c0_24 = arith.constant 0 : index
    %c2 = arith.constant 2 : index
    %c0_25 = arith.constant 0 : index
    %28 = vector.load %arg10[%c0_24, %c2, %c0_25] : memref<10x18x128xbf16, #tpu.memory_space<vmem>>, vector<8x16x128xbf16>
    %29 = tpu.concatenate %26, %27, %28 in 2 : vector<8x16x128xbf16>, vector<8x16x128xbf16>, vector<8x16x128xbf16> -> vector<8x16x384xbf16>
    %c0_26 = arith.constant 0 : index
    %c0_27 = arith.constant 0 : index
    %30 = vector.load %arg11[%c0_26, %c0_27] : memref<128x128xf32, #tpu.memory_space<vmem>>, vector<128x128xf32>
    %31 = vector.shape_cast %29 : vector<8x16x384xbf16> to vector<128x384xbf16>
    %c0_28 = arith.constant 0 : index
    %c0_29 = arith.constant 0 : index
    %c0_30 = arith.constant 0 : index
    %32 = vector.load %arg5[%c0_28, %c0_29, %c0_30] : memref<3x384x128xbf16, #tpu.memory_space<vmem>>, vector<1x384x128xbf16>
    %33 = vector.shape_cast %32 : vector<1x384x128xbf16> to vector<384x128xbf16>
    %cst_31 = arith.constant dense<0.000000e+00> : vector<128x128xf32>
    %34 = tpu.matmul %31, %33, %cst_31 {dimension_numbers = #tpu.dot_dimension_numbers<[1], [0], [0], [1], [0, 0, 1, 1], [], []>} : vector<128x384xbf16>, vector<384x128xbf16>, vector<128x128xf32> -> vector<128x128xf32>
    %35 = arith.addf %30, %34 : vector<128x128xf32>
    %c0_32 = arith.constant 0 : index
    %c0_33 = arith.constant 0 : index
    %36 = vector.load %arg11[%c0_32, %c0_33] : memref<128x128xf32, #tpu.memory_space<vmem>>, vector<128x128xf32>
    tpu.vector_store %arg11[%c0_32, %c0_33], %35 {strides = array<i32>} : memref<128x128xf32, #tpu.memory_space<vmem>>, vector<128x128xf32>,
    %c1_34 = arith.constant 1 : index
    %c0_35 = arith.constant 0 : index
    %c0_36 = arith.constant 0 : index
    %37 = vector.load %arg10[%c1_34, %c0_35, %c0_36] : memref<10x18x128xbf16, #tpu.memory_space<vmem>>, vector<8x16x128xbf16>
    %c1_37 = arith.constant 1 : index
    %c1_38 = arith.constant 1 : index
    %c0_39 = arith.constant 0 : index
    %38 = vector.load %arg10[%c1_37, %c1_38, %c0_39] : memref<10x18x128xbf16, #tpu.memory_space<vmem>>, vector<8x16x128xbf16>
    %c1_40 = arith.constant 1 : index
    %c2_41 = arith.constant 2 : index
    %c0_42 = arith.constant 0 : index
    %39 = vector.load %arg10[%c1_40, %c2_41, %c0_42] : memref<10x18x128xbf16, #tpu.memory_space<vmem>>, vector<8x16x128xbf16>
    %40 = tpu.concatenate %37, %38, %39 in 2 : vector<8x16x128xbf16>, vector<8x16x128xbf16>, vector<8x16x128xbf16> -> vector<8x16x384xbf16>
    %c0_43 = arith.constant 0 : index
    %c0_44 = arith.constant 0 : index
    %41 = vector.load %arg11[%c0_43, %c0_44] : memref<128x128xf32, #tpu.memory_space<vmem>>, vector<128x128xf32>
    %42 = vector.shape_cast %40 : vector<8x16x384xbf16> to vector<128x384xbf16>
    %c1_45 = arith.constant 1 : index
    %c0_46 = arith.constant 0 : index
    %c0_47 = arith.constant 0 : index
    %43 = vector.load %arg5[%c1_45, %c0_46, %c0_47] : memref<3x384x128xbf16, #tpu.memory_space<vmem>>, vector<1x384x128xbf16>
    %44 = vector.shape_cast %43 : vector<1x384x128xbf16> to vector<384x128xbf16>
    %cst_48 = arith.constant dense<0.000000e+00> : vector<128x128xf32>
    %45 = tpu.matmul %42, %44, %cst_48 {dimension_numbers = #tpu.dot_dimension_numbers<[1], [0], [0], [1], [0, 0, 1, 1], [], []>} : vector<128x384xbf16>, vector<384x128xbf16>, vector<128x128xf32> -> vector<128x128xf32>
    %46 = arith.addf %41, %45 : vector<128x128xf32>
    %c0_49 = arith.constant 0 : index
    %c0_50 = arith.constant 0 : index
    %47 = vector.load %arg11[%c0_49, %c0_50] : memref<128x128xf32, #tpu.memory_space<vmem>>, vector<128x128xf32>
    tpu.vector_store %arg11[%c0_49, %c0_50], %46 {strides = array<i32>} : memref<128x128xf32, #tpu.memory_space<vmem>>, vector<128x128xf32>,
    %c2_51 = arith.constant 2 : index
    %c0_52 = arith.constant 0 : index
    %c0_53 = arith.constant 0 : index
    %48 = vector.load %arg10[%c2_51, %c0_52, %c0_53] : memref<10x18x128xbf16, #tpu.memory_space<vmem>>, vector<8x16x128xbf16>
    %c2_54 = arith.constant 2 : index
    %c1_55 = arith.constant 1 : index
    %c0_56 = arith.constant 0 : index
    %49 = vector.load %arg10[%c2_54, %c1_55, %c0_56] : memref<10x18x128xbf16, #tpu.memory_space<vmem>>, vector<8x16x128xbf16>
    %c2_57 = arith.constant 2 : index
    %c2_58 = arith.constant 2 : index
    %c0_59 = arith.constant 0 : index
    %50 = vector.load %arg10[%c2_57, %c2_58, %c0_59] : memref<10x18x128xbf16, #tpu.memory_space<vmem>>, vector<8x16x128xbf16>
    %51 = tpu.concatenate %48, %49, %50 in 2 : vector<8x16x128xbf16>, vector<8x16x128xbf16>, vector<8x16x128xbf16> -> vector<8x16x384xbf16>
    %c0_60 = arith.constant 0 : index
    %c0_61 = arith.constant 0 : index
    %52 = vector.load %arg11[%c0_60, %c0_61] : memref<128x128xf32, #tpu.memory_space<vmem>>, vector<128x128xf32>
    %53 = vector.shape_cast %51 : vector<8x16x384xbf16> to vector<128x384xbf16>
    %c2_62 = arith.constant 2 : index
    %c0_63 = arith.constant 0 : index
    %c0_64 = arith.constant 0 : index
    %54 = vector.load %arg5[%c2_62, %c0_63, %c0_64] : memref<3x384x128xbf16, #tpu.memory_space<vmem>>, vector<1x384x128xbf16>
    %55 = vector.shape_cast %54 : vector<1x384x128xbf16> to vector<384x128xbf16>
    %cst_65 = arith.constant dense<0.000000e+00> : vector<128x128xf32>
    %56 = tpu.matmul %53, %55, %cst_65 {dimension_numbers = #tpu.dot_dimension_numbers<[1], [0], [0], [1], [0, 0, 1, 1], [], []>} : vector<128x384xbf16>, vector<384x128xbf16>, vector<128x128xf32> -> vector<128x128xf32>
    %57 = arith.addf %52, %56 : vector<128x128xf32>
    %c0_66 = arith.constant 0 : index
    %c0_67 = arith.constant 0 : index
    %58 = vector.load %arg11[%c0_66, %c0_67] : memref<128x128xf32, #tpu.memory_space<vmem>>, vector<128x128xf32>
    tpu.vector_store %arg11[%c0_66, %c0_67], %57 {strides = array<i32>} : memref<128x128xf32, #tpu.memory_space<vmem>>, vector<128x128xf32>,
    %c0_68 = arith.constant 0 : index
    %c0_69 = arith.constant 0 : index
    %59 = vector.load %arg11[%c0_68, %c0_69] : memref<128x128xf32, #tpu.memory_space<vmem>>, vector<128x128xf32>
    %c0_70 = arith.constant 0 : index
    %c0_71 = arith.constant 0 : index
    %60 = vector.load %arg6[%c0_70, %c0_71] : memref<1x128xf32, #tpu.memory_space<vmem>>, vector<1x128xf32>
    %61 = vector.broadcast %60 : vector<1x128xf32> to vector<128x128xf32>
    %62 = arith.addf %59, %61 : vector<128x128xf32>
    %cst_72 = arith.constant 0.000000e+00 : f32
    %63 = vector.broadcast %cst_72 : f32 to vector<128x128xf32>
    %64 = arith.maximumf %62, %63 : vector<128x128xf32>
    %65 = arith.truncf %64 : vector<128x128xf32> to vector<128x128xbf16>
    %c0_73 = arith.constant 0 : index
    %c0_74 = arith.constant 0 : index
    %66 = vector.load %arg7[%c0_73, %c0_74] : memref<128x512xbf16, #tpu.memory_space<vmem>>, vector<128x512xbf16>
    %cst_75 = arith.constant dense<0.000000e+00> : vector<128x512xf32>
    %67 = tpu.matmul %65, %66, %cst_75 {dimension_numbers = #tpu.dot_dimension_numbers<[1], [0], [0], [1], [0, 0, 1, 1], [], []>} : vector<128x128xbf16>, vector<128x512xbf16>, vector<128x512xf32> -> vector<128x512xf32>
    %c0_76 = arith.constant 0 : index
    %c0_77 = arith.constant 0 : index
    %68 = vector.load %arg8[%c0_76, %c0_77] : memref<1x512xf32, #tpu.memory_space<vmem>>, vector<1x512xf32>
    %69 = vector.broadcast %68 : vector<1x512xf32> to vector<128x512xf32>
    %70 = arith.addf %67, %69 : vector<128x512xf32>
    %c0_78 = arith.constant 0 : index
    %71 = arith.index_cast %1 : i32 to index
    %c0_79 = arith.constant 0 : index
    %c0_80 = arith.constant 0 : index
    %72 = vector.load %arg2[%c0_78, %71, %c0_79, %c0_80] : memref<1x16x16x512xf32, #tpu.memory_space<vmem>>, vector<1x8x16x512xf32>
    %73 = vector.shape_cast %72 : vector<1x8x16x512xf32> to vector<128x512xf32>
    %74 = arith.addf %70, %73 : vector<128x512xf32>
    %cst_81 = arith.constant 0.000000e+00 : f32
    %75 = vector.broadcast %cst_81 : f32 to vector<128x512xf32>
    %76 = arith.maximumf %74, %75 : vector<128x512xf32>
    %77 = vector.shape_cast %76 : vector<128x512xf32> to vector<1x8x16x512xf32>
    %c0_82 = arith.constant 0 : index
    %c0_83 = arith.constant 0 : index
    %c0_84 = arith.constant 0 : index
    %c0_85 = arith.constant 0 : index
    %78 = vector.load %arg9[%c0_82, %c0_83, %c0_84, %c0_85] : memref<1x8x16x512xf32, #tpu.memory_space<vmem>>, vector<1x8x16x512xf32>
    tpu.vector_store %arg9[%c0_82, %c0_83, %c0_84, %c0_85], %77 {strides = array<i32>} : memref<1x8x16x512xf32, #tpu.memory_space<vmem>>, vector<1x8x16x512xf32>,
    return
  }
  func.func @transform_0(%arg0: i32, %arg1: i32) -> (i32, i32, i32, i32) {
    %c0_i32 = arith.constant 0 : i32
    %c0_i32_0 = arith.constant 0 : i32
    %c0_i32_1 = arith.constant 0 : i32
    %c0_i32_2 = arith.constant 0 : i32
    return %arg0, %c0_i32, %c0_i32_0, %c0_i32_1 : i32, i32, i32, i32
  }
  func.func @transform_1(%arg0: i32, %arg1: i32) -> (i32, i32) {
    %c0_i32 = arith.constant 0 : i32
    %c0_i32_0 = arith.constant 0 : i32
    %c0_i32_1 = arith.constant 0 : i32
    return %c0_i32, %c0_i32_0 : i32, i32
  }
  func.func @transform_2(%arg0: i32, %arg1: i32) -> (i32, i32) {
    %c0_i32 = arith.constant 0 : i32
    %c0_i32_0 = arith.constant 0 : i32
    %c0_i32_1 = arith.constant 0 : i32
    return %c0_i32, %c0_i32_0 : i32, i32
  }
  func.func @transform_3(%arg0: i32, %arg1: i32) -> (i32, i32, i32) {
    %c0_i32 = arith.constant 0 : i32
    %c0_i32_0 = arith.constant 0 : i32
    %c0_i32_1 = arith.constant 0 : i32
    %c0_i32_2 = arith.constant 0 : i32
    return %c0_i32, %c0_i32_0, %c0_i32_1 : i32, i32, i32
  }
  func.func @transform_4(%arg0: i32, %arg1: i32) -> (i32, i32) {
    %c0_i32 = arith.constant 0 : i32
    %c0_i32_0 = arith.constant 0 : i32
    %c0_i32_1 = arith.constant 0 : i32
    return %c0_i32, %c0_i32_0 : i32, i32
  }
  func.func @transform_5(%arg0: i32, %arg1: i32) -> (i32, i32) {
    %c0_i32 = arith.constant 0 : i32
    %c0_i32_0 = arith.constant 0 : i32
    %c0_i32_1 = arith.constant 0 : i32
    return %c0_i32, %c0_i32_0 : i32, i32
  }
  func.func @transform_6(%arg0: i32, %arg1: i32) -> (i32, i32) {
    %c0_i32 = arith.constant 0 : i32
    %c0_i32_0 = arith.constant 0 : i32
    %c0_i32_1 = arith.constant 0 : i32
    return %c0_i32, %c0_i32_0 : i32, i32
  }
  func.func @transform_7(%arg0: i32, %arg1: i32) -> (i32, i32, i32, i32) {
    %c0_i32 = arith.constant 0 : i32
    %c0_i32_0 = arith.constant 0 : i32
    %c0_i32_1 = arith.constant 0 : i32
    return %arg0, %arg1, %c0_i32, %c0_i32_0 : i32, i32, i32, i32
  }
}

</mosaic_0001>

<bundles_post_ra>
// kernel: tpu_custom_call.1
= control target key start
LH: loop header
LB: loop body
LE: loop exit
PB: predicated region body
PF: predicated region fallthrough
CT: control target
= control target key end

     0   :  { %s7492_s0 = inlined_call_operand.hbm [shape: f32[2,16,16,512], index: 0, kind: input, shape index: {}]   ;;  %s7493_s1 = inlined_call_operand.hbm [shape: bf16[512,128], index: 1, kind: input, shape index: {}]   ;;  %s7494_s2 = inlined_call_operand.vmem [shape: f32[1,128], index: 2, kind: input, shape index: {}]   ;;  %s7495_s3 = inlined_call_operand.hbm [shape: bf16[3,384,128], index: 3, kind: input, shape index: {}]   ;;  %s7496_s4 = inlined_call_operand.vmem [shape: f32[1,128], index: 4, kind: input, shape index: {}]   ;;  %s7497_s5 = inlined_call_operand.hbm [shape: bf16[128,512], index: 5, kind: input, shape index: {}]   ;;  %s7498_s6 = inlined_call_operand.vmem [shape: f32[1,512], index: 6, kind: input, shape index: {}]   ;;  %s7499_s7 = inlined_call_operand.hbm [shape: f32[2,16,16,512], index: 7, kind: output, shape index: {}]  }
   0x1   :  { %7510 = sst [smem:[#allocation21_spill]] %s7493_s1 }
   0x2   :  { %7511 = sst [smem:[#allocation22_spill]] %s7494_s2 }
   0x3   :  { %7512 = sst [smem:[#allocation23_spill]] %s7495_s3 }
   0x4   :  { %7513 = sst [smem:[#allocation24_spill]] %s7496_s4 }
   0x5   :  { %7514 = sst [smem:[#allocation25_spill]] %s7498_s6 }
   0x6   :  { %7515 = sst [smem:[#allocation26_spill]] %s7499_s7 }
   0x7   :  { %12 = vsyncpa [#allocation5], 0 }
   0x8   :  { %14 = vsyncpa [#allocation5 + $0x1], 0 }
   0x9   :  { %15 = vsyncpa [#allocation8], 0 }
   0xa   :  { %16 = vsyncpa [#allocation11], 0 }
   0xb   :  { %17 = vsyncpa [#allocation6], 0 }
   0xc   :  { %19 = vsyncpa [#allocation6 + $0x1], 0  ;;  %s6134_s24 = smov 0   ;;  %s6136_s25 = smov 0  }
   0xd   :  { %s6138_s26 = smov 0   ;;  %s6140_s27 = smov 0  }
   0xe   :  { %s6142_s28 = smov 0   ;;  %s6144_s29 = smov 0  }
   0xf   :  { %s6146_s30 = smov 0   ;;  %s6148_s8 = smov 0  }
  0x10   :  { %s6150_s9 = smov 0   ;;  %s6152_s10 = smov 0  }
  0x11   :  { %s6154_s11 = smov 0  }
  0x12 LB: > { %7516 = sst [smem:[#allocation17_spill]] %s6038_s24  ;;  %s4523_s12 = sadd.s32 4294967295, %s6078_s11   ;;  %s6078_s11 = sphi %s6154_s11, %s25_s11   ;;  %s6074_s10 = sphi %s6152_s10, %s7560_s10   ;;  %s6070_s9 = sphi %s6150_s9, %s7559_s9   ;;  %s6066_s8 = sphi %s6148_s8, %s7558_s8   ;;  %s6062_s30 = sphi %s6146_s30, %s7557_s30   ;;  %s6058_s29 = sphi %s6144_s29, %s7556_s29   ;;  %s6054_s28 = sphi %s6142_s28, %s7555_s28   ;;  %s6050_s27 = sphi %s6140_s27, %s7554_s27   ;;  %s6046_s26 = sphi %s6138_s26, %s7553_s26   ;;  %s6042_s25 = sphi %s6136_s25, %s7552_s25   ;;  %s6038_s24 = sphi %s6134_s24, %s7551_s24  }
  0x13   : > { %7517 = sst [smem:[#allocation18_spill]] %s6066_s8  ;;  %s4524_s13 = sadd.s32 4294967294, %s6078_s11  }
  0x14   : > { %p57_p0 = scmp.ne.s32.totalorder %s6054_s28, %s6050_s27  ;;  %p6190_p1 = scmp.eq.s32.totalorder %s4523_s12, 0 }
  0x15   : > { %p208_p2 = scmp.ne.s32.totalorder %s6046_s26, %s6042_s25  ;;  %p209_p4 = scmp.eq.s32.totalorder %s4523_s12, 3 }
  0x16   : > { %s7518_s14 = scalar_select %p6190_p1, 1, 0 }
  0x17   : > { %p6199_p3 = por %p6190_p1, %p57_p0  ;;  %p214_p5 = scmp.ne.s32.totalorder %s6042_s25, %s6038_s24 }
  0x18   : > { %p215_p6 = scmp.eq.s32.totalorder %s4524_s13, 3  ;;  %p6205_p7 = por %p209_p4, %p208_p2 }
  0x19   : > { %s7519_s16 = scalar_select %p6199_p3, 1, 0 }
  0x1a   : > { %s7520_s17 = scalar_select %p6205_p7, 1, 0 }
  0x1b   : > { %p4525_p8 = scmp.ge.s32.totalorder %s6078_s11, 1  ;;  %p6210_p9 = por %p215_p6, %p214_p5 }
  0x1c   : > { %7521 = sst [smem:[#allocation19_spill]] %s7520_s17  ;;  %p222_p10 = scmp.lt.s32.totalorder %s6078_s11, 5 }
  0x1d   : > { %s7522_s18 = scalar_select %p6210_p9, 1, 0 }
  0x1e   : > { %p6215_p11 = pnand %p4525_p8, %p222_p10  ;;  %s6080_s20 = smov [#allocation7]  }
  0x1f   : > { %7523 = sst [smem:[#allocation20_spill]] %s7522_s18  ;;  %s234_s21 = sshll.u32 %s6080_s20, 4  ;;  %s6219_s21 = int_to_ptr.vmem [resolvable:$true] %s234_s21 }
  0x20   : > { %s7524_s19 = scalar_select %p6215_p11, 1, 0 }
  0x21   : > { %p5484_p12 = pneg %p6215_p11  ;;  %s6081_s23 = smov [#allocation9]  }
  0x22   : > { %s250_s27 = sshll.u32 %s6081_s23, 4  ;;  %s6082_s12 = smov [#allocation10]   ;;  %s6229_s27 = int_to_ptr.vmem [resolvable:$true] %s250_s27 }
  0x23   : > { %p6225_p13 = pnand %p5484_p12, %p6190_p1  ;;  %s6231_s13 = sshll.u32 %s6082_s12, 4  ;;  %s267_s13 = int_to_ptr.vmem [resolvable:$true] %s6231_s13 }
  0x24   : > { %s7526_s1 = sld [smem:[#allocation21_spill]] }
  0x25   : > { %p6241_p2 = pneg %p6225_p13 }
  0x2a   : > { %s5834_s20 = scalar_lea.hbm %s7526_s1, 4096 }
  0x2b   : > { %p5835_p0 = scmp.ne.s32.totalorder %s7526_s1, %s5834_s20  ;;  %p5841_p6 = scmp.lt.u32.totalorder %s5834_s20, %s7526_s1 }
  0x2d   : > { %p5837_p4 = pnand %p6241_p2, %p5835_p0 }
  0x2f   : > { %p5838_p5 = pneg %p5837_p4 }
  0x31   : > { %p5843_p8 = pnand %p5841_p6, %p5838_p5 }
  0x33   : > { %5846 = shalt.err (!%p5843_p8)
}
  0x34   : > { %s5847_s7 = scalar_lea.vmem %s6219_s21, 4096  ;;  %p5855_p7 = scmp.lt.s32.totalorder %s6219_s21, %s6219_s21 }
  0x35   : > { %p5848_p10 = scmp.ne.s32.totalorder %s6219_s21, %s5847_s7  ;;  %p5856_p1 = scmp.lt.s32.totalorder %s5847_s7, %s5847_s7 }
  0x37   : > { %p5850_p12 = pnand %p5848_p10, %p6241_p2  ;;  %p5857_p0 = por %p5856_p1, %p5855_p7 }
  0x39   : > { %p5851_p9 = pneg %p5850_p12 }
  0x3b   : > { %p5858_p4 = pnand %p5857_p0, %p5851_p9 }
  0x3d   : > { %5861 = shalt.err (!%p5858_p4)
}
  0x3e   : > { %s6083_s24 = smov 64   ;;  %s6084_s15 = smov 4  }
  0x3f   : > { %5487 = dma.hbm_to_vmem [thread:$0]  (!%p6225_p13), %s7526_s1, 4096, %s6219_s21, [#allocation8], %s6083_s24, %s6083_s24, %s6084_s15  }
  0x40   : > { %s7528_s3 = sld [smem:[#allocation23_spill]] }
  0x46   : > { %s5862_s8 = scalar_lea.hbm %s7528_s3, 9216 }
  0x47   : > { %p5863_p1 = scmp.ne.s32.totalorder %s7528_s3, %s5862_s8  ;;  %p5869_p5 = scmp.lt.u32.totalorder %s5862_s8, %s7528_s3 }
  0x49   : > { %p5865_p7 = pnand %p5863_p1, %p6241_p2 }
  0x4b   : > { %p5866_p9 = pneg %p5865_p7 }
  0x4d   : > { %p5871_p6 = pnand %p5869_p5, %p5866_p9 }
  0x4f   : > { %5874 = shalt.err (!%p5871_p6)
}
  0x50   : > { %s5875_s21 = scalar_lea.vmem %s6229_s27, 9216  ;;  %p5883_p0 = scmp.lt.s32.totalorder %s6229_s27, %s6229_s27 }
  0x51   : > { %p5876_p8 = scmp.ne.s32.totalorder %s6229_s27, %s5875_s21  ;;  %p5884_p4 = scmp.lt.s32.totalorder %s5875_s21, %s5875_s21 }
  0x53   : > { %p5878_p10 = pnand %p5876_p8, %p6241_p2  ;;  %p5885_p1 = por %p5884_p4, %p5883_p0 }
  0x55   : > { %p5879_p12 = pneg %p5878_p10 }
  0x57   : > { %p5886_p7 = pnand %p5885_p1, %p5879_p12 }
  0x59   : > { %5889 = shalt.err (!%p5886_p7)
}
  0x5a   : > { %5490 = dma.hbm_to_vmem [thread:$0]  (!%p6225_p13), %s7528_s3, 9216, %s6229_s27, [#allocation8], %s6083_s24, %s6083_s24, %s6084_s15  }
  0x5b   : > { %s5890_s18 = scalar_lea.hbm %s7497_s5, 4096 }
  0x5c   : > { %p5891_p9 = scmp.ne.s32.totalorder %s7497_s5, %s5890_s18  ;;  %p5897_p8 = scmp.lt.u32.totalorder %s5890_s18, %s7497_s5 }
  0x5e   : > { %p5893_p5 = pnand %p5891_p9, %p6241_p2 }
  0x60   : > { %p5894_p6 = pneg %p5893_p5 }
  0x62   : > { %p5899_p10 = pnand %p5897_p8, %p5894_p6 }
  0x64   : > { %5902 = shalt.err (!%p5899_p10)
}
  0x65   : > { %s5903_s21 = scalar_lea.vmem %s267_s13, 4096  ;;  %p5911_p1 = scmp.lt.s32.totalorder %s267_s13, %s267_s13 }
  0x66   : > { %p5904_p12 = scmp.ne.s32.totalorder %s267_s13, %s5903_s21  ;;  %p5912_p7 = scmp.lt.s32.totalorder %s5903_s21, %s5903_s21 }
  0x68   : > { %p5906_p0 = pnand %p5904_p12, %p6241_p2  ;;  %p5913_p3 = por %p5912_p7, %p5911_p1 }
  0x6a   : > { %p5907_p4 = pneg %p5906_p0 }
  0x6c   : > { %p5914_p11 = pnand %p5913_p3, %p5907_p4 }
  0x6e   : > { %5917 = shalt.err (!%p5914_p11)
}
  0x6f   : > { %s6085_s27 = smov 256   ;;  %s6086_s17 = smov 16  }
  0x70   : > { %5493 = dma.hbm_to_vmem [thread:$0]  (!%p6225_p13), %s7497_s5, 4096, %s267_s13, [#allocation11], %s6085_s27, %s6085_s27, %s6086_s17  }
  0x71   : > { %s34_s2 = sadd.s32 1, %s6070_s9  ;;  %s37_s4 = sadd.s32 1, %s6074_s10 }
  0x72   : > { %p35_p3 = scmp.ge.s32.totalorder %s34_s2, 2  ;;  %s44_s6 = sadd.s32 1, %s6058_s29 }
  0x73   : > { %p51_p11 = scmp.ne.s32.totalorder %s6058_s29, %s6054_s28  ;;  %p52_p2 = scmp.eq.s32.totalorder %s6078_s11, 0 }
  0x74   : > { %s7562_s2 = smov (%p35_p3, %s34_s2), 0  ;;  %s7564_s4 = smov (!%p35_p3, %s37_s4), %s6074_s10 }
  0x75   : > { %s194_s22 = ssub.s32 %s6070_s9, %s7562_s2  ;;  %p39_p9 = scmp.ge.s32.totalorder %s7564_s4, 2 }
  0x76   : > { %p5505_p5 = scmp.lt.s32.totalorder %s6078_s11, 4  ;;  %p6316_p13 = por %p52_p2, %p51_p11 }
  0x77   : > { %s283_s8 = sand.u32 1, %s6058_s29   ;;  %s7566_s4 = smov (%p39_p9, %s7564_s4), 0 }
  0x78   : > { %s4530_s18 = sshll.u32 %s283_s8, 10  ;;  %s41_s20 = ssub.s32 %s6074_s10, %s7566_s4 }
  0x79   : > { %p42_p6 = scmp.eq.s32.totalorder %s41_s20, 0  ;;  %s195_s23 = sor.u32 %s194_s22, %s41_s20 }
  0x7a   : > { %p196_p8 = scmp.eq.s32.totalorder %s195_s23, 0  ;;  %s4794_s12 = sshll.u32 %s6074_s10, 14 }
  0x7b   : > { %s6327_s7 = scalar_select %p42_p6, %s6058_s29, %s44_s6  }
  0x7c   : > { %s7530_s21 = sadd.s32 1, %s6046_s26  ;;  %s6337_s15 = scalar_lea.hbm %s7492_s0, %s4794_s12 }
  0x7d   : > { %s6332_s27 = scalar_select %p196_p8, %s6046_s26, %s7530_s21  }
  0x7e   : > { %s287_s1 = scalar_lea.vmem [#allocation4], %s4530_s18  ;;  %p6345_p10 = pnand %p5505_p5, %p6316_p13 }
  0x7f   : > { %s294_s3 = sshll.u32 %s287_s1, 4  ;;  %s6349_s22 = scalar_lea.sflag [#allocation5], %s283_s8  ;;  %s6339_s3 = int_to_ptr.vmem [resolvable:$true] %s294_s3 }
  0x80   : > { %s5918_s20 = scalar_lea.hbm %s6337_s15, 16384  ;;  %p5920_p0 = pneg %p6345_p10 }
  0x81   : > { %p5919_p12 = scmp.ne.s32.totalorder %s6337_s15, %s5918_s20  ;;  %s5923_s13 = scalar_lea.hbm %s7492_s0, 32768 }
  0x82   : > { %p5924_p7 = scmp.lt.u32.totalorder %s6337_s15, %s7492_s0  ;;  %p5925_p3 = scmp.lt.u32.totalorder %s5923_s13, %s5918_s20 }
  0x83   : > { %p5921_p4 = pnand %p5920_p0, %p5919_p12  ;;  %p5927_p2 = scmp.lt.u32.totalorder %s5918_s20, %s6337_s15 }
  0x84   : > { %p5926_p11 = por %p5925_p3, %p5924_p7 }
  0x85   : > { %p5922_p1 = pneg %p5921_p4 }
  0x86   : > { %p5928_p9 = por %p5927_p2, %p5926_p11 }
  0x88   : > { %p5929_p5 = pnand %p5928_p9, %p5922_p1 }
  0x8a   : > { %5932 = shalt.err (!%p5929_p5)
}
  0x8b   : > { %s5933_s8 = scalar_lea.vmem %s6339_s3, 16384  ;;  %s6087_s21 = smov [#allocation4]  }
  0x8c   : > { %p5934_p13 = scmp.ne.s32.totalorder %s6339_s3, %s5933_s8  ;;  %s5938_s17 = sshll.u32 %s6087_s21, 4  ;;  %s5939_s17 = int_to_ptr.vmem [resolvable:$false] %s5938_s17 }
  0x8d   : > { %s5940_s24 = scalar_lea.vmem %s5939_s17, 32768  ;;  %p5941_p12 = scmp.lt.s32.totalorder %s6339_s3, %s5939_s17 }
  0x8e   : > { %p5936_p6 = pnand %p5934_p13, %p5920_p0  ;;  %p5942_p4 = scmp.lt.s32.totalorder %s5940_s24, %s5933_s8 }
  0x90   : > { %p5937_p8 = pneg %p5936_p6  ;;  %p5943_p7 = por %p5942_p4, %p5941_p12 }
  0x92   : > { %p5944_p3 = pnand %p5943_p7, %p5937_p8 }
  0x94   : > { %5947 = shalt.err (!%p5944_p3)
}
  0x95   : > { %s6088_s20 = smov 512   ;;  %s6089_s1 = smov 32  }
  0x96   : > { %5497 = dma.hbm_to_vmem [thread:$0]  (!%p6345_p10), %s6337_s15, 16384, %s6339_s3, %s6349_s22, %s6088_s20, %s6088_s20, %s6089_s1  }
  0x97   : > { %p7532_p0 = scmp.ne.s32.totalorder %s7524_s19, 0 }
  0x98   : > { %s308_s18 = sand.u32 (!%p7532_p0), 1, %s6054_s28   ;;  %p7533_p1 = scmp.ne.s32.totalorder (!%p7532_p0), %s7519_s16, 0 }
  0x99   : > { %306 = sbr.rel (%p7532_p0) target bundleno = 1677 (0x68d), region = 48  ;;  %s6380_s13 = sshll.u32 (!%p7532_p0), %s308_s18, 10 }
  0x9a   : > { %s309_s23 = scalar_lea.sflag (!%p7532_p0), [#allocation5], %s308_s18  ;;  %s312_s12 = scalar_lea.vmem (!%p7532_p0), [#allocation4], %s6380_s13 }
  0xa0   : > { %6021 = dma.done.wait (%p7533_p1), %s309_s23, 16384  }
  0xa1   : > { %6023 = vsyncadd (%p7533_p1), %s309_s23, 4294950912  ;;  %p7534_p11 = scmp.ne.s32.totalorder %s7518_s14, 0 }
  0xa3   : > { %6025 = dma.done.wait (%p7534_p11), [#allocation8], 13312  }
  0xa4   : > { %6027 = vsyncadd (%p7534_p11), [#allocation8], 4294953984 }
  0xa5   : > { %6029 = dma.done.wait (%p7534_p11), [#allocation11], 4096  }
  0xa6   : > { %6031 = vsyncadd (%p7534_p11), [#allocation11], 4294963200  ;;  %s352_s3 = sand.u32 1, %s6042_s25   ;;  %s4539_s19 = sshll.u32 %s6062_s30, 3  ;;  %v6090_v0 = vmov 0   ;;  %v6431_v1 = vld [vmem:[#allocation7 + $0x40] sm:$0xff]  }
  0xa7   : > { %423 = vst [vmem:[#allocation2] sm:$0xf] %v6090_v0  ;;  %424 = vst [vmem:[#allocation2 + $0x4] sm:$0xf] %v6090_v0  ;;  %s6429_s14 = sshll.u32 %s352_s3, 9  ;;  %v6433_v2 = vld [vmem:[#allocation7 + $0xc0] sm:$0xff]   ;;  %4820 = vmatprep.subr.bf16.mxu0 %v6431_v1 }
  0xa8   : > { %425 = vst [vmem:[#allocation2 + $0x8] sm:$0x1] %v6090_v0  ;;  %450 = vst [vmem:[#allocation2 + $0x6c] sm:$0xf] %v6090_v0  ;;  %v6436_v3 = vld [vmem:[#allocation7] sm:$0xff]   ;;  %4884 = vmatprep.subr.bf16.mxu1 %v6433_v2  ;;  %v6442_v5 = vld [vmem:[#allocation7 + $0x48] sm:$0xff]  }
  0xa9   : > { %451 = vst [vmem:[#allocation2 + $0x70] sm:$0xf] %v6090_v0  ;;  %452 = vst [vmem:[#allocation2 + $0x74] sm:$0x1] %v6090_v0  ;;  %v6439_v4 = vld [vmem:[#allocation7 + $0x80] sm:$0xff]   ;;  %4821 = vmatpush3.bf16.msra.mxu0 %v6436_v3  ;;  %v6445_v6 = vld [vmem:[#allocation7 + $0xc8] sm:$0xff]  }
  0xaa   : > { %426 = vst [vmem:[#allocation2 + $0xc] sm:$0xf] %v6090_v0  ;;  %427 = vst [vmem:[#allocation2 + $0x10] sm:$0xf] %v6090_v0  ;;  %4885 = vmatpush3.bf16.msra.mxu1 %v6439_v4  ;;  %4822 = vmatprep.subr.bf16.mxu0 %v6442_v5  ;;  %v6448_v7 = vld [vmem:[#allocation7 + $0x8] sm:$0xff]   ;;  %v6454_v9 = vld [vmem:[#allocation7 + $0x50] sm:$0xff]  }
  0xab   : > { %428 = vst [vmem:[#allocation2 + $0x14] sm:$0x1] %v6090_v0  ;;  %429 = vst [vmem:[#allocation2 + $0x18] sm:$0xf] %v6090_v0  ;;  %4886 = vmatprep.subr.bf16.mxu1 %v6445_v6  ;;  %v6451_v8 = vld [vmem:[#allocation7 + $0x88] sm:$0xff]   ;;  %v6457_v10 = vld [vmem:[#allocation7 + $0xd0] sm:$0xff]  }
  0xac   : > { %430 = vst [vmem:[#allocation2 + $0x1c] sm:$0xf] %v6090_v0  ;;  %431 = vst [vmem:[#allocation2 + $0x20] sm:$0x1] %v6090_v0  ;;  %v6460_v11 = vld [vmem:[#allocation7 + $0x10] sm:$0xff]   ;;  %v6466_v13 = vld [vmem:[#allocation7 + $0x58] sm:$0xff]  }
  0xad   : > { %432 = vst [vmem:[#allocation2 + $0x24] sm:$0xf] %v6090_v0  ;;  %433 = vst [vmem:[#allocation2 + $0x28] sm:$0xf] %v6090_v0  ;;  %4823 = vmatpush3.bf16.msra.mxu0 %v6448_v7  ;;  %v6463_v12 = vld [vmem:[#allocation7 + $0x90] sm:$0xff]   ;;  %v6469_v14 = vld [vmem:[#allocation7 + $0xd8] sm:$0xff]  }
  0xae   : > { %434 = vst [vmem:[#allocation2 + $0x2c] sm:$0x1] %v6090_v0  ;;  %435 = vst [vmem:[#allocation2 + $0x30] sm:$0xf] %v6090_v0  ;;  %4887 = vmatpush3.bf16.msra.mxu1 %v6451_v8  ;;  %4824 = vmatprep.subr.bf16.mxu0 %v6454_v9  ;;  %v6472_v15 = vld [vmem:[#allocation7 + $0x18] sm:$0xff]   ;;  %v6478_v17 = vld [vmem:[#allocation7 + $0x60] sm:$0xff]  }
  0xaf   : > { %436 = vst [vmem:[#allocation2 + $0x34] sm:$0xf] %v6090_v0  ;;  %437 = vst [vmem:[#allocation2 + $0x38] sm:$0x1] %v6090_v0  ;;  %4888 = vmatprep.subr.bf16.mxu1 %v6457_v10  ;;  %v6475_v16 = vld [vmem:[#allocation7 + $0x98] sm:$0xff]   ;;  %v6481_v18 = vld [vmem:[#allocation7 + $0xe0] sm:$0xff]  }
  0xb0   : > { %438 = vst [vmem:[#allocation2 + $0x3c] sm:$0xf] %v6090_v0  ;;  %439 = vst [vmem:[#allocation2 + $0x40] sm:$0xf] %v6090_v0  ;;  %v6484_v19 = vld [vmem:[#allocation7 + $0x20] sm:$0xff]   ;;  %v6490_v21 = vld [vmem:[#allocation7 + $0x68] sm:$0xff]  }
  0xb1   : > { %440 = vst [vmem:[#allocation2 + $0x44] sm:$0x1] %v6090_v0  ;;  %441 = vst [vmem:[#allocation2 + $0x48] sm:$0xf] %v6090_v0  ;;  %4825 = vmatpush3.bf16.msra.mxu0 %v6460_v11  ;;  %v6487_v20 = vld [vmem:[#allocation7 + $0xa0] sm:$0xff]   ;;  %v6493_v22 = vld [vmem:[#allocation7 + $0xe8] sm:$0xff]  }
  0xb2   : > { %442 = vst [vmem:[#allocation2 + $0x4c] sm:$0xf] %v6090_v0  ;;  %443 = vst [vmem:[#allocation2 + $0x50] sm:$0x1] %v6090_v0  ;;  %4889 = vmatpush3.bf16.msra.mxu1 %v6463_v12  ;;  %4826 = vmatprep.subr.bf16.mxu0 %v6466_v13  ;;  %v6496_v23 = vld [vmem:[#allocation7 + $0x28] sm:$0xff]   ;;  %v6502_v25 = vld [vmem:[#allocation7 + $0x70] sm:$0xff]  }
  0xb3   : > { %444 = vst [vmem:[#allocation2 + $0x54] sm:$0xf] %v6090_v0  ;;  %445 = vst [vmem:[#allocation2 + $0x58] sm:$0xf] %v6090_v0  ;;  %4890 = vmatprep.subr.bf16.mxu1 %v6469_v14  ;;  %v6499_v24 = vld [vmem:[#allocation7 + $0xa8] sm:$0xff]   ;;  %v6505_v26 = vld [vmem:[#allocation7 + $0xf0] sm:$0xff]  }
  0xb4   : > { %446 = vst [vmem:[#allocation2 + $0x5c] sm:$0x1] %v6090_v0  ;;  %447 = vst [vmem:[#allocation2 + $0x60] sm:$0xf] %v6090_v0  ;;  %v6508_v27 = vld [vmem:[#allocation7 + $0x30] sm:$0xff]   ;;  %s4796_s16 = sshll.u32 %s6062_s30, 9 }
  0xb5   : > { %448 = vst [vmem:[#allocation2 + $0x64] sm:$0xf] %v6090_v0  ;;  %449 = vst [vmem:[#allocation2 + $0x68] sm:$0x1] %v6090_v0  ;;  %4827 = vmatpush3.bf16.msra.mxu0 %v6472_v15  ;;  %v6512_v28 = vld [vmem:[#allocation7 + $0xb0] sm:$0xff]   ;;  %v6515_v29 = vld [vmem:[#allocation7 + $0x78] sm:$0xff]   ;;  %s6522_s15 = scalar_lea.vmem %s312_s12, %s4796_s16 [#allocation4] }
  0xb6   : > { %4891 = vmatpush3.bf16.msra.mxu1 %v6475_v16  ;;  %4828 = vmatprep.subr.bf16.mxu0 %v6478_v17  ;;  %v6518_v30 = vld [vmem:[#allocation7 + $0xf8] sm:$0xff]   ;;  %v457_v33 = vld [vmem:[%s6522_s15 + $0x8] sm:$0xff]  ;;  %v459_v35 = vld [vmem:[%s6522_s15 + $0x18] sm:$0xff]  ;;  %s7535_s8 = sld [smem:[#allocation22_spill]]  ;;  %vm1172_vm0 = vcmask 1043456   ;;  %vm1179_vm4 = vcmask 1040384  }
  0xb7   : > { %4892 = vmatprep.subr.bf16.mxu1 %v6481_v18  ;;  %v6525_v31 = vld [vmem:[#allocation7 + $0x38] sm:$0xff]   ;;  %v461_v34 = vld [vmem:[%s6522_s15 + $0x28] sm:$0xff]  ;;  %v463_v37 = vld [vmem:[%s6522_s15 + $0x38] sm:$0xff]  ;;  %vm1173_vm1 = vsmask.f32 7938  ;;  %s6683_s21 = scalar_lea.vmem [#allocation12], %s6429_s14 }
  0xb8   : > { %v6528_v32 = vld [vmem:[#allocation7 + $0xb8] sm:$0xff]   ;;  %v521_v36 = vpack.c.bf16 %v461_v34, %v457_v33  ;;  %v456_v38 = vld [vmem:[%s6522_s15] sm:$0xff]  ;;  %v523_v40 = vpack.c.bf16 %v463_v37, %v459_v35  ;;  %v465_v44 = vld [vmem:[%s6522_s15 + $0x48] sm:$0xff]  ;;  %vm1008_vm2 = vsmask.f32 256  ;;  %p4591_p10 = scmp.le.s32.totalorder %s6062_s30, 0 }
  0xb9   : > { %4829 = vmatpush3.bf16.msra.mxu0 %v6484_v19  ;;  %v460_v39 = vld [vmem:[%s6522_s15 + $0x20] sm:$0xff]  ;;  %v458_v42 = vld [vmem:[%s6522_s15 + $0x10] sm:$0xff]  ;;  %v469_v46 = vld [vmem:[%s6522_s15 + $0x68] sm:$0xff]  ;;  %vm1009_vm3 = vsmask.f32 4368  ;;  %s4592_s17 = sadd.s32 (!%p4591_p10), 4294967295, %s4539_s19 }
  0xba   : > { %4893 = vmatpush3.bf16.msra.mxu1 %v6487_v20  ;;  %4830 = vmatprep.subr.bf16.mxu0 %v6490_v21  ;;  %v520_v41 = vpack.c.bf16 %v460_v39, %v456_v38  ;;  %v462_v43 = vld [vmem:[%s6522_s15 + $0x30] sm:$0xff]  ;;  %v467_v47 = vld [vmem:[%s6522_s15 + $0x58] sm:$0xff]  ;;  %v525_v49 = vpack.c.bf16 %v469_v46, %v465_v44  ;;  %v464_v51 = vld [vmem:[%s6522_s15 + $0x40] sm:$0xff]  ;;  %s4813_s24 = sshll.u32 (!%p4591_p10), %s4592_s17, 6 }
  0xbb   : > { %4894 = vmatprep.subr.bf16.mxu1 %v6493_v22  ;;  %782 = vmatprep.mubr.bf16.mxu0 %v521_v36  ;;  %v522_v45 = vpack.c.bf16 %v462_v43, %v458_v42  ;;  %v471_v48 = vld [vmem:[%s6522_s15 + $0x78] sm:$0xff]  ;;  %v468_v52 = vld [vmem:[%s6522_s15 + $0x60] sm:$0xff]  ;;  %v466_v53 = vld [vmem:[%s6522_s15 + $0x50] sm:$0xff]  ;;  %s6696_s20 = scalar_lea.vmem (!%p4591_p10), %s312_s12, %s4813_s24 [#allocation4] }
  0xbc   : > { %879 = vmatprep.mubr.bf16.mxu1 %v523_v40  ;;  %v527_v50 = vpack.c.bf16 %v471_v48, %v467_v47  ;;  %v470_v54 = vld [vmem:[%s6522_s15 + $0x70] sm:$0xff]  ;;  %v473_v55 = vld [vmem:[%s6522_s15 + $0x88] sm:$0xff]  ;;  %v475_v57 = vld [vmem:[%s6522_s15 + $0x98] sm:$0xff]  ;;  %v524_v59 = vpack.c.bf16 %v468_v52, %v464_v51 }
  0xbd   : > { %4831 = vmatpush3.bf16.msra.mxu0 %v6496_v23  ;;  %v477_v56 = vld [vmem:[%s6522_s15 + $0xa8] sm:$0xff]  ;;  %v479_v58 = vld [vmem:[%s6522_s15 + $0xb8] sm:$0xff]  ;;  %v526_v60 = vpack.c.bf16 %v470_v54, %v466_v53  ;;  %v472_v63 = vld [vmem:[%s6522_s15 + $0x80] sm:$0xff] }
  0xbe   : > { %4895 = vmatpush3.bf16.msra.mxu1 %v6499_v24  ;;  %4832 = vmatprep.subr.bf16.mxu0 %v6502_v25  ;;  %v529_v61 = vpack.c.bf16 %v477_v56, %v473_v55  ;;  %v531_v62 = vpack.c.bf16 %v479_v58, %v475_v57  ;;  %v476_v33 = vld [vmem:[%s6522_s15 + $0xa0] sm:$0xff]  ;;  %v474_v34 = vld [vmem:[%s6522_s15 + $0x90] sm:$0xff]  ;;  %v481_v36 = vld [vmem:[%s6522_s15 + $0xc8] sm:$0xff] }
  0xbf   : > { %4896 = vmatprep.subr.bf16.mxu1 %v6505_v26  ;;  %v478_v35 = vld [vmem:[%s6522_s15 + $0xb0] sm:$0xff]  ;;  %v485_v37 = vld [vmem:[%s6522_s15 + $0xe8] sm:$0xff]  ;;  %v483_v38 = vld [vmem:[%s6522_s15 + $0xd8] sm:$0xff]  ;;  %v528_v40 = vpack.c.bf16 %v476_v33, %v472_v63 }
  0xc0   : > { %v487_v39 = vld [vmem:[%s6522_s15 + $0xf8] sm:$0xff]  ;;  %v533_v42 = vpack.c.bf16 %v485_v37, %v481_v36  ;;  %v480_v44 = vld [vmem:[%s6522_s15 + $0xc0] sm:$0xff]  ;;  %v482_v46 = vld [vmem:[%s6522_s15 + $0xd0] sm:$0xff] }
  0xc1   : > { %4833 = vmatpush3.bf16.msra.mxu0 %v6508_v27  ;;  %v535_v43 = vpack.c.bf16 %v487_v39, %v483_v38  ;;  %v486_v47 = vld [vmem:[%s6522_s15 + $0xf0] sm:$0xff]  ;;  %v489_v48 = vld [vmem:[%s6522_s15 + $0x108] sm:$0xff]  ;;  %v495_v51 = vld [vmem:[%s6522_s15 + $0x138] sm:$0xff] }
  0xc2   : > { %4897 = vmatpush3.bf16.msra.mxu1 %v6512_v28  ;;  %4834 = vmatprep.subr.bf16.mxu0 %v6515_v29  ;;  %v534_v53 = vpack.c.bf16 %v486_v47, %v482_v46  ;;  %v488_v56 = vld [vmem:[%s6522_s15 + $0x100] sm:$0xff]  ;;  %v490_v58 = vld [vmem:[%s6522_s15 + $0x110] sm:$0xff]  ;;  %v503_v63 = vld [vmem:[%s6522_s15 + $0x178] sm:$0xff] }
  0xc3   : > { %4898 = vmatprep.subr.bf16.mxu1 %v6518_v30  ;;  %v492_v57 = vld [vmem:[%s6522_s15 + $0x120] sm:$0xff]  ;;  %v498_v39 = vld [vmem:[%s6522_s15 + $0x150] sm:$0xff]  ;;  %vm6606_vm5 = vmand %vm1172_vm0, %vm1173_vm1 }
  0xc4   : > { %v536_v33 = vpack.c.bf16 %v492_v57, %v488_v56  ;;  %v496_v37 = vld [vmem:[%s6522_s15 + $0x140] sm:$0xff]  ;;  %v519_v56 = vld [vmem:[%s6522_s15 + $0x1f8] sm:$0xff]  ;;  %vm6612_vm6 = vmor %vm1008_vm2, %vm1009_vm3 }
  0xc5   : > { %4835 = vmatpush3.bf16.msra.mxu0 %v6525_v31  ;;  %v500_v38 = vld [vmem:[%s6522_s15 + $0x160] sm:$0xff]  ;;  %vm6618_vm7 = vmand %vm1179_vm4, %vm1008_vm2 }
  0xc6   : > { %4899 = vmatpush3.bf16.msra.mxu1 %v6528_v32  ;;  %4948 = vmatprep.subr.bf16.mxu0 (!%p4591_p10), %v6431_v1 }
  0xc7   : > { %4970 = vmatprep.subr.bf16.mxu1 (!%p4591_p10), %v6433_v2 }
  0xc8   : > { %783 = vmatmul.mubr.bf16.vlgmr.msra.gmra.mrb[0].mxu0 %v520_v41  ;;  %v530_v41 = vpack.c.bf16 %v478_v35, %v474_v34 }
  0xc9   : > { %880 = vmatmul.mubr.bf16.vlgmr.msra.gmra.mrb[0].mxu1 %v522_v45  ;;  %790 = vmatprep.mubr.bf16.mxu0 %v525_v49  ;;  %v484_v45 = vld [vmem:[%s6522_s15 + $0xe0] sm:$0xff]  ;;  %v493_v49 = vld [vmem:[%s6522_s15 + $0x128] sm:$0xff] }
  0xca   : > { %887 = vmatprep.mubr.bf16.mxu1 %v527_v50  ;;  %v491_v50 = vld [vmem:[%s6522_s15 + $0x118] sm:$0xff]  ;;  %v532_v52 = vpack.c.bf16 %v484_v45, %v480_v44  ;;  %v537_v54 = vpack.c.bf16 %v493_v49, %v489_v48  ;;  %v540_v45 = vpack.c.bf16 %v500_v38, %v496_v37  ;;  %v504_v49 = vld [vmem:[%s6522_s15 + $0x180] sm:$0xff]  ;;  %4949 = vmatpush3.bf16.msra.mxu0 (!%p4591_p10), %v6436_v3 }
  0xcb   : > { %v539_v55 = vpack.c.bf16 %v495_v51, %v491_v50  ;;  %v511_v44 = vld [vmem:[%s6522_s15 + $0x1b8] sm:$0xff]  ;;  %v508_v50 = vld [vmem:[%s6522_s15 + $0x1a0] sm:$0xff]  ;;  %v506_v51 = vld [vmem:[%s6522_s15 + $0x190] sm:$0xff]  ;;  %4971 = vmatpush3.bf16.msra.mxu1 (!%p4591_p10), %v6439_v4  ;;  %4950 = vmatprep.subr.bf16.mxu0 (!%p4591_p10), %v6442_v5 }
  0xcc   : > { %v544_v57 = vpack.c.bf16 %v508_v50, %v504_v49  ;;  %v6599_v38 = vld [vmem:[%s7535_s8] ss:$0 sm:$0xff]  ;;  %4972 = vmatprep.subr.bf16.mxu1 (!%p4591_p10), %v6445_v6 }
  0xce   : > { %4951 = vmatpush3.bf16.msra.mxu0 (!%p4591_p10), %v6448_v7 }
  0xcf   : > { %4973 = vmatpush3.bf16.msra.mxu1 (!%p4591_p10), %v6451_v8  ;;  %4952 = vmatprep.subr.bf16.mxu0 (!%p4591_p10), %v6454_v9 }
  0xd0   : > { %791 = vmatmul.mubr.bf16.gmra.mrb[4].mxu0 %v524_v59  ;;  %v494_v59 = vld [vmem:[%s6522_s15 + $0x130] sm:$0xff]  ;;  %4974 = vmatprep.subr.bf16.mxu1 (!%p4591_p10), %v6457_v10 }
  0xd1   : > { %888 = vmatmul.mubr.bf16.gmra.mrb[4].mxu1 %v526_v60  ;;  %798 = vmatprep.mubr.bf16.mxu0 %v529_v61  ;;  %v497_v60 = vld [vmem:[%s6522_s15 + $0x148] sm:$0xff]  ;;  %v538_v34 = vpack.c.bf16 %v494_v59, %v490_v58 }
  0xd2   : > { %895 = vmatprep.mubr.bf16.mxu1 %v531_v62  ;;  %v501_v61 = vld [vmem:[%s6522_s15 + $0x168] sm:$0xff]  ;;  %v499_v62 = vld [vmem:[%s6522_s15 + $0x158] sm:$0xff]  ;;  %4953 = vmatpush3.bf16.msra.mxu0 (!%p4591_p10), %v6460_v11 }
  0xd3   : > { %v541_v35 = vpack.c.bf16 %v501_v61, %v497_v60  ;;  %v543_v36 = vpack.c.bf16 %v503_v63, %v499_v62  ;;  %v512_v61 = vld [vmem:[%s6522_s15 + $0x1c0] sm:$0xff]  ;;  %v514_v63 = vld [vmem:[%s6522_s15 + $0x1d0] sm:$0xff]  ;;  %4975 = vmatpush3.bf16.msra.mxu1 (!%p4591_p10), %v6463_v12  ;;  %4954 = vmatprep.subr.bf16.mxu0 (!%p4591_p10), %v6466_v13 }
  0xd4   : > { %v516_v62 = vld [vmem:[%s6522_s15 + $0x1e0] sm:$0xff]  ;;  %4976 = vmatprep.subr.bf16.mxu1 (!%p4591_p10), %v6469_v14 }
  0xd6   : > { %4955 = vmatpush3.bf16.msra.mxu0 (!%p4591_p10), %v6472_v15 }
  0xd7   : > { %4977 = vmatpush3.bf16.msra.mxu1 (!%p4591_p10), %v6475_v16  ;;  %4956 = vmatprep.subr.bf16.mxu0 (!%p4591_p10), %v6478_v17 }
  0xd8   : > { %799 = vmatmul.mubr.bf16.gmra.mrb[8].mxu0 %v528_v40  ;;  %v502_v40 = vld [vmem:[%s6522_s15 + $0x170] sm:$0xff]  ;;  %4978 = vmatprep.subr.bf16.mxu1 (!%p4591_p10), %v6481_v18 }
  0xd9   : > { %896 = vmatmul.mubr.bf16.gmra.mrb[8].mxu1 %v530_v41  ;;  %806 = vmatprep.mubr.bf16.mxu0 %v533_v42  ;;  %v505_v41 = vld [vmem:[%s6522_s15 + $0x188] sm:$0xff]  ;;  %v542_v46 = vpack.c.bf16 %v502_v40, %v498_v39 }
  0xda   : > { %903 = vmatprep.mubr.bf16.mxu1 %v535_v43  ;;  %v509_v42 = vld [vmem:[%s6522_s15 + $0x1a8] sm:$0xff]  ;;  %v507_v43 = vld [vmem:[%s6522_s15 + $0x198] sm:$0xff]  ;;  %4957 = vmatpush3.bf16.msra.mxu0 (!%p4591_p10), %v6484_v19 }
  0xdb   : > { %v545_v47 = vpack.c.bf16 %v509_v42, %v505_v41  ;;  %v547_v48 = vpack.c.bf16 %v511_v44, %v507_v43  ;;  %4979 = vmatpush3.bf16.msra.mxu1 (!%p4591_p10), %v6487_v20  ;;  %4958 = vmatprep.subr.bf16.mxu0 (!%p4591_p10), %v6490_v21 }
  0xdc   : > { %4980 = vmatprep.subr.bf16.mxu1 (!%p4591_p10), %v6493_v22 }
  0xde   : > { %4959 = vmatpush3.bf16.msra.mxu0 (!%p4591_p10), %v6496_v23 }
  0xdf   : > { %4981 = vmatpush3.bf16.msra.mxu1 (!%p4591_p10), %v6499_v24  ;;  %4960 = vmatprep.subr.bf16.mxu0 (!%p4591_p10), %v6502_v25 }
  0xe0   : > { %807 = vmatmul.mubr.bf16.gmra.mrb[12].mxu0 %v532_v52  ;;  %v510_v52 = vld [vmem:[%s6522_s15 + $0x1b0] sm:$0xff]  ;;  %4982 = vmatprep.subr.bf16.mxu1 (!%p4591_p10), %v6505_v26 }
  0xe1   : > { %904 = vmatmul.mubr.bf16.gmra.mrb[12].mxu1 %v534_v53  ;;  %814 = vmatprep.mubr.bf16.mxu0 %v537_v54  ;;  %v513_v53 = vld [vmem:[%s6522_s15 + $0x1c8] sm:$0xff]  ;;  %v546_v58 = vpack.c.bf16 %v510_v52, %v506_v51 }
  0xe2   : > { %911 = vmatprep.mubr.bf16.mxu1 %v539_v55  ;;  %v517_v54 = vld [vmem:[%s6522_s15 + $0x1e8] sm:$0xff]  ;;  %v515_v55 = vld [vmem:[%s6522_s15 + $0x1d8] sm:$0xff]  ;;  %4961 = vmatpush3.bf16.msra.mxu0 (!%p4591_p10), %v6508_v27 }
  0xe3   : > { %v549_v59 = vpack.c.bf16 %v517_v54, %v513_v53  ;;  %v551_v60 = vpack.c.bf16 %v519_v56, %v515_v55  ;;  %4983 = vmatpush3.bf16.msra.mxu1 (!%p4591_p10), %v6512_v28  ;;  %4962 = vmatprep.subr.bf16.mxu0 (!%p4591_p10), %v6515_v29 }
  0xe4   : > { %4984 = vmatprep.subr.bf16.mxu1 (!%p4591_p10), %v6518_v30 }
  0xe6   : > { %4963 = vmatpush3.bf16.msra.mxu0 (!%p4591_p10), %v6525_v31 }
  0xe7   : > { %4985 = vmatpush3.bf16.msra.mxu1 (!%p4591_p10), %v6528_v32 }
  0xe8   : > { %815 = vmatmul.mubr.bf16.gmra.mrb[16].mxu0 %v536_v33  ;;  %v518_v33 = vld [vmem:[%s6522_s15 + $0x1f0] sm:$0xff] }
  0xe9   : > { %912 = vmatmul.mubr.bf16.gmra.mrb[16].mxu1 %v538_v34  ;;  %822 = vmatprep.mubr.bf16.mxu0 %v541_v35  ;;  %v548_v34 = vpack.c.bf16 %v516_v62, %v512_v61  ;;  %v550_v35 = vpack.c.bf16 %v518_v33, %v514_v63 }
  0xea   : > { %919 = vmatprep.mubr.bf16.mxu1 %v543_v36 }
  0xf0   : > { %823 = vmatmul.mubr.bf16.gmra.mrb[20].mxu0 %v540_v45 }
  0xf1   : > { %920 = vmatmul.mubr.bf16.gmra.mrb[20].mxu1 %v542_v46  ;;  %830 = vmatprep.mubr.bf16.mxu0 %v545_v47 }
  0xf2   : > { %927 = vmatprep.mubr.bf16.mxu1 %v547_v48 }
  0xf8   : > { %831 = vmatmul.mubr.bf16.gmra.mrb[24].mxu0 %v544_v57 }
  0xf9   : > { %928 = vmatmul.mubr.bf16.gmra.mrb[24].mxu1 %v546_v58  ;;  %838 = vmatprep.mubr.bf16.mxu0 %v549_v59 }
  0xfa   : > { %935 = vmatprep.mubr.bf16.mxu1 %v551_v60 }
 0x100   : > { %839 = vmatmul.mubr.bf16.gmra.mrb[28].mxu0 %v548_v34 }
 0x101   : > { %936 = vmatmul.mubr.bf16.gmra.mrb[28].mxu1 %v550_v35 }
 0x19b   : > { %v4836_v36 = vpop.f32.mrb[0].mxu0 }
 0x19c   : > { %v4900_v37 = vpop.f32.mrb[0].mxu1  ;;  %v4837_v39 = vpop.f32.mrb[1].mxu0 }
 0x19d   : > { %v4838_v40 = vadd.f32 %v4837_v39, %v4836_v36  ;;  %v4901_v41 = vpop.f32.mrb[1].mxu1  ;;  %v4839_v42 = vpop.f32.mrb[2].mxu0 }
 0x19e   : > { %v4902_v43 = vadd.f32 %v4901_v41, %v4900_v37  ;;  %v4903_v44 = vpop.f32.mrb[2].mxu1  ;;  %v4840_v45 = vpop.f32.mrb[3].mxu0 }
 0x19f   : > { %v785_v46 = vadd.f32 %v4838_v40, %v6599_v38  ;;  %v4841_v47 = vadd.f32 %v4840_v45, %v4839_v42  ;;  %v4904_v48 = vpop.f32.mrb[3].mxu1 }
 0x1a0   : > { %v4905_v49 = vadd.f32 %v4904_v48, %v4903_v44 }
 0x1a1   : > { %v882_v50 = vadd.f32 %v4902_v43, %v785_v46  ;;  %v788_v51 = vadd.f32 %v4841_v47, %v6599_v38  ;;  %v1175_v46 = vld [vmem:[#allocation2 + $0xc] sm:$0xf] }
 0x1a3   : > { %v944_v52 = vmax.f32 %v882_v50, 0.0  ;;  %v885_v53 = vadd.f32 %v4905_v49, %v788_v51  ;;  %v4842_v54 = vpop.f32.mrb[4].mxu0 }
 0x1a4   : > { %v4906_v55 = vpop.f32.mrb[4].mxu1  ;;  %v4843_v56 = vpop.f32.mrb[5].mxu0 }
 0x1a5   : > { %v4797_v57 = vpack.c.bf16 %v944_v52, %v944_v52  ;;  %v945_v58 = vmax.f32 %v885_v53, 0.0  ;;  %v4844_v59 = vadd.f32 %v4843_v56, %v4842_v54  ;;  %v4907_v60 = vpop.f32.mrb[5].mxu1  ;;  %v4845_v61 = vpop.f32.mrb[6].mxu0  ;;  %v1181_v56 = vld [vmem:[#allocation2 + $0x14] sm:$0x1] }
 0x1a6   : > { %v4908_v62 = vadd.f32 %v4907_v60, %v4906_v55  ;;  %v4909_v63 = vpop.f32.mrb[6].mxu1  ;;  %v4846_v33 = vpop.f32.mrb[7].mxu0 }
 0x1a7   : > { %v1012_v34 = vshrl.u32 %v4797_v57, 16  ;;  %v4798_v35 = vpack.c.bf16 %v945_v58, %v945_v58  ;;  %v793_v36 = vadd.f32 %v4844_v59, %v6599_v38  ;;  %v4910_v37 = vpop.f32.mrb[7].mxu1  ;;  %v4847_v39 = vadd.f32 %v4846_v33, %v4845_v61 }
 0x1a8   : > { %v4911_v40 = vadd.f32 %v4910_v37, %v4909_v63  ;;  %v1015_v42 = vshll.u32 %v4797_v57, 16 }
 0x1a9   : > { %v1014_v41 = vrot.slane %v1012_v34, 7  ;;  %v1020_v43 = vshrl.u32 %v4798_v35, 16  ;;  %v890_v44 = vadd.f32 %v4908_v62, %v793_v36  ;;  %v796_v47 = vadd.f32 %v4847_v39, %v6599_v38 }
 0x1aa   : > { %v1023_v51 = vshll.u32 %v4798_v35, 16 }
 0x1ab   : > { %v1017_v48 = vor.u32 %v1015_v42, %v1014_v41  ;;  %v1022_v50 = vrot.slane %v1020_v43, 7  ;;  %v946_v52 = vmax.f32 %v890_v44, 0.0  ;;  %v4848_v53 = vpop.f32.mrb[8].mxu0  ;;  %v1018_v54 = vrot.slane %v1014_v41, 4 }
 0x1ac   : > { %v893_v57 = vadd.f32 %v4911_v40, %v796_v47  ;;  %v4912_v58 = vpop.f32.mrb[8].mxu1  ;;  %v4849_v59 = vpop.f32.mrb[9].mxu0 }
 0x1ad   : > { %v1176_v60 = vsel %vm6606_vm5, %v1017_v48, %v1175_v46  ;;  %v1025_v61 = vor.u32 %v1023_v51, %v1022_v50  ;;  %v1027_v62 = vrot.slane %v1022_v50, 4  ;;  %v4799_v63 = vpack.c.bf16 %v946_v52, %v946_v52  ;;  %v4913_v33 = vpop.f32.mrb[9].mxu1  ;;  %v4851_v34 = vpop.f32.mrb[10].mxu0 }
 0x1ae   : > { %1177 = vst [vmem:[#allocation2 + $0xc] sm:$0xf] %v1176_v60  ;;  %v947_v35 = vmax.f32 %v893_v57, 0.0  ;;  %v4850_v36 = vadd.f32 %v4849_v59, %v4848_v53  ;;  %v4914_v37 = vadd.f32 %v4913_v33, %v4912_v58  ;;  %v4915_v39 = vpop.f32.mrb[10].mxu1  ;;  %v4852_v41 = vpop.f32.mrb[11].mxu0 }
 0x1af   : > { %v1026_v42 = vsel %vm6612_vm6, %v1018_v54, %v1025_v61  ;;  %v1182_v40 = vsel %vm6618_vm7, %v1027_v62, %v1181_v56  ;;  %v1029_v43 = vshrl.u32 %v4799_v63, 16  ;;  %v4916_v44 = vpop.f32.mrb[11].mxu1  ;;  %v4853_v48 = vadd.f32 %v4852_v41, %v4851_v34  ;;  %v1184_v53 = vld [vmem:[#allocation2 + $0x18] sm:$0xf] }
 0x1b0   : > { %1178 = vst [vmem:[#allocation2 + $0x10] sm:$0xf] %v1026_v42  ;;  %1183 = vst [vmem:[#allocation2 + $0x14] sm:$0x1] %v1182_v40  ;;  %v4800_v46 = vpack.c.bf16 %v947_v35, %v947_v35  ;;  %v801_v47 = vadd.f32 %v4850_v36, %v6599_v38  ;;  %v4917_v50 = vadd.f32 %v4916_v44, %v4915_v39  ;;  %v1032_v52 = vshll.u32 %v4799_v63, 16 }
 0x1b1   : > { %v1031_v51 = vrot.slane %v1029_v43, 7  ;;  %v804_v59 = vadd.f32 %v4853_v48, %v6599_v38  ;;  %v1188_v36 = vld [vmem:[#allocation2 + $0x20] sm:$0x1] }
 0x1b2   : > { %v1037_v57 = vshrl.u32 %v4800_v46, 16  ;;  %v898_v58 = vadd.f32 %v4914_v37, %v801_v47  ;;  %v1040_v56 = vshll.u32 %v4800_v46, 16 }
 0x1b3   : > { %v1034_v54 = vor.u32 %v1032_v52, %v1031_v51  ;;  %v4854_v60 = vpop.f32.mrb[12].mxu0  ;;  %v901_v33 = vadd.f32 %v4917_v50, %v804_v59  ;;  %v1035_v35 = vrot.slane %v1031_v51, 4 }
 0x1b4   : > { %v1039_v61 = vrot.slane %v1037_v57, 7  ;;  %v948_v62 = vmax.f32 %v898_v58, 0.0  ;;  %v4918_v42 = vpop.f32.mrb[12].mxu1  ;;  %v4855_v40 = vpop.f32.mrb[13].mxu0 }
 0x1b5   : > { %v1185_v34 = vsel %vm6606_vm5, %v1034_v54, %v1184_v53  ;;  %v4856_v39 = vadd.f32 %v4855_v40, %v4854_v60  ;;  %v4919_v63 = vpop.f32.mrb[13].mxu1  ;;  %v4857_v41 = vpop.f32.mrb[14].mxu0  ;;  %v949_v47 = vmax.f32 %v901_v33, 0.0  ;;  %v1191_v40 = vld [vmem:[#allocation2 + $0x24] sm:$0xf] }
 0x1b6   : > { %1186 = vst [vmem:[#allocation2 + $0x18] sm:$0xf] %v1185_v34  ;;  %v1042_v37 = vor.u32 %v1040_v56, %v1039_v61  ;;  %v1044_v43 = vrot.slane %v1039_v61, 4  ;;  %v4801_v44 = vpack.c.bf16 %v948_v62, %v948_v62  ;;  %v4921_v48 = vpop.f32.mrb[14].mxu1  ;;  %v4858_v52 = vpop.f32.mrb[15].mxu0  ;;  %v4920_v50 = vadd.f32 %v4919_v63, %v4918_v42 }
 0x1b7   : > { %v809_v46 = vadd.f32 %v4856_v39, %v6599_v38  ;;  %v4859_v57 = vadd.f32 %v4858_v52, %v4857_v41  ;;  %v4922_v58 = vpop.f32.mrb[15].mxu1  ;;  %v4802_v54 = vpack.c.bf16 %v949_v47, %v949_v47 }
 0x1b8   : > { %v1043_v51 = vsel %vm6612_vm6, %v1035_v35, %v1042_v37  ;;  %v1189_v53 = vsel %vm6618_vm7, %v1044_v43, %v1188_v36  ;;  %v1046_v59 = vshrl.u32 %v4801_v44, 16  ;;  %v4923_v56 = vadd.f32 %v4922_v58, %v4921_v48 }
 0x1b9   : > { %1187 = vst [vmem:[#allocation2 + $0x1c] sm:$0xf] %v1043_v51  ;;  %1190 = vst [vmem:[#allocation2 + $0x20] sm:$0x1] %v1189_v53  ;;  %v906_v60 = vadd.f32 %v4920_v50, %v809_v46  ;;  %v812_v61 = vadd.f32 %v4859_v57, %v6599_v38  ;;  %v1049_v33 = vshll.u32 %v4801_v44, 16  ;;  %v1054_v42 = vshrl.u32 %v4802_v54, 16 }
 0x1ba   : > { %v1048_v62 = vrot.slane %v1046_v59, 7  ;;  %v1057_v35 = vshll.u32 %v4802_v54, 16  ;;  %v1195_v50 = vld [vmem:[#allocation2 + $0x2c] sm:$0x1] }
 0x1bb   : > { %v950_v34 = vmax.f32 %v906_v60, 0.0  ;;  %v909_v39 = vadd.f32 %v4923_v56, %v812_v61  ;;  %v4860_v63 = vpop.f32.mrb[16].mxu0  ;;  %v1056_v36 = vrot.slane %v1054_v42, 7 }
 0x1bc   : > { %v1051_v41 = vor.u32 %v1049_v33, %v1048_v62  ;;  %v4924_v37 = vpop.f32.mrb[16].mxu1  ;;  %v4861_v52 = vpop.f32.mrb[17].mxu0  ;;  %v1052_v59 = vrot.slane %v1048_v62, 4  ;;  %v1198_v62 = vld [vmem:[#allocation2 + $0x30] sm:$0xf] }
 0x1bd   : > { %v4803_v43 = vpack.c.bf16 %v950_v34, %v950_v34  ;;  %v951_v51 = vmax.f32 %v909_v39, 0.0  ;;  %v4862_v53 = vadd.f32 %v4861_v52, %v4860_v63  ;;  %v4925_v47 = vpop.f32.mrb[17].mxu1  ;;  %v4863_v46 = vpop.f32.mrb[18].mxu0  ;;  %v1059_v60 = vor.u32 %v1057_v35, %v1056_v36 }
 0x1be   : > { %v1192_v48 = vsel %vm6606_vm5, %v1051_v41, %v1191_v40  ;;  %v4926_v44 = vadd.f32 %v4925_v47, %v4924_v37  ;;  %v4927_v57 = vpop.f32.mrb[18].mxu1  ;;  %v4864_v58 = vpop.f32.mrb[19].mxu0  ;;  %v1061_v61 = vrot.slane %v1056_v36, 4 }
 0x1bf   : > { %1193 = vst [vmem:[#allocation2 + $0x24] sm:$0xf] %v1192_v48  ;;  %v1063_v54 = vshrl.u32 %v4803_v43, 16  ;;  %v4928_v56 = vpop.f32.mrb[19].mxu1  ;;  %v4804_v33 = vpack.c.bf16 %v951_v51, %v951_v51  ;;  %v817_v42 = vadd.f32 %v4862_v53, %v6599_v38  ;;  %v4865_v34 = vadd.f32 %v4864_v58, %v4863_v46 }
 0x1c0   : > { %v4929_v39 = vadd.f32 %v4928_v56, %v4927_v57  ;;  %v1060_v63 = vsel %vm6612_vm6, %v1052_v59, %v1059_v60  ;;  %v1196_v40 = vsel %vm6618_vm7, %v1061_v61, %v1195_v50  ;;  %v1066_v37 = vshll.u32 %v4803_v43, 16  ;;  %v1202_v43 = vld [vmem:[#allocation2 + $0x38] sm:$0x1] }
 0x1c1   : > { %v1065_v41 = vrot.slane %v1063_v54, 7  ;;  %1194 = vst [vmem:[#allocation2 + $0x28] sm:$0xf] %v1060_v63  ;;  %1197 = vst [vmem:[#allocation2 + $0x2c] sm:$0x1] %v1196_v40  ;;  %v1071_v35 = vshrl.u32 %v4804_v33, 16  ;;  %v914_v52 = vadd.f32 %v4926_v44, %v817_v42  ;;  %v820_v36 = vadd.f32 %v4865_v34, %v6599_v38 }
 0x1c2   : > { %v1074_v46 = vshll.u32 %v4804_v33, 16 }
 0x1c3   : > { %v1068_v51 = vor.u32 %v1066_v37, %v1065_v41  ;;  %v4866_v47 = vpop.f32.mrb[20].mxu0  ;;  %v1073_v53 = vrot.slane %v1071_v35, 7  ;;  %v952_v48 = vmax.f32 %v914_v52, 0.0  ;;  %v917_v57 = vadd.f32 %v4929_v39, %v820_v36 }
 0x1c4   : > { %v4930_v58 = vpop.f32.mrb[20].mxu1  ;;  %v4867_v59 = vpop.f32.mrb[21].mxu0  ;;  %v1069_v60 = vrot.slane %v1065_v41, 4 }
 0x1c5   : > { %v1199_v50 = vsel %vm6606_vm5, %v1068_v51, %v1198_v62  ;;  %v4868_v61 = vadd.f32 %v4867_v59, %v4866_v47  ;;  %v4931_v54 = vpop.f32.mrb[21].mxu1  ;;  %v4869_v56 = vpop.f32.mrb[22].mxu0  ;;  %v1076_v44 = vor.u32 %v1074_v46, %v1073_v53  ;;  %v1078_v42 = vrot.slane %v1073_v53, 4  ;;  %v1205_v59 = vld [vmem:[#allocation2 + $0x3c] sm:$0xf] }
 0x1c6   : > { %1200 = vst [vmem:[#allocation2 + $0x30] sm:$0xf] %v1199_v50  ;;  %v4805_v34 = vpack.c.bf16 %v952_v48, %v952_v48  ;;  %v953_v63 = vmax.f32 %v917_v57, 0.0  ;;  %v4933_v40 = vpop.f32.mrb[22].mxu1  ;;  %v4870_v37 = vpop.f32.mrb[23].mxu0  ;;  %v4932_v39 = vadd.f32 %v4931_v54, %v4930_v58 }
 0x1c7   : > { %v825_v33 = vadd.f32 %v4868_v61, %v6599_v38  ;;  %v4871_v35 = vadd.f32 %v4870_v37, %v4869_v56  ;;  %v4934_v52 = vpop.f32.mrb[23].mxu1  ;;  %v1077_v41 = vsel %vm6612_vm6, %v1069_v60, %v1076_v44  ;;  %v1203_v62 = vsel %vm6618_vm7, %v1078_v42, %v1202_v43 }
 0x1c8   : > { %v1080_v36 = vshrl.u32 %v4805_v34, 16  ;;  %1201 = vst [vmem:[#allocation2 + $0x34] sm:$0xf] %v1077_v41  ;;  %1204 = vst [vmem:[#allocation2 + $0x38] sm:$0x1] %v1203_v62  ;;  %v4806_v51 = vpack.c.bf16 %v953_v63, %v953_v63  ;;  %v4935_v46 = vadd.f32 %v4934_v52, %v4933_v40  ;;  %v1083_v57 = vshll.u32 %v4805_v34, 16 }
 0x1c9   : > { %v922_v47 = vadd.f32 %v4932_v39, %v825_v33  ;;  %v828_v53 = vadd.f32 %v4871_v35, %v6599_v38  ;;  %v1209_v39 = vld [vmem:[#allocation2 + $0x44] sm:$0x1] }
 0x1ca   : > { %v1082_v48 = vrot.slane %v1080_v36, 7  ;;  %v1088_v58 = vshrl.u32 %v4806_v51, 16  ;;  %v1091_v60 = vshll.u32 %v4806_v51, 16 }
 0x1cb   : > { %v954_v50 = vmax.f32 %v922_v47, 0.0  ;;  %v925_v61 = vadd.f32 %v4935_v46, %v828_v53  ;;  %v4872_v54 = vpop.f32.mrb[24].mxu0 }
 0x1cc   : > { %v1085_v56 = vor.u32 %v1083_v57, %v1082_v48  ;;  %v4936_v44 = vpop.f32.mrb[24].mxu1  ;;  %v4873_v37 = vpop.f32.mrb[25].mxu0  ;;  %v1090_v43 = vrot.slane %v1088_v58, 7  ;;  %v1086_v36 = vrot.slane %v1082_v48, 4  ;;  %v1212_v48 = vld [vmem:[#allocation2 + $0x48] sm:$0xf] }
 0x1cd   : > { %v4807_v42 = vpack.c.bf16 %v954_v50, %v954_v50  ;;  %v955_v41 = vmax.f32 %v925_v61, 0.0  ;;  %v4874_v62 = vadd.f32 %v4873_v37, %v4872_v54  ;;  %v4937_v63 = vpop.f32.mrb[25].mxu1  ;;  %v4875_v33 = vpop.f32.mrb[26].mxu0 }
 0x1ce   : > { %v1206_v40 = vsel %vm6606_vm5, %v1085_v56, %v1205_v59  ;;  %v4938_v34 = vadd.f32 %v4937_v63, %v4936_v44  ;;  %v4939_v35 = vpop.f32.mrb[26].mxu1  ;;  %v4876_v52 = vpop.f32.mrb[27].mxu0  ;;  %v1093_v47 = vor.u32 %v1091_v60, %v1090_v43  ;;  %v1095_v53 = vrot.slane %v1090_v43, 4 }
 0x1cf   : > { %1207 = vst [vmem:[#allocation2 + $0x3c] sm:$0xf] %v1206_v40  ;;  %v1097_v51 = vshrl.u32 %v4807_v42, 16  ;;  %v4940_v46 = vpop.f32.mrb[27].mxu1  ;;  %v4808_v57 = vpack.c.bf16 %v955_v41, %v955_v41  ;;  %v833_v58 = vadd.f32 %v4874_v62, %v6599_v38  ;;  %v4877_v50 = vadd.f32 %v4876_v52, %v4875_v33 }
 0x1d0   : > { %v4941_v61 = vadd.f32 %v4940_v46, %v4939_v35  ;;  %v1094_v54 = vsel %vm6612_vm6, %v1086_v36, %v1093_v47  ;;  %v1210_v59 = vsel %vm6618_vm7, %v1095_v53, %v1209_v39  ;;  %v1100_v44 = vshll.u32 %v4807_v42, 16  ;;  %v1216_v42 = vld [vmem:[#allocation2 + $0x50] sm:$0x1] }
 0x1d1   : > { %v1099_v56 = vrot.slane %v1097_v51, 7  ;;  %1208 = vst [vmem:[#allocation2 + $0x40] sm:$0xf] %v1094_v54  ;;  %1211 = vst [vmem:[#allocation2 + $0x44] sm:$0x1] %v1210_v59  ;;  %v1105_v60 = vshrl.u32 %v4808_v57, 16  ;;  %v930_v37 = vadd.f32 %v4938_v34, %v833_v58  ;;  %v836_v43 = vadd.f32 %v4877_v50, %v6599_v38 }
 0x1d2   : > { %v1108_v33 = vshll.u32 %v4808_v57, 16 }
 0x1d3   : > { %v1102_v41 = vor.u32 %v1100_v44, %v1099_v56  ;;  %v4878_v63 = vpop.f32.mrb[28].mxu0  ;;  %v1107_v62 = vrot.slane %v1105_v60, 7  ;;  %v956_v40 = vmax.f32 %v930_v37, 0.0  ;;  %v933_v35 = vadd.f32 %v4941_v61, %v836_v43 }
 0x1d4   : > { %v4942_v52 = vpop.f32.mrb[28].mxu1  ;;  %v4879_v36 = vpop.f32.mrb[29].mxu0  ;;  %v1103_v47 = vrot.slane %v1099_v56, 4 }
 0x1d5   : > { %v1213_v39 = vsel %vm6606_vm5, %v1102_v41, %v1212_v48  ;;  %v4880_v53 = vadd.f32 %v4879_v36, %v4878_v63  ;;  %v4943_v51 = vpop.f32.mrb[29].mxu1  ;;  %v4881_v46 = vpop.f32.mrb[30].mxu0  ;;  %v1110_v34 = vor.u32 %v1108_v33, %v1107_v62  ;;  %v1112_v58 = vrot.slane %v1107_v62, 4  ;;  %v1219_v36 = vld [vmem:[#allocation2 + $0x54] sm:$0xf] }
 0x1d6   : > { %1214 = vst [vmem:[#allocation2 + $0x48] sm:$0xf] %v1213_v39  ;;  %v4809_v50 = vpack.c.bf16 %v956_v40, %v956_v40  ;;  %v957_v54 = vmax.f32 %v933_v35, 0.0  ;;  %v4945_v59 = vpop.f32.mrb[30].mxu1  ;;  %v4882_v44 = vpop.f32.mrb[31].mxu0  ;;  %v4944_v61 = vadd.f32 %v4943_v51, %v4942_v52 }
 0x1d7   : > { %v841_v57 = vadd.f32 %v4880_v53, %v6599_v38  ;;  %v4883_v60 = vadd.f32 %v4882_v44, %v4881_v46  ;;  %v4946_v37 = vpop.f32.mrb[31].mxu1  ;;  %v1111_v56 = vsel %vm6612_vm6, %v1103_v47, %v1110_v34  ;;  %v1217_v48 = vsel %vm6618_vm7, %v1112_v58, %v1216_v42  ;;  %v1223_v58 = vld [vmem:[#allocation2 + $0x5c] sm:$0x1] }
 0x1d8   : > { %v1114_v43 = vshrl.u32 %v4809_v50, 16  ;;  %1215 = vst [vmem:[#allocation2 + $0x4c] sm:$0xf] %v1111_v56  ;;  %1218 = vst [vmem:[#allocation2 + $0x50] sm:$0x1] %v1217_v48  ;;  %v4810_v41 = vpack.c.bf16 %v957_v54, %v957_v54  ;;  %v4947_v33 = vadd.f32 %v4946_v37, %v4945_v59  ;;  %v1117_v35 = vshll.u32 %v4809_v50, 16 }
 0x1d9   : > { %v938_v63 = vadd.f32 %v4944_v61, %v841_v57  ;;  %v844_v62 = vadd.f32 %v4883_v60, %v6599_v38 }
 0x1da   : > { %v1116_v40 = vrot.slane %v1114_v43, 7  ;;  %v1122_v52 = vshrl.u32 %v4810_v41, 16  ;;  %v1125_v47 = vshll.u32 %v4810_v41, 16  ;;  %v1226_v43 = vld [vmem:[#allocation2 + $0x60] sm:$0xf] }
 0x1db   : > { %v958_v39 = vmax.f32 %v938_v63, 0.0  ;;  %v941_v53 = vadd.f32 %v4947_v33, %v844_v62 }
 0x1dc   : > { %v1119_v51 = vor.u32 %v1117_v35, %v1116_v40  ;;  %v1124_v46 = vrot.slane %v1122_v52, 7  ;;  %v1120_v54 = vrot.slane %v1116_v40, 4  ;;  %v1230_v35 = vld [vmem:[#allocation2 + $0x68] sm:$0x1] }
 0x1dd   : > { %v4811_v34 = vpack.c.bf16 %v958_v39, %v958_v39  ;;  %v959_v44 = vmax.f32 %v941_v53, 0.0 }
 0x1de   : > { %v1220_v42 = vsel %vm6606_vm5, %v1119_v51, %v1219_v36  ;;  %v1127_v57 = vor.u32 %v1125_v47, %v1124_v46  ;;  %v1129_v61 = vrot.slane %v1124_v46, 4  ;;  %v1242_v46 = vld [vmem:[%s6696_s20 + $0x8] sm:$0xff] (!%p4591_p10) }
 0x1df   : > { %1221 = vst [vmem:[#allocation2 + $0x54] sm:$0xf] %v1220_v42  ;;  %v1131_v59 = vshrl.u32 %v4811_v34, 16  ;;  %v4812_v60 = vpack.c.bf16 %v959_v44, %v959_v44  ;;  %v1134_v48 = vshll.u32 %v4811_v34, 16  ;;  %v1246_v47 = vld [vmem:[%s6696_s20 + $0x28] sm:$0xff] (!%p4591_p10)  ;;  %v1244_v34 = vld [vmem:[%s6696_s20 + $0x18] sm:$0xff] (!%p4591_p10) }
 0x1e0   : > { %v1128_v50 = vsel %vm6612_vm6, %v1120_v54, %v1127_v57  ;;  %v1224_v37 = vsel %vm6618_vm7, %v1129_v61, %v1223_v58  ;;  %v1250_v44 = vpack.c.bf16 (!%p4591_p10), %v1246_v47, %v1242_v46  ;;  %v1248_v42 = vld [vmem:[%s6696_s20 + $0x38] sm:$0xff] (!%p4591_p10)  ;;  %v1241_v54 = vld [vmem:[%s6696_s20] sm:$0xff] (!%p4591_p10)  ;;  %v1243_v61 = vld [vmem:[%s6696_s20 + $0x10] sm:$0xff] (!%p4591_p10) }
 0x1e1   : > { %v1133_v56 = vrot.slane %v1131_v59, 7  ;;  %1222 = vst [vmem:[#allocation2 + $0x58] sm:$0xf] %v1128_v50  ;;  %1225 = vst [vmem:[#allocation2 + $0x5c] sm:$0x1] %v1224_v37  ;;  %v1139_v41 = vshrl.u32 %v4812_v60, 16  ;;  %v1252_v58 = vpack.c.bf16 (!%p4591_p10), %v1248_v42, %v1244_v34 }
 0x1e2   : > { %v1142_v33 = vshll.u32 %v4812_v60, 16  ;;  %1236 = sbr.rel (%p4591_p10) target bundleno = 718 (0x2ce), region = 68  ;;  %1285 = vmatprep.mubr.bf16.mxu0 (!%p4591_p10), %v1250_v44  ;;  %v1245_v57 = vld [vmem:[%s6696_s20 + $0x20] sm:$0xff] (!%p4591_p10)  ;;  %v1247_v59 = vld [vmem:[%s6696_s20 + $0x30] sm:$0xff] (!%p4591_p10) }
 0x1e3   : > { %v1136_v63 = vor.u32 %v1134_v48, %v1133_v56  ;;  %v1141_v62 = vrot.slane %v1139_v41, 7  ;;  %v1137_v36 = vrot.slane %v1133_v56, 4  ;;  %1326 = vmatprep.mubr.bf16.mxu1 (!%p4591_p10), %v1252_v58  ;;  %v1249_v60 = vpack.c.bf16 (!%p4591_p10), %v1245_v57, %v1241_v54 }
 0x1e4   : > { %v1251_v50 = vpack.c.bf16 (!%p4591_p10), %v1247_v59, %v1243_v61  ;;  %v1363_v59 = vld [vmem:[#allocation2] sm:$0xf] (!%p4591_p10) }
 0x1e5   : > { %v1227_v40 = vsel %vm6606_vm5, %v1136_v63, %v1226_v43  ;;  %v1144_v52 = vor.u32 %v1142_v33, %v1141_v62  ;;  %v1146_v39 = vrot.slane %v1141_v62, 4  ;;  %1286 = vmatmul.mubr.bf16.vlgmr.msra.gmra.mrb[0].mxu0 (!%p4591_p10), %v1249_v60 }
 0x1e6   : > { %1228 = vst [vmem:[#allocation2 + $0x60] sm:$0xf] %v1227_v40  ;;  %1327 = vmatmul.mubr.bf16.vlgmr.msra.gmra.mrb[0].mxu1 (!%p4591_p10), %v1251_v50 }
 0x1e7   : > { %v1145_v53 = vsel %vm6612_vm6, %v1137_v36, %v1144_v52  ;;  %v1231_v51 = vsel %vm6618_vm7, %v1146_v39, %v1230_v35 }
 0x1e8   : > { %1229 = vst [vmem:[#allocation2 + $0x64] sm:$0xf] %v1145_v53  ;;  %1232 = vst [vmem:[#allocation2 + $0x68] sm:$0x1] %v1231_v51 }
 0x2b8   : > { %v4964_v37 = vpop.f32.mrb[0].mxu0 }
 0x2b9   : > { %v4986_v56 = vpop.f32.mrb[0].mxu1  ;;  %v4965_v48 = vpop.f32.mrb[1].mxu0 }
 0x2ba   : > { %v4987_v43 = vpop.f32.mrb[1].mxu1  ;;  %v4966_v41 = vadd.f32 %v4965_v48, %v4964_v37  ;;  %v4967_v62 = vpop.f32.mrb[2].mxu0 }
 0x2bb   : > { %v4988_v63 = vadd.f32 %v4987_v43, %v4986_v56  ;;  %v4989_v33 = vpop.f32.mrb[2].mxu1  ;;  %v4968_v40 = vpop.f32.mrb[3].mxu0  ;;  %v1367_v56 = vld [vmem:[#allocation2 + $0x8] sm:$0x1] }
 0x2bc   : > { %v4990_v35 = vpop.f32.mrb[3].mxu1  ;;  %v1288_v36 = vadd.f32 %v4966_v41, %v6599_v38  ;;  %v4969_v52 = vadd.f32 %v4968_v40, %v4967_v62 }
 0x2bd   : > { %v4991_v39 = vadd.f32 %v4990_v35, %v4989_v33 }
 0x2be   : > { %v1329_v53 = vadd.f32 %v4988_v63, %v1288_v36  ;;  %v1291_v51 = vadd.f32 %v4969_v52, %v6599_v38 }
 0x2c0   : > { %v1335_v46 = vmax.f32 %v1329_v53, 0.0  ;;  %v1332_v47 = vadd.f32 %v4991_v39, %v1291_v51 }
 0x2c2   : > { %v4814_v34 = vpack.c.bf16 %v1335_v46, %v1335_v46  ;;  %v1336_v44 = vmax.f32 %v1332_v47, 0.0 }
 0x2c4   : > { %v1344_v42 = vshrl.u32 %v4814_v34, 16  ;;  %v4815_v58 = vpack.c.bf16 %v1336_v44, %v1336_v44  ;;  %v1347_v57 = vshll.u32 %v4814_v34, 16 }
 0x2c6   : > { %v1346_v54 = vrot.slane %v1344_v42, 7  ;;  %v1352_v61 = vshrl.u32 %v4815_v58, 16  ;;  %v1355_v37 = vshll.u32 %v4815_v58, 16 }
 0x2c8   : > { %v1349_v60 = vor.u32 %v1347_v57, %v1346_v54  ;;  %v1354_v50 = vrot.slane %v1352_v61, 7  ;;  %v1350_v48 = vrot.slane %v1346_v54, 4 }
 0x2ca   : > { %v1364_v43 = vsel %vm6606_vm5, %v1349_v60, %v1363_v59  ;;  %v1357_v41 = vor.u32 %v1355_v37, %v1354_v50  ;;  %v1359_v63 = vrot.slane %v1354_v50, 4 }
 0x2cb   : > { %1365 = vst [vmem:[#allocation2] sm:$0xf] %v1364_v43 }
 0x2cc   : > { %v1358_v62 = vsel %vm6612_vm6, %v1350_v48, %v1357_v41  ;;  %v1368_v33 = vsel %vm6618_vm7, %v1359_v63, %v1367_v56 }
 0x2cd   : > { %1366 = vst [vmem:[#allocation2 + $0x4] sm:$0xf] %v1358_v62  ;;  %1369 = vst [vmem:[#allocation2 + $0x8] sm:$0x1] %v1368_v33 }
 0x2ce PF: > { %p4597_p2 = scmp.ge.s32.totalorder %s6062_s30, 1 }
 0x2cf   : > { %4992 = vmatprep.subr.bf16.mxu0 (!%p4597_p2), %v6431_v1  ;;  %5014 = vmatprep.subr.bf16.mxu1 (!%p4597_p2), %v6433_v2  ;;  %v4601_v40 = vld [vmem:[%s6522_s15 + $0x208] sm:$0xff] (!%p4597_p2)  ;;  %v4603_v36 = vld [vmem:[%s6522_s15 + $0x218] sm:$0xff] (!%p4597_p2)  ;;  %v4600_v1 = vld [vmem:[%s6522_s15 + $0x200] sm:$0xff] (!%p4597_p2) }
 0x2d0   : > { %1373 = sbr.rel (%p4597_p2) target bundleno = 984 (0x3d8), region = 72  ;;  %v4605_v35 = vld [vmem:[%s6522_s15 + $0x228] sm:$0xff] (!%p4597_p2)  ;;  %4993 = vmatpush3.bf16.msra.mxu0 (!%p4597_p2), %v6436_v3  ;;  %5015 = vmatpush3.bf16.msra.mxu1 (!%p4597_p2), %v6439_v4  ;;  %v4607_v39 = vld [vmem:[%s6522_s15 + $0x238] sm:$0xff] (!%p4597_p2)  ;;  %v4604_v2 = vld [vmem:[%s6522_s15 + $0x220] sm:$0xff] (!%p4597_p2) }
 0x2d1   : > { %v1387_v52 = vpack.c.bf16 (!%p4597_p2), %v4605_v35, %v4601_v40  ;;  %4994 = vmatprep.subr.bf16.mxu0 (!%p4597_p2), %v6442_v5  ;;  %5016 = vmatprep.subr.bf16.mxu1 (!%p4597_p2), %v6445_v6  ;;  %v1389_v53 = vpack.c.bf16 (!%p4597_p2), %v4607_v39, %v4603_v36  ;;  %v4602_v3 = vld [vmem:[%s6522_s15 + $0x210] sm:$0xff] (!%p4597_p2)  ;;  %v1386_v5 = vpack.c.bf16 (!%p4597_p2), %v4604_v2, %v4600_v1 }
 0x2d2   : > { %v4606_v4 = vld [vmem:[%s6522_s15 + $0x230] sm:$0xff] (!%p4597_p2) }
 0x2d3   : > { %1422 = vmatprep.mubr.bf16.mxu0 (!%p4597_p2), %v1387_v52  ;;  %1463 = vmatprep.mubr.bf16.mxu1 (!%p4597_p2), %v1389_v53  ;;  %v1388_v6 = vpack.c.bf16 (!%p4597_p2), %v4606_v4, %v4602_v3  ;;  %v1505_v47 = vld [vmem:[#allocation2 + $0x74] sm:$0x1] (!%p4597_p2) }
 0x2d4   : > { %4995 = vmatpush3.bf16.msra.mxu0 (!%p4597_p2), %v6448_v7  ;;  %5017 = vmatpush3.bf16.msra.mxu1 (!%p4597_p2), %v6451_v8 }
 0x2d5   : > { %4996 = vmatprep.subr.bf16.mxu0 (!%p4597_p2), %v6454_v9  ;;  %5018 = vmatprep.subr.bf16.mxu1 (!%p4597_p2), %v6457_v10 }
 0x2d8   : > { %4997 = vmatpush3.bf16.msra.mxu0 %v6460_v11  ;;  %5019 = vmatpush3.bf16.msra.mxu1 %v6463_v12 }
 0x2d9   : > { %4998 = vmatprep.subr.bf16.mxu0 %v6466_v13  ;;  %5020 = vmatprep.subr.bf16.mxu1 %v6469_v14 }
 0x2dc   : > { %4999 = vmatpush3.bf16.msra.mxu0 %v6472_v15  ;;  %5021 = vmatpush3.bf16.msra.mxu1 %v6475_v16 }
 0x2dd   : > { %5000 = vmatprep.subr.bf16.mxu0 %v6478_v17  ;;  %5022 = vmatprep.subr.bf16.mxu1 %v6481_v18 }
 0x2e0   : > { %5001 = vmatpush3.bf16.msra.mxu0 %v6484_v19  ;;  %5023 = vmatpush3.bf16.msra.mxu1 %v6487_v20 }
 0x2e1   : > { %5002 = vmatprep.subr.bf16.mxu0 %v6490_v21  ;;  %5024 = vmatprep.subr.bf16.mxu1 %v6493_v22 }
 0x2e4   : > { %5003 = vmatpush3.bf16.msra.mxu0 %v6496_v23  ;;  %5025 = vmatpush3.bf16.msra.mxu1 %v6499_v24 }
 0x2e5   : > { %5004 = vmatprep.subr.bf16.mxu0 %v6502_v25  ;;  %5026 = vmatprep.subr.bf16.mxu1 %v6505_v26 }
 0x2e8   : > { %5005 = vmatpush3.bf16.msra.mxu0 %v6508_v27  ;;  %5027 = vmatpush3.bf16.msra.mxu1 %v6512_v28 }
 0x2e9   : > { %5006 = vmatprep.subr.bf16.mxu0 %v6515_v29  ;;  %5028 = vmatprep.subr.bf16.mxu1 %v6518_v30 }
 0x2ec   : > { %5007 = vmatpush3.bf16.msra.mxu0 %v6525_v31  ;;  %5029 = vmatpush3.bf16.msra.mxu1 %v6528_v32  ;;  %v1501_v31 = vld [vmem:[#allocation2 + $0x6c] sm:$0xf] }
 0x2ef   : > { %1423 = vmatmul.mubr.bf16.vlgmr.msra.gmra.mrb[0].mxu0 %v1386_v5  ;;  %1464 = vmatmul.mubr.bf16.vlgmr.msra.gmra.mrb[0].mxu1 %v1388_v6 }
 0x3c2   : > { %v5008_v7 = vpop.f32.mrb[0].mxu0  ;;  %v5030_v8 = vpop.f32.mrb[0].mxu1 }
 0x3c3   : > { %v5009_v9 = vpop.f32.mrb[1].mxu0  ;;  %v5031_v10 = vpop.f32.mrb[1].mxu1 }
 0x3c4   : > { %v5010_v11 = vadd.f32 %v5009_v9, %v5008_v7  ;;  %v5032_v12 = vadd.f32 %v5031_v10, %v5030_v8  ;;  %v5011_v13 = vpop.f32.mrb[2].mxu0  ;;  %v5033_v14 = vpop.f32.mrb[2].mxu1 }
 0x3c5   : > { %v5012_v15 = vpop.f32.mrb[3].mxu0  ;;  %v5034_v16 = vpop.f32.mrb[3].mxu1 }
 0x3c6   : > { %v1425_v17 = vadd.f32 %v5010_v11, %v6599_v38  ;;  %v5013_v18 = vadd.f32 %v5012_v15, %v5011_v13  ;;  %v5035_v19 = vadd.f32 %v5034_v16, %v5033_v14 }
 0x3c8   : > { %v1466_v20 = vadd.f32 %v5032_v12, %v1425_v17  ;;  %v1428_v21 = vadd.f32 %v5013_v18, %v6599_v38 }
 0x3ca   : > { %v1472_v22 = vmax.f32 %v1466_v20, 0.0  ;;  %v1469_v23 = vadd.f32 %v5035_v19, %v1428_v21 }
 0x3cc   : > { %v4817_v24 = vpack.c.bf16 %v1472_v22, %v1472_v22  ;;  %v1473_v25 = vmax.f32 %v1469_v23, 0.0 }
 0x3ce   : > { %v1481_v26 = vshrl.u32 %v4817_v24, 16  ;;  %v4818_v27 = vpack.c.bf16 %v1473_v25, %v1473_v25  ;;  %v1484_v29 = vshll.u32 %v4817_v24, 16 }
 0x3d0   : > { %v1483_v28 = vrot.slane %v1481_v26, 7  ;;  %v1489_v30 = vshrl.u32 %v4818_v27, 16  ;;  %v1492_v46 = vshll.u32 %v4818_v27, 16 }
 0x3d2   : > { %v1486_v32 = vor.u32 %v1484_v29, %v1483_v28  ;;  %v1491_v51 = vrot.slane %v1489_v30, 7  ;;  %v1487_v34 = vrot.slane %v1483_v28, 4 }
 0x3d4   : > { %v1502_v44 = vsel %vm6606_vm5, %v1486_v32, %v1501_v31  ;;  %v1494_v42 = vor.u32 %v1492_v46, %v1491_v51  ;;  %v1496_v38 = vrot.slane %v1491_v51, 4 }
 0x3d5   : > { %1503 = vst [vmem:[#allocation2 + $0x6c] sm:$0xf] %v1502_v44 }
 0x3d6   : > { %v1495_v58 = vsel %vm6612_vm6, %v1487_v34, %v1494_v42  ;;  %v1506_v54 = vsel %vm6618_vm7, %v1496_v38, %v1505_v47 }
 0x3d7   : > { %1504 = vst [vmem:[#allocation2 + $0x70] sm:$0xf] %v1495_v58  ;;  %1507 = vst [vmem:[#allocation2 + $0x74] sm:$0x1] %v1506_v54 }
 0x3d8 PF: > { %v5642_v57 = vld [vmem:[#allocation9 + $0x40] sm:$0xff]   ;;  %v5645_v60 = vld [vmem:[#allocation9 + $0x48] sm:$0xff]   ;;  %v5648_v49 = vld [vmem:[#allocation9 + $0x50] sm:$0xff]   ;;  %vm1757_vm8 = vcmask 1046528   ;;  %vm1628_vm9 = vsmask.f32 7424 }
 0x3d9   : > { %v5643_v61 = vld [vmem:[#allocation9 + $0x80] sm:$0xff]   ;;  %5036 = vmatprep.subr.bf16.mxu0 %v5642_v57  ;;  %v5646_v45 = vld [vmem:[#allocation9 + $0x88] sm:$0xff]   ;;  %v5649_v37 = vld [vmem:[#allocation9 + $0x90] sm:$0xff]   ;;  %s7542_s13 = sld [smem:[#allocation24_spill]]  ;;  %s7543_s19 = sld [smem:[#allocation25_spill]] }
 0x3da   : > { %v5644_v59 = vld [vmem:[#allocation9] sm:$0xff]   ;;  %5276 = vmatprep.subr.bf16.mxu1 %v5643_v61  ;;  %v5647_v50 = vld [vmem:[#allocation9 + $0x8] sm:$0xff]   ;;  %v5650_v55 = vld [vmem:[#allocation9 + $0x10] sm:$0xff]   ;;  %s7544_s14 = sld [smem:[#allocation18_spill]]  ;;  %s4819_s16 = sshll.u32 %s6062_s30, 6 }
 0x3db   : > { %5037 = vmatpush3.bf16.msra.mxu0 %v5644_v59  ;;  %5277 = vmatpush3.bf16.msra.mxu1 %v5643_v61  ;;  %v5651_v56 = vld [vmem:[#allocation9 + $0x58] sm:$0xff]   ;;  %v5654_v41 = vld [vmem:[#allocation9 + $0x60] sm:$0xff]   ;;  %v5657_v33 = vld [vmem:[#allocation9 + $0x68] sm:$0xff]   ;;  %s4399_s8 = sshll.u32 %s6683_s21, 4  ;;  %s7545_s17 = sld [smem:[#allocation19_spill]]  ;;  %s7424_s8 = int_to_ptr.vmem [resolvable:$true] %s4399_s8 }
 0x3dc   : > { %5038 = vmatprep.subr.bf16.mxu0 %v5645_v60  ;;  %5278 = vmatprep.subr.bf16.mxu1 %v5646_v45  ;;  %v5652_v48 = vld [vmem:[#allocation9 + $0x98] sm:$0xff]   ;;  %v5655_v63 = vld [vmem:[#allocation9 + $0xa0] sm:$0xff]   ;;  %v5658_v40 = vld [vmem:[#allocation9 + $0xa8] sm:$0xff]   ;;  %s7546_s1 = sld [smem:[#allocation26_spill]]  ;;  %s6091_s23 = smov [#allocation12]  }
 0x3dd   : > { %v5653_v43 = vld [vmem:[#allocation9 + $0x18] sm:$0xff]   ;;  %v5656_v62 = vld [vmem:[#allocation9 + $0x20] sm:$0xff]   ;;  %v5659_v35 = vld [vmem:[#allocation9 + $0x28] sm:$0xff]   ;;  %s5952_s12 = sshll.u32 %s6091_s23, 4  ;;  %s5953_s12 = int_to_ptr.vmem [resolvable:$false] %s5952_s12 }
 0x3de   : > { %v5660_v36 = vld [vmem:[#allocation9 + $0x70] sm:$0xff]   ;;  %v5663_v53 = vld [vmem:[#allocation9 + $0x78] sm:$0xff]   ;;  %v1524_v1 = vld [vmem:[#allocation2] sm:$0xf]  ;;  %p5955_p8 = scmp.lt.s32.totalorder %s7424_s8, %s5953_s12 }
 0x3df   : > { %5039 = vmatpush3.bf16.msra.mxu0 %v5647_v50  ;;  %5279 = vmatpush3.bf16.msra.mxu1 %v5646_v45  ;;  %v5661_v52 = vld [vmem:[#allocation9 + $0xb0] sm:$0xff]   ;;  %v1525_v2 = vld [vmem:[#allocation2 + $0x4] sm:$0xf]  ;;  %v5664_v3 = vld [vmem:[#allocation9 + $0xb8] sm:$0xff]  }
 0x3e0   : > { %5040 = vmatprep.subr.bf16.mxu0 %v5648_v49  ;;  %5280 = vmatprep.subr.bf16.mxu1 %v5649_v37  ;;  %v5662_v39 = vld [vmem:[#allocation9 + $0x30] sm:$0xff]   ;;  %v4610_v4 = vcombine.low %v1524_v1, %v1525_v2  ;;  %v1548_v6 = vld [vmem:[#allocation2] sm:$0xe]  ;;  %v1527_v8 = vld [vmem:[#allocation2 + $0x10] sm:$0xf]  ;;  %s4790_s6 = sshll.u32 %s7544_s14, 7 }
 0x3e1   : > { %v5667_v5 = vld [vmem:[#allocation2 + $0x8] ss:$0 sps:$4 sm:$0x11]   ;;  %v1526_v7 = vld [vmem:[#allocation2 + $0xc] sm:$0xf]  ;;  %v5665_v9 = vld [vmem:[#allocation9 + $0x38] sm:$0xff]   ;;  %v4626_v13 = vcombine.low %v1548_v6, %v1525_v2  ;;  %s4396_s22 = sadd.s32 %s4819_s16, %s4790_s6 }
 0x3e2   : > { %v1630_v10 = vshrl.u32 %v4610_v4, 16  ;;  %v1632_v11 = vshll.u32 %v4610_v4, 16  ;;  %v1637_v12 = vshll.u32 %v5667_v5, 16  ;;  %v1759_v14 = vrot.slane %v5667_v5, 1  ;;  %v1549_v15 = vld [vmem:[#allocation2 + $0xc] sm:$0xe] }
 0x3e3   : > { %5041 = vmatpush3.bf16.msra.mxu0 %v5650_v55  ;;  %5281 = vmatpush3.bf16.msra.mxu1 %v5649_v37  ;;  %v4611_v16 = vcombine.low %v1526_v7, %v1527_v8  ;;  %v5670_v17 = vld [vmem:[#allocation2 + $0x14] ss:$0 sps:$4 sm:$0x11]   ;;  %v1758_v20 = vrot.slane %v4626_v13, 1  ;;  %v4627_v21 = vcombine.low %v1549_v15, %v1527_v8  ;;  %v5672_v22 = vld [vmem:[#allocation9 + $0x100] sm:$0xff]   ;;  %v5674_v31 = vld [vmem:[#allocation9 + $0x108] sm:$0xff]  }
 0x3e4   : > { %5042 = vmatprep.subr.bf16.mxu0 %v5651_v56  ;;  %5282 = vmatprep.subr.bf16.mxu1 %v5652_v48  ;;  %v1634_v18 = vrot.slane %v1632_v11, 1  ;;  %v1639_v19 = vrot.slane %v1637_v12, 1  ;;  %v1762_v23 = vrot.slane %v5670_v17, 1  ;;  %v5673_v24 = vld [vmem:[#allocation9 + $0xc0] sm:$0xff]   ;;  %v1649_v51 = vshll.u32 %v5670_v17, 16  ;;  %v5675_v44 = vld [vmem:[#allocation9 + $0xc8] sm:$0xff]  }
 0x3e5   : > { %v1760_v26 = vsel %vm1757_vm8, %v1758_v20, %v1759_v14  ;;  %v1761_v27 = vrot.slane %v4627_v21, 1  ;;  %v1642_v28 = vshrl.u32 %v4611_v16, 16  ;;  %v1644_v32 = vshll.u32 %v4611_v16, 16  ;;  %v1529_v46 = vld [vmem:[#allocation2 + $0x1c] sm:$0xf]  ;;  %v5682_v37 = vld [vmem:[#allocation9 + $0x110] sm:$0xff]  }
 0x3e6   : > { %v1635_v25 = vor.u32 %v1634_v18, %v1630_v10  ;;  %5292 = vmatprep.mubr.bf16.mxu1 %v1760_v26  ;;  %v1528_v47 = vld [vmem:[#allocation2 + $0x18] sm:$0xf]  ;;  %v1651_v38 = vrot.slane %v1649_v51, 1  ;;  %v5677_v58 = vld [vmem:[#allocation2 + $0x20] ss:$0 sps:$4 sm:$0x11]  }
 0x3e7   : > { %5043 = vmatpush3.bf16.msra.mxu0 %v5653_v43  ;;  %5283 = vmatpush3.bf16.msra.mxu1 %v5652_v48  ;;  %v1763_v30 = vsel %vm1757_vm8, %v1761_v27, %v1762_v23  ;;  %v1550_v34 = vld [vmem:[#allocation2 + $0x18] sm:$0xe]  ;;  %v1646_v42 = vrot.slane %v1644_v32, 1  ;;  %v1531_v57 = vld [vmem:[#allocation2 + $0x28] sm:$0xf]  ;;  %v4612_v60 = vcombine.low %v1528_v47, %v1529_v46  ;;  %v1765_v50 = vrot.slane %v5677_v58, 1 }
 0x3e8   : > { %5044 = vmatprep.subr.bf16.mxu0 %v5654_v41  ;;  %5284 = vmatprep.subr.bf16.mxu1 %v5655_v63  ;;  %v1640_v29 = vsel %vm1628_vm9, %v1635_v25, %v1639_v19  ;;  %v4628_v54 = vcombine.low %v1550_v34, %v1529_v46  ;;  %v1551_v61 = vld [vmem:[#allocation2 + $0x24] sm:$0xe]  ;;  %v5680_v49 = vld [vmem:[#allocation2 + $0x2c] ss:$0 sps:$4 sm:$0x11]   ;;  %v5692_v7 = vld [vmem:[#allocation9 + $0x120] sm:$0xff]  }
 0x3e9   : > { %2030 = vmatprep.mubr.bf16.mxu0 %v1640_v29  ;;  %v1647_v59 = vor.u32 %v1646_v42, %v1642_v28  ;;  %v4629_v55 = vcombine.low %v1551_v61, %v1531_v57  ;;  %v1768_v43 = vrot.slane %v5680_v49, 1  ;;  %v6797_v6 = vld [vmem:[#allocation2 + $0x40] sm:$0xf]  ;;  %v6800_v13 = vld [vmem:[#allocation2 + $0x44] ss:$0 sps:$4 sm:$0x11]  }
 0x3ea   : > { %v1764_v45 = vrot.slane %v4628_v54, 1  ;;  %v5693_v15 = vld [vmem:[#allocation9 + $0xe0] sm:$0xff]   ;;  %v1774_v19 = vrot.slane %v6800_v13, 1  ;;  %v5694_v20 = vld [vmem:[#allocation9 + $0x128] sm:$0xff]   ;;  %v6807_v25 = vld [vmem:[#allocation2 + $0x4c] sm:$0xf] }
 0x3eb   : > { %5045 = vmatpush3.bf16.msra.mxu0 %v5656_v62  ;;  %5285 = vmatpush3.bf16.msra.mxu1 %v5655_v63  ;;  %v1652_v56 = vsel %vm1628_vm9, %v1647_v59, %v1651_v38  ;;  %v1767_v41 = vrot.slane %v4629_v55, 1  ;;  %v5683_v63 = vld [vmem:[#allocation9 + $0xd0] sm:$0xff]   ;;  %v5684_v62 = vld [vmem:[#allocation9 + $0x118] sm:$0xff]   ;;  %v5695_v28 = vld [vmem:[#allocation9 + $0xe8] sm:$0xff]   ;;  %s4791_s30 = sshll.u32 %s4396_s22, 7  ;;  %p7547_p5 = scmp.ne.s32.totalorder %s7545_s17, 0 }
 0x3ec   : > { %5046 = vmatprep.subr.bf16.mxu0 %v5657_v33  ;;  %5286 = vmatprep.subr.bf16.mxu1 %v5658_v40  ;;  %v1766_v48 = vsel %vm1757_vm8, %v1764_v45, %v1765_v50  ;;  %v1654_v33 = vshrl.u32 %v4612_v60, 16  ;;  %v1532_v26 = vld [vmem:[#allocation2 + $0x30] sm:$0xf]  ;;  %v1554_v27 = vld [vmem:[#allocation2 + $0x48] sm:$0xe]  ;;  %s7422_s18 = scalar_lea.hbm %s7546_s1, %s4791_s30 }
 0x3ed   : > { %v4632_v32 = vcombine.low %v1554_v27, %v6807_v25  ;;  %v6812_v51 = vld [vmem:[#allocation2 + $0x58] sm:$0xf]  ;;  %v1555_v46 = vld [vmem:[#allocation2 + $0x54] sm:$0xe]  ;;  %v5703_v50 = vld [vmem:[#allocation9 + $0xf0] sm:$0xff]  }
 0x3ee   : > { %v6815_v38 = vld [vmem:[#allocation2 + $0x5c] ss:$0 sps:$4 sm:$0x11]   ;;  %v4633_v54 = vcombine.low %v1555_v46, %v6812_v51 }
 0x3ef   : > { %5047 = vmatpush3.bf16.msra.mxu0 %v5659_v35  ;;  %5287 = vmatpush3.bf16.msra.mxu1 %v5658_v40  ;;  %v1656_v40 = vshll.u32 %v4612_v60, 16  ;;  %v1661_v35 = vshll.u32 %v5677_v58, 16  ;;  %v5702_v58 = vld [vmem:[#allocation9 + $0x130] sm:$0xff]  }
 0x3f0   : > { %5048 = vmatprep.subr.bf16.mxu0 %v5660_v36  ;;  %5288 = vmatprep.subr.bf16.mxu1 %v5661_v52  ;;  %v1530_v36 = vld [vmem:[#allocation2 + $0x24] sm:$0xf]  ;;  %v1779_v45 = vrot.slane %v4633_v54, 1 }
 0x3f1   : > { %v1658_v1 = vrot.slane %v1656_v40, 1  ;;  %v1663_v2 = vrot.slane %v1661_v35, 1  ;;  %v4613_v10 = vcombine.low %v1530_v36, %v1531_v57  ;;  %v1534_v57 = vld [vmem:[#allocation2 + $0x3c] sm:$0xf] }
 0x3f2   : > { %v6826_v35 = vld [vmem:[#allocation2 + $0x14] ss:$0 sps:$4 sm:$0x11]   ;;  %v5708_v36 = vld [vmem:[#allocation9 + $0x140] sm:$0xff]  }
 0x3f3   : > { %5049 = vmatpush3.bf16.msra.mxu0 %v5662_v39  ;;  %5289 = vmatpush3.bf16.msra.mxu1 %v5661_v52  ;;  %v1769_v52 = vsel %vm1757_vm8, %v1767_v41, %v1768_v43  ;;  %v1533_v39 = vld [vmem:[#allocation2 + $0x34] sm:$0xf]  ;;  %v1659_v8 = vor.u32 %v1658_v1, %v1654_v33  ;;  %v1668_v23 = vshll.u32 %v4613_v10, 16  ;;  %v2224_v41 = vld [vmem:[#allocation2 + $0xc] sm:$0xf] }
 0x3f4   : > { %5050 = vmatprep.subr.bf16.mxu0 %v5663_v53  ;;  %5290 = vmatprep.subr.bf16.mxu1 %v5664_v3  ;;  %v5685_v53 = vld [vmem:[#allocation9 + $0xd8] sm:$0xff]   ;;  %v4614_v47 = vcombine.low %v1532_v26, %v1533_v39  ;;  %v5716_v26 = vld [vmem:[#allocation9 + $0x1d0] sm:$0xff]  }
 0x3f5   : > { %v1670_v29 = vrot.slane %v1668_v23, 1  ;;  %v5705_v43 = vld [vmem:[#allocation9 + $0xf8] sm:$0xff]  }
 0x3f6   : > { %v1680_v55 = vshll.u32 %v4614_v47, 16 }
 0x3f7   : > { %5051 = vmatpush3.bf16.msra.mxu0 %v5665_v9  ;;  %5291 = vmatpush3.bf16.msra.mxu1 %v5664_v3  ;;  %v1552_v3 = vld [vmem:[#allocation2 + $0x30] sm:$0xe]  ;;  %v1553_v9 = vld [vmem:[#allocation2 + $0x3c] sm:$0xe] }
 0x3f8   : > { %5116 = vmatprep.subr.bf16.mxu1 %v5672_v22  ;;  %v4630_v5 = vcombine.low %v1552_v3, %v1533_v39  ;;  %v4631_v14 = vcombine.low %v1553_v9, %v6797_v6  ;;  %v1666_v22 = vshrl.u32 %v4613_v10, 16  ;;  %v6829_v39 = vcombine.low %v1534_v57, %v6797_v6 }
 0x3f9   : > { %v2336_v3 = vshll.u32 %v6826_v35, 16 }
 0x3fa   : > { %2031 = vmatmul.mubr.bf16.vlgmr.msra.gmra.mrb[0].mxu0 %v4610_v4  ;;  %5293 = vmatmul.mubr.bf16.vlgmr.msra.gmra.mrb[0].mxu1 %v1763_v30  ;;  %v6795_v4 = vld [vmem:[#allocation2 + $0x38] ss:$0 sps:$4 sm:$0x11]   ;;  %v1770_v11 = vrot.slane %v4630_v5, 1  ;;  %v1773_v18 = vrot.slane %v4631_v14, 1  ;;  %v1671_v34 = vor.u32 %v1670_v29, %v1666_v22  ;;  %v1690_v6 = vshrl.u32 %v6829_v39, 16 }
 0x3fb   : > { %5117 = vmatpush3.bf16.msra.mxu1 %v5673_v24  ;;  %2038 = vmatprep.mubr.bf16.mxu0 %v1652_v56  ;;  %v1771_v12 = vrot.slane %v6795_v4, 1  ;;  %v1673_v24 = vshll.u32 %v5680_v49, 16  ;;  %v5704_v49 = vld [vmem:[#allocation9 + $0x138] sm:$0xff]   ;;  %v1685_v56 = vshll.u32 %v6795_v4, 16  ;;  %v5710_v4 = vld [vmem:[#allocation9 + $0x180] sm:$0xff]   ;;  %v2338_v9 = vrot.slane %v2336_v3, 1 }
 0x3fc   : > { %5118 = vmatprep.subr.bf16.mxu1 %v5674_v31  ;;  %5296 = vmatprep.mubr.bf16.mxu1 %v1766_v48  ;;  %v1775_v21 = vsel %vm1757_vm8, %v1773_v18, %v1774_v19  ;;  %v6809_v31 = vld [vmem:[#allocation2 + $0x50] ss:$0 sps:$4 sm:$0x11]   ;;  %v1536_v5 = vld [vmem:[#allocation2 + $0x48] sm:$0xf]  ;;  %v5715_v18 = vld [vmem:[#allocation9 + $0x148] sm:$0xff]  }
 0x3fd   : > { %v1772_v17 = vsel %vm1757_vm8, %v1770_v11, %v1771_v12  ;;  %v1675_v30 = vrot.slane %v1673_v24, 1  ;;  %v1777_v42 = vrot.slane %v6809_v31, 1  ;;  %v1687_v33 = vrot.slane %v1685_v56, 1  ;;  %v5712_v11 = vld [vmem:[#allocation9 + $0x188] sm:$0xff]   ;;  %v5723_v56 = vld [vmem:[#allocation9 + $0x1e0] sm:$0xff]   ;;  %v5729_v3 = vld [vmem:[#allocation9 + $0x158] sm:$0xff]  }
 0x3fe   : > { %v1692_v12 = vshll.u32 %v6829_v39, 16  ;;  %v6842_v22 = vcombine.low %v1536_v5, %v6807_v25  ;;  %v1709_v57 = vshll.u32 %v6809_v31, 16  ;;  %v2230_v5 = vld [vmem:[#allocation2 + $0x30] sm:$0xf] }
 0x3ff   : > { %5119 = vmatpush3.bf16.msra.mxu1 %v5675_v44  ;;  %v1776_v44 = vrot.slane %v4632_v32, 1  ;;  %v1676_v61 = vsel %vm1628_vm9, %v1671_v34, %v1675_v30  ;;  %v5717_v30 = vld [vmem:[#allocation9 + $0x190] sm:$0xff]   ;;  %v1538_v32 = vld [vmem:[#allocation2 + $0x54] sm:$0xf] }
 0x400   : > { %5120 = vmatprep.subr.bf16.mxu1 %v5682_v37  ;;  %v1678_v37 = vshrl.u32 %v4614_v47, 16  ;;  %v1694_v19 = vrot.slane %v1692_v12, 1  ;;  %v5718_v34 = vld [vmem:[#allocation9 + $0x1d8] sm:$0xff]   ;;  %v1704_v54 = vshll.u32 %v6842_v22, 16 }
 0x401   : > { %v1778_v59 = vsel %vm1757_vm8, %v1776_v44, %v1777_v42  ;;  %v1702_v44 = vshrl.u32 %v6842_v22, 16 }
 0x402   : > { %2039 = vmatmul.mubr.bf16.gmra.mrb[4].mxu0 %v4611_v16  ;;  %5297 = vmatmul.mubr.bf16.gmra.mrb[4].mxu1 %v1769_v52  ;;  %v1664_v16 = vsel %vm1628_vm9, %v1659_v8, %v1663_v2  ;;  %v5709_v52 = vld [vmem:[#allocation9 + $0x1c0] sm:$0xff]  }
 0x403   : > { %5121 = vmatpush3.bf16.msra.mxu1 %v5683_v63  ;;  %2046 = vmatprep.mubr.bf16.mxu0 %v1664_v16  ;;  %v6823_v63 = vld [vmem:[#allocation2 + $0x10] sm:$0xf]  ;;  %v2226_v16 = vld [vmem:[#allocation2 + $0x18] sm:$0xf] }
 0x404   : > { %5122 = vmatprep.subr.bf16.mxu1 %v5684_v62  ;;  %5300 = vmatprep.mubr.bf16.mxu1 %v1772_v17  ;;  %v1682_v62 = vrot.slane %v1680_v55, 1  ;;  %v4658_v40 = vcombine.low %v2224_v41, %v6823_v63  ;;  %v6836_v17 = vld [vmem:[#allocation2 + $0x1c] sm:$0xf]  ;;  %v6855_v55 = vld [vmem:[#allocation2 + $0x2c] ss:$0 sps:$4 sm:$0x11]  }
 0x405   : > { %5196 = vmatprep.subr.bf16.mxu0 %v5709_v52 }
 0x406   : > { %v2329_v1 = vshrl.u32 %v4658_v40, 16  ;;  %v2331_v2 = vshll.u32 %v4658_v40, 16  ;;  %5197 = vmatpush3.bf16.msra.mxu0 %v5710_v4 }
 0x407   : > { %5123 = vmatpush3.bf16.msra.mxu1 %v5685_v53  ;;  %v1683_v53 = vor.u32 %v1682_v62, %v1678_v37  ;;  %v2360_v62 = vshll.u32 %v6855_v55, 16 }
 0x408   : > { %5124 = vmatprep.subr.bf16.mxu1 %v5692_v7  ;;  %v2333_v8 = vrot.slane %v2331_v2, 1  ;;  %v1721_v2 = vshll.u32 %v6815_v38, 16 }
 0x409   : > { %v1688_v7 = vsel %vm1628_vm9, %v1683_v53, %v1687_v33  ;;  %v5724_v33 = vld [vmem:[#allocation9 + $0x1a0] sm:$0xff]   ;;  %v2362_v52 = vrot.slane %v2360_v62, 1  ;;  %v5726_v53 = vld [vmem:[#allocation9 + $0x1a8] sm:$0xff]  }
 0x40a   : > { %2047 = vmatmul.mubr.bf16.gmra.mrb[8].mxu0 %v4612_v60  ;;  %5301 = vmatmul.mubr.bf16.gmra.mrb[8].mxu1 %v1775_v21  ;;  %v1780_v60 = vrot.slane %v6815_v38, 1  ;;  %v2334_v14 = vor.u32 %v2333_v8, %v2329_v1  ;;  %v6839_v21 = vld [vmem:[#allocation2 + $0x20] ss:$0 sps:$4 sm:$0x11]  }
 0x40b   : > { %5125 = vmatpush3.bf16.msra.mxu1 %v5693_v15  ;;  %2054 = vmatprep.mubr.bf16.mxu0 %v1676_v61  ;;  %v1697_v15 = vshll.u32 %v6800_v13, 16  ;;  %v1695_v13 = vor.u32 %v1694_v19, %v1690_v6  ;;  %v2348_v29 = vshll.u32 %v6839_v21, 16  ;;  %v2228_v61 = vld [vmem:[#allocation2 + $0x24] sm:$0xf]  ;;  %v5730_v6 = vld [vmem:[#allocation9 + $0x1f0] sm:$0xff]  }
 0x40c   : > { %5126 = vmatprep.subr.bf16.mxu1 %v5694_v20  ;;  %5304 = vmatprep.mubr.bf16.mxu1 %v1778_v59  ;;  %v1781_v48 = vsel %vm1757_vm8, %v1779_v45, %v1780_v60  ;;  %v4659_v20 = vcombine.low %v2226_v16, %v6836_v17  ;;  %v2339_v23 = vsel %vm1628_vm9, %v2334_v14, %v2338_v9  ;;  %v5722_v59 = vld [vmem:[#allocation9 + $0x150] sm:$0xff]   ;;  %v1723_v9 = vrot.slane %v1721_v2, 1 }
 0x40d   : > { %v1699_v24 = vrot.slane %v1697_v15, 1  ;;  %v6850_v60 = vld [vmem:[#allocation2 + $0x28] sm:$0xf]  ;;  %v6902_v2 = vld [vmem:[#allocation2 + $0x2c] ss:$0 sps:$4 sm:$0x11]  }
 0x40e   : > { %v2341_v27 = vshrl.u32 %v4659_v20, 16  ;;  %v4660_v37 = vcombine.low %v2228_v61, %v6850_v60 }
 0x40f   : > { %5127 = vmatpush3.bf16.msra.mxu1 %v5695_v28  ;;  %v2343_v28 = vshll.u32 %v4659_v20, 16  ;;  %v1700_v46 = vsel %vm1628_vm9, %v1695_v13, %v1699_v24  ;;  %v5732_v24 = vld [vmem:[#allocation9 + $0x1f8] sm:$0xff]   ;;  %v2232_v13 = vld [vmem:[#allocation2 + $0x3c] sm:$0xf] }
 0x410   : > { %5128 = vmatprep.subr.bf16.mxu1 %v5702_v58  ;;  %v5719_v58 = vld [vmem:[#allocation9 + $0x198] sm:$0xff]   ;;  %v2355_v41 = vshll.u32 %v4660_v37, 16 }
 0x411   : > { %v2345_v25 = vrot.slane %v2343_v28, 1  ;;  %v2924_v28 = vld [vmem:[#allocation2 + $0x18] sm:$0xf] }
 0x412   : > { %2055 = vmatmul.mubr.bf16.gmra.mrb[12].mxu0 %v4613_v10  ;;  %5305 = vmatmul.mubr.bf16.gmra.mrb[12].mxu1 %v1781_v48  ;;  %v5711_v10 = vld [vmem:[#allocation9 + $0x1c8] sm:$0xff]   ;;  %v6858_v48 = vcombine.low %v1538_v32, %v6812_v51  ;;  %v6879_v32 = vld [vmem:[#allocation2 + $0x1c] sm:$0xf] }
 0x413   : > { %5129 = vmatpush3.bf16.msra.mxu1 %v5703_v50  ;;  %2062 = vmatprep.mubr.bf16.mxu0 %v1688_v7  ;;  %v2346_v42 = vor.u32 %v2345_v25, %v2341_v27  ;;  %v1706_v50 = vrot.slane %v1704_v54, 1  ;;  %v6865_v7 = vld [vmem:[#allocation2 + $0x34] sm:$0xf]  ;;  %v6874_v27 = vld [vmem:[#allocation2 + $0x40] sm:$0xf] }
 0x414   : > { %5130 = vmatprep.subr.bf16.mxu1 %v5704_v49  ;;  %5198 = vmatprep.subr.bf16.mxu0 %v5711_v10  ;;  %v1711_v49 = vrot.slane %v1709_v57, 1  ;;  %v1714_v51 = vshrl.u32 %v6858_v48, 16  ;;  %v1716_v1 = vshll.u32 %v6858_v48, 16  ;;  %v4661_v10 = vcombine.low %v2230_v5, %v6865_v7 }
 0x415   : > { %5199 = vmatpush3.bf16.msra.mxu0 %v5712_v11  ;;  %2729 = vmatprep.mubr.bf16.mxu1 %v2339_v23  ;;  %v1707_v31 = vor.u32 %v1706_v50, %v1702_v44  ;;  %v6868_v11 = vld [vmem:[#allocation2 + $0x38] ss:$0 sps:$4 sm:$0x11]   ;;  %v5743_v44 = vld [vmem:[#allocation9 + $0x168] sm:$0xff]  }
 0x416   : > { %5200 = vmatprep.subr.bf16.mxu0 %v5716_v26  ;;  %v1718_v8 = vrot.slane %v1716_v1, 1  ;;  %v2365_v14 = vshrl.u32 %v4661_v10, 16  ;;  %v2367_v15 = vshll.u32 %v4661_v10, 16  ;;  %v2372_v16 = vshll.u32 %v6868_v11, 16  ;;  %v5733_v26 = vld [vmem:[#allocation9 + $0x1b8] sm:$0xff]  }
 0x417   : > { %5131 = vmatpush3.bf16.msra.mxu1 %v5705_v43  ;;  %v2353_v43 = vshrl.u32 %v4660_v37, 16 }
 0x418   : > { %5308 = vmatprep.subr.bf16.mxu1 %v5708_v36  ;;  %v1719_v38 = vor.u32 %v1718_v8, %v1714_v51  ;;  %v2374_v23 = vrot.slane %v2372_v16, 1 }
 0x419   : > { %5201 = vmatpush3.bf16.msra.mxu0 %v5717_v30  ;;  %v6877_v30 = vld [vmem:[#allocation2 + $0x44] ss:$0 sps:$4 sm:$0x11]  }
 0x41a   : > { %2063 = vmatmul.mubr.bf16.gmra.mrb[16].mxu0 %v4614_v47  ;;  %2730 = vmatmul.mubr.bf16.vlgmr.msra.gmra.mrb[16].mxu1 %v4658_v40  ;;  %v2350_v47 = vrot.slane %v2348_v29, 1  ;;  %v1712_v40 = vsel %vm1628_vm9, %v1707_v31, %v1711_v49  ;;  %v1724_v19 = vsel %vm1628_vm9, %v1719_v38, %v1723_v9  ;;  %v4662_v29 = vcombine.low %v2232_v13, %v6874_v27  ;;  %v2236_v9 = vld [vmem:[#allocation2 + $0x54] sm:$0xf]  ;;  %v6906_v38 = vld [vmem:[#allocation2 + $0x58] sm:$0xf] }
 0x41b   : > { %5309 = vmatpush3.bf16.msra.mxu1 %v5708_v36  ;;  %2070 = vmatprep.mubr.bf16.mxu0 %v1700_v46  ;;  %v2357_v36 = vrot.slane %v2355_v41, 1  ;;  %v5738_v46 = vld [vmem:[#allocation9 + $0x160] sm:$0xff]   ;;  %v2384_v54 = vshll.u32 %v6877_v30, 16  ;;  %v2926_v41 = vld [vmem:[#allocation2 + $0x24] sm:$0xf]  ;;  %v6909_v16 = vcombine.low %v2236_v9, %v6906_v38 }
 0x41c   : > { %5310 = vmatprep.subr.bf16.mxu1 %v5715_v18  ;;  %5202 = vmatprep.subr.bf16.mxu0 %v5718_v34  ;;  %v2351_v45 = vsel %vm1628_vm9, %v2346_v42, %v2350_v47  ;;  %v4706_v47 = vcombine.low %v2924_v28, %v6879_v32  ;;  %v6883_v34 = vld [vmem:[#allocation2 + $0x20] ss:$0 sps:$4 sm:$0x11]   ;;  %v2377_v42 = vshrl.u32 %v4662_v29, 16 }
 0x41d   : > { %2737 = vmatprep.mubr.bf16.mxu1 %v2351_v45  ;;  %5203 = vmatpush3.bf16.msra.mxu0 %v5719_v58  ;;  %v2358_v4 = vor.u32 %v2357_v36, %v2353_v43  ;;  %v2379_v58 = vshll.u32 %v4662_v29, 16  ;;  %v5748_v45 = vld [vmem:[#allocation9 + $0x170] sm:$0xff]   ;;  %v2386_v49 = vrot.slane %v2384_v54, 1  ;;  %v2401_v13 = vshrl.u32 %v6909_v16, 16  ;;  %v6926_v54 = vld [vmem:[#allocation2 + $0x64] sm:$0xf] }
 0x41e   : > { %5204 = vmatprep.subr.bf16.mxu0 %v5723_v56  ;;  %v3029_v57 = vshrl.u32 %v4706_v47, 16  ;;  %v3031_v61 = vshll.u32 %v4706_v47, 16  ;;  %v6888_v56 = vld [vmem:[#allocation2 + $0x4c] sm:$0xf] }
 0x41f   : > { %5311 = vmatpush3.bf16.msra.mxu1 %v5715_v18  ;;  %v2363_v12 = vsel %vm1628_vm9, %v2358_v4, %v2362_v52  ;;  %v5731_v18 = vld [vmem:[#allocation9 + $0x1b0] sm:$0xff]   ;;  %v2381_v50 = vrot.slane %v2379_v58, 1  ;;  %v6918_v28 = vld [vmem:[#allocation2 + $0x38] ss:$0 sps:$4 sm:$0x11]  }
 0x420   : > { %5312 = vmatprep.subr.bf16.mxu1 %v5722_v59  ;;  %v3033_v31 = vrot.slane %v3031_v61, 1  ;;  %v2238_v58 = vld [vmem:[#allocation2 + $0x60] sm:$0xf] }
 0x421   : > { %5205 = vmatpush3.bf16.msra.mxu0 %v5724_v33  ;;  %v2382_v62 = vor.u32 %v2381_v50, %v2377_v42  ;;  %v6893_v33 = vld [vmem:[#allocation2 + $0x50] ss:$0 sps:$4 sm:$0x11]   ;;  %v3060_v42 = vshll.u32 %v6918_v28, 16 }
 0x422   : > { %2071 = vmatmul.mubr.bf16.gmra.mrb[20].mxu0 %v6829_v39  ;;  %2738 = vmatmul.mubr.bf16.gmra.mrb[20].mxu1 %v4659_v20  ;;  %v5725_v39 = vld [vmem:[#allocation9 + $0x1e8] sm:$0xff]   ;;  %v2369_v20 = vrot.slane %v2367_v15, 1  ;;  %v3034_v36 = vor.u32 %v3033_v31, %v3029_v57  ;;  %v2396_v1 = vshll.u32 %v6893_v33, 16 }
 0x423   : > { %5313 = vmatpush3.bf16.msra.mxu1 %v5722_v59  ;;  %2078 = vmatprep.mubr.bf16.mxu0 %v1712_v40  ;;  %v3036_v59 = vshll.u32 %v6883_v34, 16  ;;  %v6895_v40 = vld [vmem:[#allocation2 + $0x28] sm:$0xf]  ;;  %v2387_v51 = vsel %vm1628_vm9, %v2382_v62, %v2386_v49 }
 0x424   : > { %5206 = vmatprep.subr.bf16.mxu0 %v5725_v39  ;;  %5314 = vmatprep.subr.bf16.mxu1 %v5729_v3  ;;  %v6931_v49 = vld [vmem:[#allocation2 + $0x68] ss:$0 sps:$4 sm:$0x11]  }
 0x425   : > { %2745 = vmatprep.mubr.bf16.mxu1 %v2363_v12  ;;  %5207 = vmatpush3.bf16.msra.mxu0 %v5726_v53  ;;  %v4707_v53 = vcombine.low %v2926_v41, %v6895_v40  ;;  %v3048_v12 = vshll.u32 %v6902_v2, 16 }
 0x426   : > { %5208 = vmatprep.subr.bf16.mxu0 %v5730_v6  ;;  %v2398_v6 = vrot.slane %v2396_v1, 1  ;;  %v6941_v1 = vld [vmem:[#allocation2 + $0x44] ss:$0 sps:$4 sm:$0x11]  }
 0x427   : > { %5315 = vmatpush3.bf16.msra.mxu1 %v5729_v3  ;;  %v3041_v5 = vshrl.u32 %v4707_v53, 16  ;;  %v3043_v8 = vshll.u32 %v4707_v53, 16 }
 0x428   : > { %5316 = vmatprep.subr.bf16.mxu1 %v5738_v46 }
 0x429   : > { %5209 = vmatpush3.bf16.msra.mxu0 %v5731_v18  ;;  %v3045_v15 = vrot.slane %v3043_v8, 1  ;;  %v6911_v18 = vld [vmem:[#allocation2 + $0x5c] ss:$0 sps:$4 sm:$0x11]  }
 0x42a   : > { %2079 = vmatmul.mubr.bf16.gmra.mrb[24].mxu0 %v6842_v22  ;;  %2746 = vmatmul.mubr.bf16.gmra.mrb[24].mxu1 %v4660_v37  ;;  %v2370_v22 = vor.u32 %v2369_v20, %v2365_v14  ;;  %v2234_v37 = vld [vmem:[#allocation2 + $0x48] sm:$0xf]  ;;  %v3050_v20 = vrot.slane %v3048_v12, 1 }
 0x42b   : > { %2086 = vmatprep.mubr.bf16.mxu0 %v1724_v19  ;;  %5210 = vmatprep.subr.bf16.mxu0 %v5732_v24  ;;  %v6891_v43 = vcombine.low %v2234_v37, %v6888_v56  ;;  %v2928_v19 = vld [vmem:[#allocation2 + $0x30] sm:$0xf]  ;;  %v2930_v37 = vld [vmem:[#allocation2 + $0x3c] sm:$0xf]  ;;  %v2932_v12 = vld [vmem:[#allocation2 + $0x48] sm:$0xf] }
 0x42c   : > { %v2375_v25 = vsel %vm1628_vm9, %v2370_v22, %v2374_v23  ;;  %5317 = vmatpush3.bf16.msra.mxu1 %v5738_v46  ;;  %v6913_v23 = vld [vmem:[#allocation2 + $0x34] sm:$0xf]  ;;  %v2403_v22 = vshll.u32 %v6909_v16, 16  ;;  %v6920_v46 = vld [vmem:[#allocation9 + $0x200] sm:$0xff]  }
 0x42d   : > { %2753 = vmatprep.mubr.bf16.mxu1 %v2375_v25  ;;  %5211 = vmatpush3.bf16.msra.mxu0 %v5733_v26  ;;  %v2389_v52 = vshrl.u32 %v6891_v43, 16  ;;  %v2391_v39 = vshll.u32 %v6891_v43, 16  ;;  %v3046_v26 = vor.u32 %v3045_v15, %v3041_v5  ;;  %v2408_v25 = vshll.u32 %v6911_v18, 16 }
 0x42e   : > { %5318 = vmatprep.subr.bf16.mxu1 %v5743_v44 }
 0x42f   : > { %v2393_v4 = vrot.slane %v2391_v39, 1  ;;  %v2410_v57 = vrot.slane %v2408_v25, 1  ;;  %v2420_v39 = vshll.u32 %v6931_v49, 16 }
 0x430   : > { %5319 = vmatpush3.bf16.msra.mxu1 %v5743_v44  ;;  %v3051_v44 = vsel %vm1628_vm9, %v3046_v26, %v3050_v20  ;;  %v6949_v26 = vld [vmem:[#allocation2 + $0x50] ss:$0 sps:$4 sm:$0x11]  }
 0x431   : > { %5320 = vmatprep.subr.bf16.mxu1 %v5748_v45  ;;  %v2394_v14 = vor.u32 %v2393_v4, %v2389_v52  ;;  %v2422_v5 = vrot.slane %v2420_v39, 1  ;;  %v3084_v25 = vshll.u32 %v6949_v26, 16 }
 0x432   : > { %2087 = vmatmul.mubr.bf16.gmra.mrb[28].mxu0 %v6858_v48  ;;  %2754 = vmatmul.mubr.bf16.gmra.mrb[28].mxu1 %v4661_v10  ;;  %v3038_v48 = vrot.slane %v3036_v59, 1  ;;  %v5753_v10 = vld [vmem:[#allocation9 + $0x178] sm:$0xff]  }
 0x433   : > { %2761 = vmatprep.mubr.bf16.mxu1 %v2387_v51  ;;  %v2399_v24 = vsel %vm1628_vm9, %v2394_v14, %v2398_v6  ;;  %v2248_v6 = vld [vmem:[#allocation2 + $0xc] sm:$0xe] }
 0x434   : > { %v3039_v3 = vsel %vm1628_vm9, %v3034_v36, %v3038_v48  ;;  %5321 = vmatpush3.bf16.msra.mxu1 %v5748_v45  ;;  %v6929_v45 = vcombine.low %v2238_v58, %v6926_v54  ;;  %v3062_v48 = vrot.slane %v3060_v42, 1  ;;  %v6936_v36 = vld [vmem:[#allocation2 + $0x40] sm:$0xf]  ;;  %v6946_v14 = vld [vmem:[#allocation2 + $0x4c] sm:$0xf] }
 0x435   : > { %3429 = vmatprep.mubr.bf16.mxu0 %v3039_v3  ;;  %5322 = vmatprep.subr.bf16.mxu1 %v5753_v10  ;;  %v4709_v51 = vcombine.low %v2930_v37, %v6936_v36 }
 0x436   : > { %v2413_v41 = vshrl.u32 %v6929_v45, 16  ;;  %v2415_v62 = vshll.u32 %v6929_v45, 16 }
 0x437   : > { %v3065_v8 = vshrl.u32 %v4709_v51, 16  ;;  %v3067_v9 = vshll.u32 %v4709_v51, 16 }
 0x438   : > { %5323 = vmatpush3.bf16.msra.mxu1 %v5753_v10  ;;  %v2417_v4 = vrot.slane %v2415_v62, 1  ;;  %v3072_v10 = vshll.u32 %v6941_v1, 16  ;;  %v2250_v62 = vld [vmem:[#allocation2 + $0x24] sm:$0xe] }
 0x439   : > { %5340 = vmatprep.subr.bf16.mxu1 %v6920_v46 }
 0x43a   : > { %3430 = vmatmul.mubr.bf16.vlgmr.msra.gmra.mrb[32].mxu0 %v4706_v47  ;;  %2762 = vmatmul.mubr.bf16.gmra.mrb[32].mxu1 %v4662_v29  ;;  %v4708_v47 = vcombine.low %v2928_v19, %v6913_v23  ;;  %v2405_v29 = vrot.slane %v2403_v22, 1  ;;  %v2418_v15 = vor.u32 %v2417_v4, %v2413_v41  ;;  %v3069_v19 = vrot.slane %v3067_v9, 1  ;;  %v6967_v4 = vld [vmem:[#allocation2 + $0x64] sm:$0xf] }
 0x43b   : > { %2769 = vmatprep.mubr.bf16.mxu1 %v2399_v24  ;;  %3437 = vmatprep.mubr.bf16.mxu0 %v3051_v44  ;;  %v3074_v20 = vrot.slane %v3072_v10, 1  ;;  %v4710_v24 = vcombine.low %v2932_v12, %v6946_v14  ;;  %v4674_v44 = vcombine.low %v2248_v6, %v6823_v63  ;;  %v4676_v10 = vcombine.low %v2250_v62, %v6850_v60  ;;  %v6976_v6 = vld [vmem:[#allocation2 + $0x68] ss:$0 sps:$4 sm:$0x11]   ;;  %v2251_v60 = vld [vmem:[#allocation2 + $0x30] sm:$0xe] }
 0x43c   : > { %v3053_v61 = vshrl.u32 %v4708_v47, 16  ;;  %v3055_v59 = vshll.u32 %v4708_v47, 16  ;;  %v2406_v50 = vor.u32 %v2405_v29, %v2401_v13  ;;  %v2423_v29 = vsel %vm1628_vm9, %v2418_v15, %v2422_v5 }
 0x43d   : > { %v3077_v13 = vshrl.u32 %v4710_v24, 16  ;;  %v3079_v22 = vshll.u32 %v4710_v24, 16  ;;  %v2456_v63 = vrot.slane %v4674_v44, 1 }
 0x43e   : > { %v3057_v31 = vrot.slane %v3055_v59, 1  ;;  %v2411_v52 = vsel %vm1628_vm9, %v2406_v50, %v2410_v57  ;;  %v2934_v57 = vld [vmem:[#allocation2 + $0x54] sm:$0xf]  ;;  %v2249_v59 = vld [vmem:[#allocation2 + $0x18] sm:$0xe] }
 0x43f   : > { %v3081_v58 = vrot.slane %v3079_v22, 1  ;;  %v2252_v22 = vld [vmem:[#allocation2 + $0x3c] sm:$0xe] }
 0x440   : > { %v3058_v3 = vor.u32 %v3057_v31, %v3053_v61  ;;  %v6955_v61 = vld [vmem:[#allocation2 + $0x58] sm:$0xf]  ;;  %v3086_v31 = vrot.slane %v3084_v25, 1  ;;  %v3108_v25 = vshll.u32 %v6976_v6, 16 }
 0x441   : > { %v6958_v50 = vcombine.low %v2934_v57, %v6955_v61  ;;  %v3082_v37 = vor.u32 %v3081_v58, %v3077_v13  ;;  %v2463_v13 = vrot.slane %v6855_v55, 1  ;;  %v4677_v58 = vcombine.low %v2251_v60, %v6865_v7  ;;  %v2949_v57 = vld [vmem:[#allocation2 + $0x24] sm:$0xe] }
 0x442   : > { %3438 = vmatmul.mubr.bf16.gmra.mrb[36].mxu0 %v4707_v53  ;;  %2770 = vmatmul.mubr.bf16.gmra.mrb[36].mxu1 %v6891_v43  ;;  %v3063_v53 = vsel %vm1628_vm9, %v3058_v3, %v3062_v48  ;;  %v3070_v43 = vor.u32 %v3069_v19, %v3065_v8  ;;  %v6961_v48 = vld [vmem:[#allocation2 + $0x5c] ss:$0 sps:$4 sm:$0x11]   ;;  %v2936_v3 = vld [vmem:[#allocation2 + $0x60] sm:$0xf] }
 0x443   : > { %2777 = vmatprep.mubr.bf16.mxu1 %v2411_v52  ;;  %3445 = vmatprep.mubr.bf16.mxu0 %v3063_v53  ;;  %v3091_v41 = vshll.u32 %v6958_v50, 16  ;;  %v4675_v52 = vcombine.low %v2249_v59, %v6836_v17  ;;  %v3089_v39 = vshrl.u32 %v6958_v50, 16  ;;  %v3096_v8 = vshll.u32 %v6961_v48, 16  ;;  %v5759_v59 = vld [vmem:[#allocation9 + $0x208] sm:$0xff]  }
 0x444   : > { %v3075_v42 = vsel %vm1628_vm9, %v3070_v43, %v3074_v20  ;;  %v6972_v9 = vcombine.low %v2936_v3, %v6967_v4  ;;  %v2460_v17 = vrot.slane %v6839_v21, 1  ;;  %v2938_v20 = vld [vmem:[#allocation2 + $0x6c] sm:$0xf]  ;;  %v6981_v43 = vld [vmem:[#allocation2 + $0x70] sm:$0xf]  ;;  %v2465_v3 = vrot.slane %v4677_v58, 1 }
 0x445   : > { %v3093_v5 = vrot.slane %v3091_v41, 1  ;;  %v2459_v53 = vrot.slane %v4675_v52, 1  ;;  %v3098_v15 = vrot.slane %v3096_v8, 1  ;;  %v5764_v41 = vld [vmem:[#allocation9 + $0x210] sm:$0xff]   ;;  %v5765_v8 = vld [vmem:[#allocation9 + $0x218] sm:$0xff]  }
 0x446   : > { %v3103_v19 = vshll.u32 %v6972_v9, 16  ;;  %v2253_v52 = vld [vmem:[#allocation2 + $0x48] sm:$0xe] }
 0x447   : > { %v3094_v12 = vor.u32 %v3093_v5, %v3089_v39  ;;  %v6996_v39 = vld [vmem:[#allocation2 + $0x74] ss:$0 sps:$4 sm:$0x11]   ;;  %v5776_v58 = vld [vmem:[#allocation9 + $0x230] sm:$0xff]  }
 0x448   : > { %v3105_v44 = vrot.slane %v3103_v19, 1 }
 0x449   : > { %v3099_v21 = vsel %vm1628_vm9, %v3094_v12, %v3098_v15  ;;  %v5770_v15 = vld [vmem:[#allocation9 + $0x220] sm:$0xff]  }
 0x44a   : > { %3446 = vmatmul.mubr.bf16.gmra.mrb[40].mxu0 %v4708_v47  ;;  %2778 = vmatmul.mubr.bf16.gmra.mrb[40].mxu1 %v6909_v16  ;;  %v2457_v47 = vrot.slane %v6826_v35, 1  ;;  %v3087_v16 = vsel %vm1628_vm9, %v3082_v37, %v3086_v31  ;;  %v4678_v37 = vcombine.low %v2252_v22, %v6874_v27  ;;  %v4723_v31 = vcombine.low %v2949_v57, %v6895_v40  ;;  %v2254_v40 = vld [vmem:[#allocation2 + $0x54] sm:$0xe]  ;;  %v2948_v22 = vld [vmem:[#allocation2 + $0x18] sm:$0xe] }
 0x44b   : > { %3453 = vmatprep.mubr.bf16.mxu0 %v3075_v42  ;;  %2785 = vmatprep.mubr.bf16.mxu1 %v2423_v29  ;;  %v6988_v29 = vcombine.low %v2938_v20, %v6981_v43  ;;  %v2461_v42 = vsel %vm1757_vm8, %v2459_v53, %v2460_v17  ;;  %v2466_v27 = vrot.slane %v6868_v11, 1  ;;  %v4679_v11 = vcombine.low %v2253_v52, %v6888_v56 }
 0x44c   : > { %v2458_v35 = vsel %vm1757_vm8, %v2456_v63, %v2457_v47  ;;  %v3160_v63 = vrot.slane %v6902_v2, 1  ;;  %v3110_v47 = vrot.slane %v3108_v25, 1  ;;  %v2468_v2 = vrot.slane %v4678_v37, 1 }
 0x44d   : > { %v3115_v7 = vshll.u32 %v6988_v29, 16  ;;  %v2467_v53 = vsel %vm1757_vm8, %v2465_v3, %v2466_v27  ;;  %v4680_v12 = vcombine.low %v2254_v40, %v6906_v38  ;;  %v2475_v56 = vrot.slane %v6911_v18, 1 }
 0x44f   : > { %v3117_v17 = vrot.slane %v3115_v7, 1  ;;  %v2474_v60 = vrot.slane %v4680_v12, 1  ;;  %v3169_v7 = vrot.slane %v6949_v26, 1  ;;  %v5800_v12 = vld [vmem:[#allocation10 + $0x84] ss:$16 sps:$4 sm:$0xff]  }
 0x452   : > { %3454 = vmatmul.mubr.bf16.gmra.mrb[44].mxu0 %v4709_v51  ;;  %2786 = vmatmul.mubr.bf16.gmra.mrb[44].mxu1 %v6929_v45  ;;  %v2462_v51 = vrot.slane %v4676_v10, 1  ;;  %v3101_v45 = vshrl.u32 %v6972_v9, 16  ;;  %v3113_v10 = vshrl.u32 %v6988_v29, 16 }
 0x453   : > { %3461 = vmatprep.mubr.bf16.mxu0 %v3087_v16  ;;  %5324 = vmatprep.mubr.bf16.mxu1 %v2458_v35  ;;  %v2469_v16 = vrot.slane %v6877_v30, 1 }
 0x454   : > { %v2464_v55 = vsel %vm1757_vm8, %v2462_v51, %v2463_v13  ;;  %v3106_v62 = vor.u32 %v3105_v44, %v3101_v45  ;;  %v3118_v19 = vor.u32 %v3117_v17, %v3113_v10  ;;  %v2471_v51 = vrot.slane %v4679_v11, 1  ;;  %v5771_v45 = vld [vmem:[#allocation9 + $0x228] sm:$0xff]   ;;  %v5788_v17 = vld [vmem:[#allocation10 + $0x4] ss:$16 sps:$4 sm:$0xff]   ;;  %v5795_v11 = vld [vmem:[#allocation10 + $0x60] ss:$16 sps:$4 sm:$0xff]  }
 0x455   : > { %v2470_v30 = vsel %vm1757_vm8, %v2468_v2, %v2469_v16  ;;  %v2472_v13 = vrot.slane %v6893_v33, 1  ;;  %v2476_v44 = vsel %vm1757_vm8, %v2474_v60, %v2475_v56  ;;  %v4722_v33 = vcombine.low %v2948_v22, %v6879_v32  ;;  %v5777_v32 = vld [vmem:[#allocation9 + $0x238] sm:$0xff]   ;;  %3900 = vmatprep.subr.bf16.mxu0 %v5788_v17  ;;  %v5810_v56 = vld [vmem:[#allocation10 + $0xc0] ss:$16 sps:$4 sm:$0xff]  }
 0x456   : > { %v3111_v35 = vsel %vm1628_vm9, %v3106_v62, %v3110_v47  ;;  %v3166_v62 = vrot.slane %v6941_v1, 1  ;;  %v3172_v2 = vrot.slane %v6961_v48, 1  ;;  %v3175_v1 = vrot.slane %v6976_v6, 1  ;;  %v5786_v48 = vld [vmem:[#allocation10] ss:$16 sps:$4 sm:$0xff]  }
 0x457   : > { %v2473_v38 = vsel %vm1757_vm8, %v2471_v51, %v2472_v13  ;;  %v3156_v57 = vrot.slane %v4722_v33, 1  ;;  %3901 = vmatpush1.bf16.msra.mxu0 %v5786_v48  ;;  %v5789_v6 = vld [vmem:[#allocation10 + $0x20] ss:$16 sps:$4 sm:$0xff]   ;;  %v5806_v51 = vld [vmem:[#allocation10 + $0xc] ss:$16 sps:$4 sm:$0xff]  }
 0x458   : > { %v7050_v13 = vld [vmem:[#allocation10 + $0x28] ss:$16 sps:$4 sm:$0xff]   ;;  %v7052_v60 = vld [vmem:[#allocation10 + $0x2c] ss:$16 sps:$4 sm:$0xff]  }
 0x459   : > { %v7056_v22 = vld [vmem:[#allocation10 + $0x48] ss:$16 sps:$4 sm:$0xff]  }
 0x45a   : > { %3462 = vmatmul.mubr.bf16.gmra.mrb[48].mxu0 %v4710_v24  ;;  %5325 = vmatmul.mubr.bf16.vlgmr.msra.gmra.mrb[0].mxu1 %v2461_v42  ;;  %v3159_v24 = vrot.slane %v4723_v31, 1  ;;  %v2478_v42 = vrot.slane %v6931_v49, 1  ;;  %v2951_v31 = vld [vmem:[#allocation2 + $0x3c] sm:$0xe] }
 0x45b   : > { %3469 = vmatprep.mubr.bf16.mxu0 %v3099_v21  ;;  %5341 = vmatpush3.bf16.msra.mxu1 %v6920_v46  ;;  %v3120_v46 = vshll.u32 %v6996_v39, 16 }
 0x45c   : > { %5328 = vmatprep.mubr.bf16.mxu1 %v2464_v55  ;;  %5342 = vmatprep.subr.bf16.mxu1 %v5759_v59  ;;  %v7003_v5 = vsel %vm1757_vm8, %v3159_v24, %v3160_v63  ;;  %v2952_v63 = vld [vmem:[#allocation2 + $0x48] sm:$0xe]  ;;  %v2953_v24 = vld [vmem:[#allocation2 + $0x54] sm:$0xe] }
 0x45d   : > { %v3122_v20 = vrot.slane %v3120_v46, 1  ;;  %v4727_v27 = vcombine.low %v2953_v24, %v6955_v61  ;;  %v5791_v46 = vld [vmem:[#allocation10 + $0x24] ss:$16 sps:$4 sm:$0xff]  }
 0x45e   : > { %3902 = vmatprep.subr.bf16.mxu0 %v5791_v46 }
 0x45f   : > { %5343 = vmatpush3.bf16.msra.mxu1 %v5759_v59  ;;  %v3123_v25 = vsel %vm1628_vm9, %v3118_v19, %v3122_v20  ;;  %v2950_v59 = vld [vmem:[#allocation2 + $0x30] sm:$0xe]  ;;  %3903 = vmatpush1.bf16.msra.mxu0 %v5789_v6  ;;  %v5803_v19 = vld [vmem:[#allocation10 + $0xa4] ss:$16 sps:$4 sm:$0xff]  }
 0x460   : > { %5344 = vmatprep.subr.bf16.mxu1 %v5764_v41  ;;  %v4724_v37 = vcombine.low %v2950_v59, %v6913_v23  ;;  %v7047_v20 = vld [vmem:[#allocation10 + $0x8] ss:$16 sps:$4 sm:$0xff]  }
 0x462   : > { %3470 = vmatmul.mubr.bf16.gmra.mrb[52].mxu0 %v6958_v50  ;;  %5329 = vmatmul.mubr.bf16.gmra.mrb[4].mxu1 %v2467_v53  ;;  %v2255_v50 = vld [vmem:[#allocation2 + $0x60] sm:$0xe]  ;;  %v3162_v49 = vrot.slane %v4724_v37, 1  ;;  %v5794_v53 = vld [vmem:[#allocation10 + $0x44] ss:$16 sps:$4 sm:$0xff]  }
 0x463   : > { %3477 = vmatprep.mubr.bf16.mxu0 %v3111_v35  ;;  %5345 = vmatpush3.bf16.msra.mxu1 %v5764_v41  ;;  %v4681_v21 = vcombine.low %v2255_v50, %v6926_v54  ;;  %v3157_v54 = vrot.slane %v6883_v34, 1  ;;  %v3163_v34 = vrot.slane %v6918_v28, 1  ;;  %v4726_v41 = vcombine.low %v2952_v63, %v6946_v14  ;;  %v2954_v28 = vld [vmem:[#allocation2 + $0x60] sm:$0xe]  ;;  %v5812_v50 = vld [vmem:[#allocation10 + $0xc4] ss:$16 sps:$4 sm:$0xff]  }
 0x464   : > { %5332 = vmatprep.mubr.bf16.mxu1 %v2470_v30  ;;  %5346 = vmatprep.subr.bf16.mxu1 %v5765_v8  ;;  %v4728_v40 = vcombine.low %v2954_v28, %v6967_v4  ;;  %v3171_v14 = vrot.slane %v4727_v27, 1  ;;  %v3178_v4 = vrot.slane %v6996_v39, 1  ;;  %v5797_v30 = vld [vmem:[#allocation10 + $0x64] ss:$16 sps:$4 sm:$0xff]   ;;  %v5798_v39 = vld [vmem:[#allocation10 + $0x80] ss:$16 sps:$4 sm:$0xff]  }
 0x465   : > { %v2477_v18 = vrot.slane %v4681_v21, 1  ;;  %v3158_v55 = vsel %vm1757_vm8, %v3156_v57, %v3157_v54  ;;  %v3164_v47 = vsel %vm1757_vm8, %v3162_v49, %v3163_v34  ;;  %v3168_v52 = vrot.slane %v4726_v41, 1  ;;  %3904 = vmatprep.subr.bf16.mxu0 %v5794_v53  ;;  %v7068_v57 = vld [vmem:[#allocation10 + $0x8c] ss:$16 sps:$4 sm:$0xff]   ;;  %v7070_v54 = vld [vmem:[#allocation10 + $0x88] ss:$16 sps:$4 sm:$0xff]  }
 0x466   : > { %v3174_v16 = vrot.slane %v4728_v40, 1  ;;  %v3173_v26 = vsel %vm1757_vm8, %v3171_v14, %v3172_v2  ;;  %v5819_v34 = vld [vmem:[#allocation10 + $0xe0] ss:$16 sps:$4 sm:$0xff]   ;;  %v7082_v41 = vld [vmem:[#allocation10 + $0xc8] ss:$16 sps:$4 sm:$0xff]  }
 0x467   : > { %5347 = vmatpush3.bf16.msra.mxu1 %v5765_v8  ;;  %v7088_v28 = vld [vmem:[#allocation10 + $0xe8] ss:$16 sps:$4 sm:$0xff]  }
 0x468   : > { %5348 = vmatprep.subr.bf16.mxu1 %v5770_v15  ;;  %v3176_v35 = vsel %vm1757_vm8, %v3174_v16, %v3175_v1 }
 0x46a   : > { %3478 = vmatmul.mubr.bf16.gmra.mrb[56].mxu0 %v6972_v9  ;;  %5333 = vmatmul.mubr.bf16.gmra.mrb[8].mxu1 %v2473_v38  ;;  %v2479_v9 = vsel %vm1757_vm8, %v2477_v18, %v2478_v42  ;;  %v7064_v18 = vld [vmem:[#allocation10 + $0x68] ss:$16 sps:$4 sm:$0xff]  }
 0x46b   : > { %3485 = vmatprep.mubr.bf16.mxu0 %v3123_v25  ;;  %5349 = vmatpush3.bf16.msra.mxu1 %v5770_v15  ;;  %v5801_v15 = vld [vmem:[#allocation10 + $0xa0] ss:$16 sps:$4 sm:$0xff]   ;;  %v7058_v25 = vld [vmem:[#allocation10 + $0x4c] ss:$16 sps:$4 sm:$0xff]  }
 0x46c   : > { %5336 = vmatprep.mubr.bf16.mxu1 %v2476_v44  ;;  %5350 = vmatprep.subr.bf16.mxu1 %v5771_v45 }
 0x46f   : > { %5351 = vmatpush3.bf16.msra.mxu1 %v5771_v45  ;;  %v7062_v45 = vld [vmem:[#allocation10 + $0x6c] ss:$16 sps:$4 sm:$0xff]  }
 0x470   : > { %5352 = vmatprep.subr.bf16.mxu1 %v5776_v58 }
 0x472   : > { %3486 = vmatmul.mubr.bf16.gmra.mrb[60].mxu0 %v6988_v29  ;;  %5337 = vmatmul.mubr.bf16.gmra.mrb[12].mxu1 %v2479_v9  ;;  %v4725_v29 = vcombine.low %v2951_v31, %v6936_v36  ;;  %v3170_v36 = vsel %vm1757_vm8, %v3168_v52, %v3169_v7  ;;  %v7076_v31 = vld [vmem:[#allocation10 + $0xa8] ss:$16 sps:$4 sm:$0xff]   ;;  %v7086_v52 = vld [vmem:[#allocation10 + $0xec] ss:$16 sps:$4 sm:$0xff]  }
 0x473   : > { %3932 = vmatprep.mubr.bf16.mxu0 %v6090_v0  ;;  %5353 = vmatpush3.bf16.msra.mxu1 %v5776_v58 }
 0x474   : > { %5356 = vmatprep.mubr.bf16.mxu1 %v3158_v55  ;;  %5354 = vmatprep.subr.bf16.mxu1 %v5777_v32  ;;  %v3165_v23 = vrot.slane %v4725_v29, 1  ;;  %v7074_v55 = vld [vmem:[#allocation10 + $0xac] ss:$16 sps:$4 sm:$0xff]  }
 0x476   : > { %v3167_v3 = vsel %vm1757_vm8, %v3165_v23, %v3166_v62 }
 0x477   : > { %5355 = vmatpush3.bf16.msra.mxu1 %v5777_v32  ;;  %v5821_v32 = vld [vmem:[#allocation10 + $0xe4] ss:$16 sps:$4 sm:$0xff]  }
 0x478   : > { %5372 = vmatprep.subr.bf16.mxu1 %v5806_v51 }
 0x47a   : > { %5357 = vmatmul.mubr.bf16.vlgmr.msra.gmra.mrb[0].mxu1 %v7003_v5  ;;  %v2955_v5 = vld [vmem:[#allocation2 + $0x6c] sm:$0xe] }
 0x47b   : > { %5360 = vmatprep.mubr.bf16.mxu1 %v3164_v47  ;;  %v4729_v8 = vcombine.low %v2955_v5, %v6981_v43  ;;  %v5792_v43 = vld [vmem:[#allocation10 + $0x40] ss:$16 sps:$4 sm:$0xff]   ;;  %5380 = vmatpush1.bf16.msra.mxu1 %v7047_v20  ;;  %v7080_v47 = vld [vmem:[#allocation10 + $0xcc] ss:$16 sps:$4 sm:$0xff]  }
 0x47c   : > { %3905 = vmatpush1.bf16.msra.mxu0 %v5792_v43  ;;  %5373 = vmatprep.subr.bf16.mxu1 %v7052_v60 }
 0x47d   : > { %v3177_v61 = vrot.slane %v4729_v8, 1  ;;  %3906 = vmatprep.subr.bf16.mxu0 %v5797_v30 }
 0x47f   : > { %v3179_v10 = vsel %vm1757_vm8, %v3177_v61, %v3178_v4  ;;  %5381 = vmatpush1.bf16.msra.mxu1 %v7050_v13 }
 0x480   : > { %3907 = vmatpush1.bf16.msra.mxu0 %v5795_v11  ;;  %5374 = vmatprep.subr.bf16.mxu1 %v7058_v25 }
 0x481   : > { %3908 = vmatprep.subr.bf16.mxu0 %v5800_v12 }
 0x482   : > { %5361 = vmatmul.mubr.bf16.gmra.mrb[4].mxu1 %v3167_v3 }
 0x483   : > { %5364 = vmatprep.mubr.bf16.mxu1 %v3170_v36  ;;  %5382 = vmatpush1.bf16.msra.mxu1 %v7056_v22 }
 0x484   : > { %3909 = vmatpush1.bf16.msra.mxu0 %v5798_v39  ;;  %5375 = vmatprep.subr.bf16.mxu1 %v7062_v45 }
 0x485   : > { %3910 = vmatprep.subr.bf16.mxu0 %v5803_v19 }
 0x487   : > { %5383 = vmatpush1.bf16.msra.mxu1 %v7064_v18 }
 0x488   : > { %3911 = vmatpush1.bf16.msra.mxu0 %v5801_v15  ;;  %5376 = vmatprep.subr.bf16.mxu1 %v7068_v57 }
 0x489   : > { %3912 = vmatprep.subr.bf16.mxu0 %v5812_v50 }
 0x48a   : > { %5365 = vmatmul.mubr.bf16.gmra.mrb[8].mxu1 %v3173_v26 }
 0x48b   : > { %5368 = vmatprep.mubr.bf16.mxu1 %v3176_v35  ;;  %5384 = vmatpush1.bf16.msra.mxu1 %v7070_v54 }
 0x48c   : > { %3913 = vmatpush1.bf16.msra.mxu0 %v5810_v56  ;;  %5377 = vmatprep.subr.bf16.mxu1 %v7074_v55 }
 0x48d   : > { %3914 = vmatprep.subr.bf16.mxu0 %v5821_v32 }
 0x48f   : > { %5385 = vmatpush1.bf16.msra.mxu1 %v7076_v31 }
 0x490   : > { %3915 = vmatpush1.bf16.msra.mxu0 %v5819_v34  ;;  %5378 = vmatprep.subr.bf16.mxu1 %v7080_v47 }
 0x491   : > { %4013 = vmatprep.subr.bf16.mxu0 %v5806_v51 }
 0x492   : > { %5369 = vmatmul.mubr.bf16.gmra.mrb[12].mxu1 %v3179_v10 }
 0x493   : > { %4065 = vmatprep.mubr.bf16.mxu1 %v6090_v0  ;;  %5386 = vmatpush1.bf16.msra.mxu1 %v7082_v41 }
 0x494   : > { %5379 = vmatprep.subr.bf16.mxu1 %v7086_v52 }
 0x497   : > { %5387 = vmatpush1.bf16.msra.mxu1 %v7088_v28 }
 0x4cd   : > { %v5052_v38 = vpop.f32.mrb[0].mxu0 }
 0x4ce   : > { %v5053_v21 = vpop.f32.mrb[1].mxu0 }
 0x4cf   : > { %v5054_v44 = vadd.f32 %v5053_v21, %v5052_v38  ;;  %v5055_v33 = vpop.f32.mrb[2].mxu0 }
 0x4d0   : > { %v5056_v42 = vpop.f32.mrb[3].mxu0 }
 0x4d1   : > { %v5057_v58 = vadd.f32 %v5056_v42, %v5055_v33 }
 0x4d5   : > { %v5058_v59 = vpop.f32.mrb[4].mxu0 }
 0x4d6   : > { %v5059_v9 = vpop.f32.mrb[5].mxu0 }
 0x4d7   : > { %v5060_v37 = vadd.f32 %v5059_v9, %v5058_v59  ;;  %v5061_v49 = vpop.f32.mrb[6].mxu0 }
 0x4d8   : > { %v5062_v63 = vpop.f32.mrb[7].mxu0 }
 0x4d9   : > { %v5063_v29 = vadd.f32 %v5062_v63, %v5061_v49 }
 0x4dd   : > { %v5064_v23 = vpop.f32.mrb[8].mxu0 }
 0x4de   : > { %v5065_v62 = vpop.f32.mrb[9].mxu0 }
 0x4df   : > { %v5066_v7 = vadd.f32 %v5065_v62, %v5064_v23  ;;  %v5067_v24 = vpop.f32.mrb[10].mxu0 }
 0x4e0   : > { %v5068_v3 = vpop.f32.mrb[11].mxu0 }
 0x4e1   : > { %v5069_v27 = vadd.f32 %v5068_v3, %v5067_v24 }
 0x4e5   : > { %v5070_v36 = vpop.f32.mrb[12].mxu0 }
 0x4e6   : > { %v5071_v40 = vpop.f32.mrb[13].mxu0 }
 0x4e7   : > { %v5072_v14 = vadd.f32 %v5071_v40, %v5070_v36  ;;  %v5073_v2 = vpop.f32.mrb[14].mxu0 }
 0x4e8   : > { %v5074_v16 = vpop.f32.mrb[15].mxu0 }
 0x4e9   : > { %v5075_v1 = vadd.f32 %v5074_v16, %v5073_v2 }
 0x4ed   : > { %v5076_v5 = vpop.f32.mrb[16].mxu0  ;;  %v5132_v61 = vpop.f32.mrb[16].mxu1 }
 0x4ee   : > { %v5077_v26 = vpop.f32.mrb[17].mxu0  ;;  %v5133_v10 = vpop.f32.mrb[17].mxu1 }
 0x4ef   : > { %v7092_v8 = vadd.f32 %v5077_v26, %v5076_v5  ;;  %v5079_v35 = vpop.f32.mrb[18].mxu0  ;;  %v5134_v17 = vadd.f32 %v5133_v10, %v5132_v61  ;;  %v5135_v6 = vpop.f32.mrb[18].mxu1 }
 0x4f0   : > { %v5080_v4 = vpop.f32.mrb[19].mxu0  ;;  %v5136_v46 = vpop.f32.mrb[19].mxu1 }
 0x4f1   : > { %v7094_v48 = vadd.f32 %v5080_v4, %v5079_v35  ;;  %v5391_v43 = vadd.f32 %v5134_v17, %v5054_v44  ;;  %v5137_v53 = vadd.f32 %v5136_v46, %v5135_v6 }
 0x4f3   : > { %v5397_v30 = vadd.f32 %v5137_v53, %v5057_v58 }
 0x4f5   : > { %v5082_v11 = vpop.f32.mrb[20].mxu0  ;;  %v5138_v19 = vpop.f32.mrb[20].mxu1 }
 0x4f6   : > { %v5083_v39 = vpop.f32.mrb[21].mxu0  ;;  %v5139_v56 = vpop.f32.mrb[21].mxu1 }
 0x4f7   : > { %v7096_v12 = vadd.f32 %v5083_v39, %v5082_v11  ;;  %v5085_v15 = vpop.f32.mrb[22].mxu0  ;;  %v5140_v38 = vadd.f32 %v5139_v56, %v5138_v19  ;;  %v5141_v21 = vpop.f32.mrb[22].mxu1 }
 0x4f8   : > { %v5086_v51 = vpop.f32.mrb[23].mxu0  ;;  %v5142_v33 = vpop.f32.mrb[23].mxu1 }
 0x4f9   : > { %v7098_v50 = vadd.f32 %v5086_v51, %v5085_v15  ;;  %v5388_v42 = vadd.f32 %v5140_v38, %v5060_v37  ;;  %v5143_v59 = vadd.f32 %v5142_v33, %v5141_v21 }
 0x4fb   : > { %v5394_v32 = vadd.f32 %v5143_v59, %v5063_v29 }
 0x4fd   : > { %v5088_v9 = vpop.f32.mrb[24].mxu0  ;;  %v5144_v34 = vpop.f32.mrb[24].mxu1 }
 0x4fe   : > { %v5089_v44 = vpop.f32.mrb[25].mxu0  ;;  %v5145_v23 = vpop.f32.mrb[25].mxu1 }
 0x4ff   : > { %v7100_v49 = vadd.f32 %v5089_v44, %v5088_v9  ;;  %v5091_v58 = vpop.f32.mrb[26].mxu0  ;;  %v5146_v24 = vadd.f32 %v5145_v23, %v5144_v34  ;;  %v5147_v3 = vpop.f32.mrb[26].mxu1 }
 0x500   : > { %v5092_v63 = vpop.f32.mrb[27].mxu0  ;;  %v5148_v36 = vpop.f32.mrb[27].mxu1 }
 0x501   : > { %v7102_v62 = vadd.f32 %v5092_v63, %v5091_v58  ;;  %v5403_v40 = vadd.f32 %v5146_v24, %v5066_v7  ;;  %v5149_v2 = vadd.f32 %v5148_v36, %v5147_v3 }
 0x503   : > { %v5409_v5 = vadd.f32 %v5149_v2, %v5069_v27 }
 0x505   : > { %v5094_v16 = vpop.f32.mrb[28].mxu0  ;;  %v5150_v35 = vpop.f32.mrb[28].mxu1 }
 0x506   : > { %v5095_v37 = vpop.f32.mrb[29].mxu0  ;;  %v5151_v4 = vpop.f32.mrb[29].mxu1 }
 0x507   : > { %v7104_v26 = vadd.f32 %v5095_v37, %v5094_v16  ;;  %v5097_v29 = vpop.f32.mrb[30].mxu0  ;;  %v5152_v17 = vadd.f32 %v5151_v4, %v5150_v35  ;;  %v5153_v6 = vpop.f32.mrb[30].mxu1 }
 0x508   : > { %v5098_v61 = vpop.f32.mrb[31].mxu0  ;;  %v5154_v46 = vpop.f32.mrb[31].mxu1 }
 0x509   : > { %v7106_v10 = vadd.f32 %v5098_v61, %v5097_v29  ;;  %v5400_v53 = vadd.f32 %v5152_v17, %v5072_v14  ;;  %v5155_v11 = vadd.f32 %v5154_v46, %v5153_v6 }
 0x50b   : > { %v7108_v39 = vadd.f32 %v5155_v11, %v5075_v1 }
 0x50d   : > { %v5212_v7 = vpop.f32.mrb[32].mxu0  ;;  %v5156_v19 = vpop.f32.mrb[32].mxu1 }
 0x50e   : > { %v5213_v15 = vpop.f32.mrb[33].mxu0  ;;  %v5157_v56 = vpop.f32.mrb[33].mxu1 }
 0x50f   : > { %v5214_v27 = vadd.f32 %v5213_v15, %v5212_v7  ;;  %v5215_v51 = vpop.f32.mrb[34].mxu0  ;;  %v5158_v21 = vadd.f32 %v5157_v56, %v5156_v19  ;;  %v5159_v33 = vpop.f32.mrb[34].mxu1 }
 0x510   : > { %v5216_v38 = vpop.f32.mrb[35].mxu0  ;;  %v5160_v44 = vpop.f32.mrb[35].mxu1 }
 0x511   : > { %v5217_v59 = vadd.f32 %v5216_v38, %v5215_v51  ;;  %v7110_v9 = vadd.f32 %v5391_v43, %v5214_v27  ;;  %v5415_v58 = vadd.f32 %v5158_v21, %v7092_v8  ;;  %v5161_v34 = vadd.f32 %v5160_v44, %v5159_v33 }
 0x513   : > { %v7113_v14 = vadd.f32 %v5397_v30, %v5217_v59  ;;  %v5421_v1 = vadd.f32 %v5161_v34, %v7094_v48 }
 0x515   : > { %v5218_v63 = vpop.f32.mrb[36].mxu0  ;;  %v5162_v24 = vpop.f32.mrb[36].mxu1 }
 0x516   : > { %v5219_v23 = vpop.f32.mrb[37].mxu0  ;;  %v5163_v2 = vpop.f32.mrb[37].mxu1 }
 0x517   : > { %v5220_v3 = vadd.f32 %v5219_v23, %v5218_v63  ;;  %v5221_v36 = vpop.f32.mrb[38].mxu0  ;;  %v5164_v37 = vadd.f32 %v5163_v2, %v5162_v24  ;;  %v5165_v29 = vpop.f32.mrb[38].mxu1 }
 0x518   : > { %v5222_v16 = vpop.f32.mrb[39].mxu0  ;;  %v5166_v61 = vpop.f32.mrb[39].mxu1 }
 0x519   : > { %v5223_v35 = vadd.f32 %v5222_v16, %v5221_v36  ;;  %v7116_v43 = vadd.f32 %v5388_v42, %v5220_v3  ;;  %v5412_v8 = vadd.f32 %v5164_v37, %v7096_v12  ;;  %v5167_v4 = vadd.f32 %v5166_v61, %v5165_v29 }
 0x51b   : > { %v7119_v30 = vadd.f32 %v5394_v32, %v5223_v35  ;;  %v5418_v48 = vadd.f32 %v5167_v4, %v7098_v50 }
 0x51d   : > { %v5224_v17 = vpop.f32.mrb[40].mxu0  ;;  %v5168_v46 = vpop.f32.mrb[40].mxu1 }
 0x51e   : > { %v5225_v6 = vpop.f32.mrb[41].mxu0  ;;  %v5169_v15 = vpop.f32.mrb[41].mxu1 }
 0x51f   : > { %v5226_v11 = vadd.f32 %v5225_v6, %v5224_v17  ;;  %v5227_v7 = vpop.f32.mrb[42].mxu0  ;;  %v5170_v27 = vadd.f32 %v5169_v15, %v5168_v46  ;;  %v5171_v51 = vpop.f32.mrb[42].mxu1 }
 0x520   : > { %v5228_v19 = vpop.f32.mrb[43].mxu0  ;;  %v5172_v38 = vpop.f32.mrb[43].mxu1 }
 0x521   : > { %v5229_v56 = vadd.f32 %v5228_v19, %v5227_v7  ;;  %v7122_v42 = vadd.f32 %v5403_v40, %v5226_v11  ;;  %v5427_v12 = vadd.f32 %v5170_v27, %v7100_v49  ;;  %v5173_v21 = vadd.f32 %v5172_v38, %v5171_v51 }
 0x523   : > { %v7125_v32 = vadd.f32 %v5409_v5, %v5229_v56  ;;  %v5433_v50 = vadd.f32 %v5173_v21, %v7102_v62 }
 0x525   : > { %v5230_v33 = vpop.f32.mrb[44].mxu0  ;;  %v5174_v44 = vpop.f32.mrb[44].mxu1 }
 0x526   : > { %v5231_v59 = vpop.f32.mrb[45].mxu0  ;;  %v5175_v23 = vpop.f32.mrb[45].mxu1 }
 0x527   : > { %v5232_v34 = vadd.f32 %v5231_v59, %v5230_v33  ;;  %v5233_v63 = vpop.f32.mrb[46].mxu0  ;;  %v5176_v3 = vadd.f32 %v5175_v23, %v5174_v44  ;;  %v5177_v36 = vpop.f32.mrb[46].mxu1 }
 0x528   : > { %v5234_v24 = vpop.f32.mrb[47].mxu0  ;;  %v5178_v16 = vpop.f32.mrb[47].mxu1 }
 0x529   : > { %v5235_v2 = vadd.f32 %v5234_v24, %v5233_v63  ;;  %v5401_v40 = vadd.f32 %v5400_v53, %v5232_v34  ;;  %v5424_v37 = vadd.f32 %v5176_v3, %v7104_v26  ;;  %v5179_v49 = vadd.f32 %v5178_v16, %v5177_v36 }
 0x52b   : > { %v5407_v5 = vadd.f32 %v7108_v39, %v5235_v2  ;;  %v5430_v29 = vadd.f32 %v5179_v49, %v7106_v10  ;;  %v7148_v2 = vld [vmem:[%s7542_s13] ss:$0 sm:$0xff]  ;;  %s5948_s13 = scalar_lea.vmem %s7424_s8, 8192 }
 0x52c   : > { %p5949_p9 = scmp.ne.s32.totalorder %s7424_s8, %s5948_s13 }
 0x52d   : > { %v5236_v62 = vpop.f32.mrb[48].mxu0 }
 0x52e   : > { %v5237_v35 = vpop.f32.mrb[49].mxu0  ;;  %p5950_p13 = pnand %p5949_p9, %p7547_p5 }
 0x52f   : > { %v5238_v61 = vadd.f32 %v5237_v35, %v5236_v62  ;;  %v5239_v4 = vpop.f32.mrb[50].mxu0 }
 0x530   : > { %v5240_v17 = vpop.f32.mrb[51].mxu0  ;;  %p5951_p6 = pneg %p5950_p13 }
 0x531   : > { %v5241_v6 = vadd.f32 %v5240_v17, %v5239_v4  ;;  %v7131_v46 = vadd.f32 %v5415_v58, %v5238_v61 }
 0x533   : > { %v7133_v11 = vadd.f32 %v5421_v1, %v5241_v6 }
 0x535   : > { %v5242_v7 = vpop.f32.mrb[52].mxu0 }
 0x536   : > { %v5243_v53 = vpop.f32.mrb[53].mxu0 }
 0x537   : > { %v5244_v15 = vadd.f32 %v5243_v53, %v5242_v7  ;;  %v5245_v19 = vpop.f32.mrb[54].mxu0 }
 0x538   : > { %v5246_v26 = vpop.f32.mrb[55].mxu0 }
 0x539   : > { %v5247_v27 = vadd.f32 %v5246_v26, %v5245_v19  ;;  %v5413_v51 = vadd.f32 %v5412_v8, %v5244_v15 }
 0x53b   : > { %v7135_v39 = vadd.f32 %v5418_v48, %v5247_v27 }
 0x53d   : > { %v5248_v10 = vpop.f32.mrb[56].mxu0 }
 0x53e   : > { %v5249_v56 = vpop.f32.mrb[57].mxu0 }
 0x53f   : > { %v5250_v38 = vadd.f32 %v5249_v56, %v5248_v10  ;;  %v5251_v21 = vpop.f32.mrb[58].mxu0 }
 0x540   : > { %v5252_v33 = vpop.f32.mrb[59].mxu0 }
 0x541   : > { %v5253_v59 = vadd.f32 %v5252_v33, %v5251_v21  ;;  %v7137_v44 = vadd.f32 %v5427_v12, %v5250_v38 }
 0x543   : > { %v7139_v58 = vadd.f32 %v5433_v50, %v5253_v59 }
 0x545   : > { %v5254_v1 = vpop.f32.mrb[60].mxu0 }
 0x546   : > { %v5255_v34 = vpop.f32.mrb[61].mxu0 }
 0x547   : > { %v5256_v63 = vadd.f32 %v5255_v34, %v5254_v1  ;;  %v5257_v23 = vpop.f32.mrb[62].mxu0 }
 0x548   : > { %v5258_v24 = vpop.f32.mrb[63].mxu0 }
 0x549   : > { %v5259_v3 = vadd.f32 %v5258_v24, %v5257_v23  ;;  %v7141_v36 = vadd.f32 %v5424_v37, %v5256_v63 }
 0x54b   : > { %v7143_v8 = vadd.f32 %v5430_v29, %v5259_v3 }
 0x54d   : > { %v5358_v48 = vpop.f32.mrb[0].mxu1 }
 0x54e   : > { %v5390_v12 = vadd.f32 %v7116_v43, %v5358_v48  ;;  %v3528_v50 = vpop.f32.mrb[1].mxu1 }
 0x54f   : > { %v5393_v16 = vadd.f32 %v7110_v9, %v3528_v50  ;;  %v5359_v49 = vpop.f32.mrb[2].mxu1 }
 0x550   : > { %v3648_v62 = vadd.f32 %v5390_v12, %v7148_v2  ;;  %v5396_v35 = vadd.f32 %v7119_v30, %v5359_v49  ;;  %v3531_v37 = vpop.f32.mrb[3].mxu1 }
 0x551   : > { %v3646_v29 = vadd.f32 %v5393_v16, %v7148_v2  ;;  %v5399_v61 = vadd.f32 %v7113_v14, %v3531_v37 }
 0x552   : > { %v3649_v4 = vadd.f32 %v5396_v35, %v7148_v2  ;;  %v3664_v6 = vmax.f32 %v3648_v62, 0.0 }
 0x553   : > { %v3647_v17 = vadd.f32 %v5399_v61, %v7148_v2  ;;  %v3662_v43 = vmax.f32 %v3646_v29, 0.0 }
 0x554   : > { %v3665_v7 = vmax.f32 %v3649_v4, 0.0 }
 0x555   : > { %v3663_v53 = vmax.f32 %v3647_v17, 0.0  ;;  %v5362_v15 = vpop.f32.mrb[4].mxu1 }
 0x556   : > { %v5402_v9 = vadd.f32 %v5401_v40, %v5362_v15  ;;  %v3544_v19 = vpop.f32.mrb[5].mxu1  ;;  %v7158_v26 = vpack.c.bf16 %v3665_v7, %v3664_v6 }
 0x557   : > { %v7160_v27 = vpack.c.bf16 %v3663_v53, %v3662_v43  ;;  %v5405_v30 = vadd.f32 %v7122_v42, %v3544_v19  ;;  %v5363_v10 = vpop.f32.mrb[6].mxu1 }
 0x558   : > { %v3652_v14 = vadd.f32 %v5402_v9, %v7148_v2  ;;  %v5408_v56 = vadd.f32 %v5407_v5, %v5363_v10  ;;  %v3547_v38 = vpop.f32.mrb[7].mxu1  ;;  %v4126_v9 = vld [vmem:[%s6522_s15] sm:$0xff] }
 0x559   : > { %v3650_v21 = vadd.f32 %v5405_v30, %v7148_v2  ;;  %v5411_v33 = vadd.f32 %v7125_v32, %v3547_v38  ;;  %3933 = vmatmul.mubr.bf16.vlgmr.msra.gmra.mrb[64].mxu0 %v7160_v27 }
 0x55a   : > { %v3653_v40 = vadd.f32 %v5408_v56, %v7148_v2  ;;  %4014 = vmatpush1.bf16.msra.mxu0 %v7047_v20  ;;  %3942 = vmatprep.mubr.bf16.mxu0 %v6090_v0  ;;  %v3668_v42 = vmax.f32 %v3652_v14, 0.0  ;;  %v4130_v14 = vld [vmem:[%s6522_s15 + $0x20] sm:$0xff] }
 0x55b   : > { %v3651_v59 = vadd.f32 %v5411_v33, %v7148_v2  ;;  %4015 = vmatprep.subr.bf16.mxu0 %v7052_v60  ;;  %v3666_v5 = vmax.f32 %v3650_v21, 0.0 }
 0x55c   : > { %v3669_v1 = vmax.f32 %v3653_v40, 0.0  ;;  %v4131_v40 = vld [vmem:[%s6522_s15 + $0x28] sm:$0xff] }
 0x55d   : > { %v3667_v34 = vmax.f32 %v3651_v59, 0.0  ;;  %v5366_v63 = vpop.f32.mrb[8].mxu1 }
 0x55e   : > { %v5414_v23 = vadd.f32 %v5413_v51, %v5366_v63  ;;  %v3560_v24 = vpop.f32.mrb[9].mxu1  ;;  %4016 = vmatpush1.bf16.msra.mxu0 %v7050_v13  ;;  %v3681_v32 = vpack.c.bf16 %v3669_v1, %v3668_v42 }
 0x55f   : > { %v3680_v3 = vpack.c.bf16 %v3667_v34, %v3666_v5  ;;  %v5417_v48 = vadd.f32 %v7131_v46, %v3560_v24  ;;  %v5367_v20 = vpop.f32.mrb[10].mxu1  ;;  %4017 = vmatprep.subr.bf16.mxu0 %v7058_v25 }
 0x560   : > { %v3656_v12 = vadd.f32 %v5414_v23, %v7148_v2  ;;  %v5420_v60 = vadd.f32 %v7135_v39, %v5367_v20  ;;  %v3563_v50 = vpop.f32.mrb[11].mxu1  ;;  %v4134_v20 = vld [vmem:[%s6522_s15 + $0x40] sm:$0xff] }
 0x561   : > { %v3654_v16 = vadd.f32 %v5417_v48, %v7148_v2  ;;  %v5423_v49 = vadd.f32 %v7133_v11, %v3563_v50  ;;  %3943 = vmatmul.mubr.bf16.gmra.mrb[68].mxu0 %v7158_v26  ;;  %4066 = vmatmul.mubr.bf16.vlgmr.msra.gmra.mrb[48].mxu1 %v3680_v3 }
 0x562   : > { %v3657_v13 = vadd.f32 %v5420_v60, %v7148_v2  ;;  %3952 = vmatprep.mubr.bf16.mxu0 %v6090_v0  ;;  %4075 = vmatprep.mubr.bf16.mxu1 %v6090_v0  ;;  %v3672_v46 = vmax.f32 %v3656_v12, 0.0  ;;  %v4144_v60 = vld [vmem:[%s6522_s15 + $0x90] sm:$0xff] }
 0x563   : > { %v3655_v25 = vadd.f32 %v5423_v49, %v7148_v2  ;;  %4018 = vmatpush1.bf16.msra.mxu0 %v7056_v22  ;;  %v3670_v39 = vmax.f32 %v3654_v16, 0.0 }
 0x564   : > { %v3673_v51 = vmax.f32 %v3657_v13, 0.0  ;;  %4019 = vmatprep.subr.bf16.mxu0 %v7062_v45  ;;  %v4135_v13 = vld [vmem:[%s6522_s15 + $0x48] sm:$0xff] }
 0x565   : > { %v3671_v62 = vmax.f32 %v3655_v25, 0.0  ;;  %v5370_v11 = vpop.f32.mrb[12].mxu1 }
 0x566   : > { %v5426_v35 = vadd.f32 %v7141_v36, %v5370_v11  ;;  %v3576_v37 = vpop.f32.mrb[13].mxu1  ;;  %v3683_v29 = vpack.c.bf16 %v3673_v51, %v3672_v46  ;;  %v4145_v46 = vld [vmem:[%s6522_s15 + $0x98] sm:$0xff]  ;;  %v4138_v11 = vld [vmem:[%s6522_s15 + $0x60] sm:$0xff] }
 0x567   : > { %v5429_v61 = vadd.f32 %v7137_v44, %v3576_v37  ;;  %v5371_v4 = vpop.f32.mrb[14].mxu1  ;;  %v3682_v17 = vpack.c.bf16 %v3671_v62, %v3670_v39  ;;  %4020 = vmatpush1.bf16.msra.mxu0 %v7064_v18  ;;  %v4148_v37 = vld [vmem:[%s6522_s15 + $0xb0] sm:$0xff] }
 0x568   : > { %v3660_v6 = vadd.f32 %v5426_v35, %v7148_v2  ;;  %v5432_v22 = vadd.f32 %v7143_v8, %v5371_v4  ;;  %v3579_v7 = vpop.f32.mrb[15].mxu1  ;;  %4021 = vmatprep.subr.bf16.mxu0 %v7068_v57 }
 0x569   : > { %v3658_v45 = vadd.f32 %v5429_v61, %v7148_v2  ;;  %v5435_v43 = vadd.f32 %v7139_v58, %v3579_v7  ;;  %3953 = vmatmul.mubr.bf16.gmra.mrb[72].mxu0 %v3680_v3  ;;  %4076 = vmatmul.mubr.bf16.gmra.mrb[52].mxu1 %v3681_v32 }
 0x56a   : > { %v3661_v36 = vadd.f32 %v5432_v22, %v7148_v2  ;;  %3962 = vmatprep.mubr.bf16.mxu0 %v6090_v0  ;;  %4085 = vmatprep.mubr.bf16.mxu1 %v6090_v0  ;;  %v3676_v44 = vmax.f32 %v3660_v6, 0.0  ;;  %v4139_v22 = vld [vmem:[%s6522_s15 + $0x68] sm:$0xff] }
 0x56b   : > { %v3659_v18 = vadd.f32 %v5435_v43, %v7148_v2  ;;  %4022 = vmatpush1.bf16.msra.mxu0 %v7070_v54  ;;  %v3674_v57 = vmax.f32 %v3658_v45, 0.0  ;;  %v3720_v54 = vlaneseq  ;;  %v4149_v45 = vld [vmem:[%s6522_s15 + $0xb8] sm:$0xff] }
 0x56c   : > { %v3677_v8 = vmax.f32 %v3661_v36, 0.0  ;;  %4023 = vmatprep.subr.bf16.mxu0 %v7074_v55 }
 0x56d   : > { %v3675_v53 = vmax.f32 %v3659_v18, 0.0  ;;  %v3721_v55 = vshrl.u32 %v3720_v54, 7 }
 0x56e   : > { %v3685_v15 = vpack.c.bf16 %v3677_v8, %v3676_v44 }
 0x56f   : > { %v3684_v58 = vpack.c.bf16 %v3675_v53, %v3674_v57  ;;  %4024 = vmatpush1.bf16.msra.mxu0 %v7076_v31  ;;  %v3722_v31 = vsub.s32 0, %v3721_v55  ;;  %v3734_v56 = vsub.s32 3, %v3721_v55 }
 0x570   : > { %4025 = vmatprep.subr.bf16.mxu0 %v7080_v47  ;;  %v3718_v47 = vld [vmem:[%s7543_s19] sm:$0xf]  ;;  %s5954_s19 = scalar_lea.vmem %s5953_s12, 16384 }
 0x571   : > { %3963 = vmatmul.mubr.bf16.gmra.mrb[76].mxu0 %v3681_v32  ;;  %4086 = vmatmul.mubr.bf16.gmra.mrb[56].mxu1 %v3682_v17  ;;  %v7233_v24 = vrot.slane %v3718_v47, %v3734_v56  ;;  %v4143_v56 = vld [vmem:[%s6522_s15 + $0x88] sm:$0xff]  ;;  %p5956_p12 = scmp.lt.s32.totalorder %s5954_s19, %s5948_s13 }
 0x572   : > { %3972 = vmatprep.mubr.bf16.mxu0 %v6090_v0  ;;  %4095 = vmatprep.mubr.bf16.mxu1 %v6090_v0 }
 0x573   : > { %4026 = vmatpush1.bf16.msra.mxu0 %v7082_v41  ;;  %v3726_v41 = vsub.s32 1, %v3721_v55  ;;  %p5957_p4 = por %p5956_p12, %p5955_p8 }
 0x574   : > { %4027 = vmatprep.subr.bf16.mxu0 %v7086_v52  ;;  %v7219_v52 = vrot.slane %v3718_v47, %v3722_v31 }
 0x575   : > { %p5958_p7 = pnand %p5957_p4, %p5951_p6 }
 0x577   : > { %4028 = vmatpush1.bf16.msra.mxu0 %v7088_v28  ;;  %v7221_v28 = vrot.slane %v3718_v47, %v3726_v41 }
 0x579   : > { %3973 = vmatmul.mubr.bf16.gmra.mrb[80].mxu0 %v3682_v17  ;;  %4096 = vmatmul.mubr.bf16.gmra.mrb[60].mxu1 %v3683_v29 }
 0x57a   : > { %3982 = vmatprep.mubr.bf16.mxu0 %v6090_v0  ;;  %4105 = vmatprep.mubr.bf16.mxu1 %v6090_v0 }
 0x581   : > { %3983 = vmatmul.mubr.bf16.gmra.mrb[84].mxu0 %v3683_v29  ;;  %4106 = vmatmul.mubr.bf16.gmra.mrb[64].mxu1 %v3684_v58 }
 0x582   : > { %3992 = vmatprep.mubr.bf16.mxu0 %v6090_v0  ;;  %4115 = vmatprep.mubr.bf16.mxu1 %v6090_v0 }
 0x589   : > { %3993 = vmatmul.mubr.bf16.gmra.mrb[88].mxu0 %v3684_v58  ;;  %4116 = vmatmul.mubr.bf16.gmra.mrb[68].mxu1 %v3685_v15 }
 0x58a   : > { %4002 = vmatprep.mubr.bf16.mxu0 %v6090_v0 }
 0x591   : > { %4003 = vmatmul.mubr.bf16.gmra.mrb[92].mxu0 %v3685_v15 }
 0x592   : > { %4045 = vmatprep.mubr.bf16.mxu0 %v6090_v0 }
 0x599   : > { %4046 = vmatmul.mubr.bf16.vlgmr.msra.gmra.mrb[96].mxu0 %v7160_v27  ;;  %v3730_v27 = vsub.s32 2, %v3721_v55 }
 0x59a   : > { %4055 = vmatprep.mubr.bf16.mxu0 %v6090_v0 }
 0x59b   : > { %v7231_v34 = vrot.slane %v3718_v47, %v3730_v27  ;;  %v4152_v27 = vld [vmem:[%s6522_s15 + $0xd0] sm:$0xff] }
 0x5a1   : > { %4056 = vmatmul.mubr.bf16.gmra.mrb[100].mxu0 %v7158_v26  ;;  %v4127_v26 = vld [vmem:[%s6522_s15 + $0x8] sm:$0xff] }
 0x62c   : > { %v3934_v2 = vpop.f32.mrb[64].mxu0 }
 0x62d   : > { %v3935_v0 = vadd.f32 %v3934_v2, %v7219_v52  ;;  %v3936_v19 = vpop.f32.mrb[65].mxu0 }
 0x62e   : > { %v3937_v30 = vadd.f32 %v3936_v19, %v7221_v28  ;;  %v3938_v10 = vpop.f32.mrb[66].mxu0  ;;  %v4142_v19 = vld [vmem:[%s6522_s15 + $0x80] sm:$0xff] }
 0x62f   : > { %v4190_v38 = vadd.f32 %v4126_v9, %v3935_v0  ;;  %v3939_v21 = vadd.f32 %v3938_v10, %v7219_v52  ;;  %v3940_v33 = vpop.f32.mrb[67].mxu0 }
 0x630   : > { %v4191_v59 = vadd.f32 %v4127_v26, %v3937_v30  ;;  %v3941_v42 = vadd.f32 %v3940_v33, %v7221_v28 }
 0x631   : > { %v4254_v1 = vmax.f32 %v4190_v38, 0.0  ;;  %v4194_v5 = vadd.f32 %v4130_v14, %v3939_v21  ;;  %v4153_v21 = vld [vmem:[%s6522_s15 + $0xd8] sm:$0xff] }
 0x632   : > { %v4255_v63 = vmax.f32 %v4191_v59, 0.0  ;;  %v4195_v23 = vadd.f32 %v4131_v40, %v3941_v42  ;;  %v4146_v42 = vld [vmem:[%s6522_s15 + $0xa0] sm:$0xff] }
 0x633   : > { %4318 = vst [vmem:[%s6683_s21] sm:$0xff] %v4254_v1  ;;  %v4258_v32 = vmax.f32 %v4194_v5, 0.0  ;;  %v4156_v5 = vld [vmem:[%s6522_s15 + $0xf0] sm:$0xff] }
 0x634   : > { %4319 = vst [vmem:[%s6683_s21 + $0x8] sm:$0xff] %v4255_v63  ;;  %v4259_v3 = vmax.f32 %v4195_v23, 0.0  ;;  %v3944_v48 = vpop.f32.mrb[68].mxu0  ;;  %v4067_v12 = vpop.f32.mrb[48].mxu1 }
 0x635   : > { %4322 = vst [vmem:[%s6683_s21 + $0x20] sm:$0xff] %v4258_v32  ;;  %v3945_v50 = vadd.f32 %v3944_v48, %v7219_v52  ;;  %v4068_v16 = vadd.f32 %v4067_v12, %v7231_v34  ;;  %v3946_v49 = vpop.f32.mrb[69].mxu0  ;;  %v4069_v25 = vpop.f32.mrb[49].mxu1 }
 0x636   : > { %4323 = vst [vmem:[%s6683_s21 + $0x28] sm:$0xff] %v4259_v3  ;;  %v3947_v51 = vadd.f32 %v3946_v49, %v7221_v28  ;;  %v4070_v39 = vadd.f32 %v4069_v25, %v7233_v24  ;;  %v3948_v62 = vpop.f32.mrb[70].mxu0  ;;  %v4071_v35 = vpop.f32.mrb[50].mxu1 }
 0x637   : > { %v4198_v29 = vadd.f32 %v4134_v20, %v3945_v50  ;;  %v4208_v61 = vadd.f32 %v4144_v60, %v4068_v16  ;;  %v3949_v4 = vadd.f32 %v3948_v62, %v7219_v52  ;;  %v4072_v17 = vadd.f32 %v4071_v35, %v7231_v34  ;;  %v3950_v6 = vpop.f32.mrb[71].mxu0  ;;  %v4073_v7 = vpop.f32.mrb[51].mxu1  ;;  %v4147_v20 = vld [vmem:[%s6522_s15 + $0xa8] sm:$0xff]  ;;  %v4157_v60 = vld [vmem:[%s6522_s15 + $0xf8] sm:$0xff] }
 0x638   : > { %v4199_v43 = vadd.f32 %v4135_v13, %v3947_v51  ;;  %v4209_v36 = vadd.f32 %v4145_v46, %v4070_v39  ;;  %v3951_v18 = vadd.f32 %v3950_v6, %v7221_v28  ;;  %v4074_v44 = vadd.f32 %v4073_v7, %v7233_v24 }
 0x639   : > { %v4262_v8 = vmax.f32 %v4198_v29, 0.0  ;;  %v4272_v57 = vmax.f32 %v4208_v61, 0.0  ;;  %v4202_v53 = vadd.f32 %v4138_v11, %v3949_v4  ;;  %v4212_v15 = vadd.f32 %v4148_v37, %v4072_v17 }
 0x63a   : > { %v4263_v58 = vmax.f32 %v4199_v43, 0.0  ;;  %v4273_v54 = vmax.f32 %v4209_v36, 0.0  ;;  %v4203_v55 = vadd.f32 %v4139_v22, %v3951_v18  ;;  %v4213_v31 = vadd.f32 %v4149_v45, %v4074_v44  ;;  %v4150_v22 = vld [vmem:[%s6522_s15 + $0xc0] sm:$0xff]  ;;  %v4160_v45 = vld [vmem:[%s6522_s15 + $0x110] sm:$0xff]  ;;  %v4151_v44 = vld [vmem:[%s6522_s15 + $0xc8] sm:$0xff] }
 0x63b   : > { %4326 = vst [vmem:[%s6683_s21 + $0x40] sm:$0xff] %v4262_v8  ;;  %4336 = vst [vmem:[%s6683_s21 + $0x90] sm:$0xff] %v4272_v57  ;;  %v4266_v47 = vmax.f32 %v4202_v53, 0.0  ;;  %v4276_v41 = vmax.f32 %v4212_v15, 0.0  ;;  %v4161_v57 = vld [vmem:[%s6522_s15 + $0x118] sm:$0xff] }
 0x63c   : > { %4327 = vst [vmem:[%s6683_s21 + $0x48] sm:$0xff] %v4263_v58  ;;  %4337 = vst [vmem:[%s6683_s21 + $0x98] sm:$0xff] %v4273_v54  ;;  %v4267_v2 = vmax.f32 %v4203_v55, 0.0  ;;  %v4277_v9 = vmax.f32 %v4213_v31, 0.0  ;;  %v3954_v0 = vpop.f32.mrb[72].mxu0  ;;  %v4077_v26 = vpop.f32.mrb[52].mxu1 }
 0x63d   : > { %4330 = vst [vmem:[%s6683_s21 + $0x60] sm:$0xff] %v4266_v47  ;;  %4340 = vst [vmem:[%s6683_s21 + $0xb0] sm:$0xff] %v4276_v41  ;;  %v3955_v30 = vadd.f32 %v3954_v0, %v7219_v52  ;;  %v4078_v10 = vadd.f32 %v4077_v26, %v7231_v34  ;;  %v3956_v14 = vpop.f32.mrb[73].mxu0  ;;  %v4079_v38 = vpop.f32.mrb[53].mxu1  ;;  %v4154_v54 = vld [vmem:[%s6522_s15 + $0xe0] sm:$0xff]  ;;  %v4164_v31 = vld [vmem:[%s6522_s15 + $0x130] sm:$0xff] }
 0x63e   : > { %4331 = vst [vmem:[%s6683_s21 + $0x68] sm:$0xff] %v4267_v2  ;;  %4341 = vst [vmem:[%s6683_s21 + $0xb8] sm:$0xff] %v4277_v9  ;;  %v3957_v33 = vadd.f32 %v3956_v14, %v7221_v28  ;;  %v4080_v40 = vadd.f32 %v4079_v38, %v7233_v24  ;;  %v3958_v59 = vpop.f32.mrb[74].mxu0  ;;  %v4081_v1 = vpop.f32.mrb[54].mxu1 }
 0x63f   : > { %v4206_v63 = vadd.f32 %v4142_v19, %v3955_v30  ;;  %v4216_v23 = vadd.f32 %v4152_v27, %v4078_v10  ;;  %v3959_v32 = vadd.f32 %v3958_v59, %v7219_v52  ;;  %v4082_v3 = vadd.f32 %v4081_v1, %v7231_v34  ;;  %v3960_v48 = vpop.f32.mrb[75].mxu0  ;;  %v4083_v12 = vpop.f32.mrb[55].mxu1  ;;  %v4155_v19 = vld [vmem:[%s6522_s15 + $0xe8] sm:$0xff]  ;;  %v4165_v27 = vld [vmem:[%s6522_s15 + $0x138] sm:$0xff] }
 0x640   : > { %v4207_v50 = vadd.f32 %v4143_v56, %v3957_v33  ;;  %v4217_v16 = vadd.f32 %v4153_v21, %v4080_v40  ;;  %v3961_v49 = vadd.f32 %v3960_v48, %v7221_v28  ;;  %v4084_v13 = vadd.f32 %v4083_v12, %v7233_v24 }
 0x641   : > { %v4270_v25 = vmax.f32 %v4206_v63, 0.0  ;;  %v4280_v46 = vmax.f32 %v4216_v23, 0.0  ;;  %v4210_v51 = vadd.f32 %v4146_v42, %v3959_v32  ;;  %v4220_v39 = vadd.f32 %v4156_v5, %v4082_v3 }
 0x642   : > { %v4271_v62 = vmax.f32 %v4207_v50, 0.0  ;;  %v4281_v11 = vmax.f32 %v4217_v16, 0.0  ;;  %v4211_v35 = vadd.f32 %v4147_v20, %v3961_v49  ;;  %v4221_v37 = vadd.f32 %v4157_v60, %v4084_v13  ;;  %v4158_v20 = vld [vmem:[%s6522_s15 + $0x100] sm:$0xff]  ;;  %v4168_v60 = vld [vmem:[%s6522_s15 + $0x150] sm:$0xff]  ;;  %v4159_v13 = vld [vmem:[%s6522_s15 + $0x108] sm:$0xff] }
 0x643   : > { %4334 = vst [vmem:[%s6683_s21 + $0x80] sm:$0xff] %v4270_v25  ;;  %4344 = vst [vmem:[%s6683_s21 + $0xd0] sm:$0xff] %v4280_v46  ;;  %v4274_v29 = vmax.f32 %v4210_v51, 0.0  ;;  %v4284_v61 = vmax.f32 %v4220_v39, 0.0  ;;  %v4169_v46 = vld [vmem:[%s6522_s15 + $0x158] sm:$0xff] }
 0x644   : > { %4335 = vst [vmem:[%s6683_s21 + $0x88] sm:$0xff] %v4271_v62  ;;  %4345 = vst [vmem:[%s6683_s21 + $0xd8] sm:$0xff] %v4281_v11  ;;  %v4275_v4 = vmax.f32 %v4211_v35, 0.0  ;;  %v4285_v17 = vmax.f32 %v4221_v37, 0.0  ;;  %v3964_v6 = vpop.f32.mrb[76].mxu0  ;;  %v4087_v7 = vpop.f32.mrb[56].mxu1 }
 0x645   : > { %4338 = vst [vmem:[%s6683_s21 + $0xa0] sm:$0xff] %v4274_v29  ;;  %4348 = vst [vmem:[%s6683_s21 + $0xf0] sm:$0xff] %v4284_v61  ;;  %v3965_v43 = vadd.f32 %v3964_v6, %v7219_v52  ;;  %v4088_v36 = vadd.f32 %v4087_v7, %v7231_v34  ;;  %v3966_v18 = vpop.f32.mrb[77].mxu0  ;;  %v4089_v8 = vpop.f32.mrb[57].mxu1  ;;  %v4162_v11 = vld [vmem:[%s6522_s15 + $0x120] sm:$0xff]  ;;  %v4172_v37 = vld [vmem:[%s6522_s15 + $0x170] sm:$0xff] }
 0x646   : > { %4339 = vst [vmem:[%s6683_s21 + $0xa8] sm:$0xff] %v4275_v4  ;;  %4349 = vst [vmem:[%s6683_s21 + $0xf8] sm:$0xff] %v4285_v17  ;;  %v3967_v53 = vadd.f32 %v3966_v18, %v7221_v28  ;;  %v4090_v15 = vadd.f32 %v4089_v8, %v7233_v24  ;;  %v3968_v58 = vpop.f32.mrb[78].mxu0  ;;  %v4091_v55 = vpop.f32.mrb[58].mxu1 }
 0x647   : > { %v4214_v47 = vadd.f32 %v4150_v22, %v3965_v43  ;;  %v4224_v41 = vadd.f32 %v4160_v45, %v4088_v36  ;;  %v3969_v2 = vadd.f32 %v3968_v58, %v7219_v52  ;;  %v4092_v9 = vadd.f32 %v4091_v55, %v7231_v34  ;;  %v3970_v0 = vpop.f32.mrb[79].mxu0  ;;  %v4093_v26 = vpop.f32.mrb[59].mxu1  ;;  %v4163_v22 = vld [vmem:[%s6522_s15 + $0x128] sm:$0xff]  ;;  %v4173_v45 = vld [vmem:[%s6522_s15 + $0x178] sm:$0xff] }
 0x648   : > { %v4215_v30 = vadd.f32 %v4151_v44, %v3967_v53  ;;  %v4225_v10 = vadd.f32 %v4161_v57, %v4090_v15  ;;  %v3971_v14 = vadd.f32 %v3970_v0, %v7221_v28  ;;  %v4094_v56 = vadd.f32 %v4093_v26, %v7233_v24 }
 0x649   : > { %v4278_v38 = vmax.f32 %v4214_v47, 0.0  ;;  %v4288_v21 = vmax.f32 %v4224_v41, 0.0  ;;  %v4218_v33 = vadd.f32 %v4154_v54, %v3969_v2  ;;  %v4228_v40 = vadd.f32 %v4164_v31, %v4092_v9 }
 0x64a   : > { %v4279_v59 = vmax.f32 %v4215_v30, 0.0  ;;  %v4289_v42 = vmax.f32 %v4225_v10, 0.0  ;;  %v4219_v1 = vadd.f32 %v4155_v19, %v3971_v14  ;;  %v4229_v5 = vadd.f32 %v4165_v27, %v4094_v56  ;;  %v4166_v19 = vld [vmem:[%s6522_s15 + $0x140] sm:$0xff]  ;;  %v4176_v27 = vld [vmem:[%s6522_s15 + $0x190] sm:$0xff]  ;;  %v4167_v56 = vld [vmem:[%s6522_s15 + $0x148] sm:$0xff] }
 0x64b   : > { %4342 = vst [vmem:[%s6683_s21 + $0xc0] sm:$0xff] %v4278_v38  ;;  %4352 = vst [vmem:[%s6683_s21 + $0x110] sm:$0xff] %v4288_v21  ;;  %v4282_v63 = vmax.f32 %v4218_v33, 0.0  ;;  %v4292_v23 = vmax.f32 %v4228_v40, 0.0  ;;  %v4177_v21 = vld [vmem:[%s6522_s15 + $0x198] sm:$0xff] }
 0x64c   : > { %4343 = vst [vmem:[%s6683_s21 + $0xc8] sm:$0xff] %v4279_v59  ;;  %4353 = vst [vmem:[%s6683_s21 + $0x118] sm:$0xff] %v4289_v42  ;;  %v4283_v32 = vmax.f32 %v4219_v1, 0.0  ;;  %v4293_v3 = vmax.f32 %v4229_v5, 0.0  ;;  %v3974_v48 = vpop.f32.mrb[80].mxu0  ;;  %v4097_v12 = vpop.f32.mrb[60].mxu1 }
 0x64d   : > { %4346 = vst [vmem:[%s6683_s21 + $0xe0] sm:$0xff] %v4282_v63  ;;  %4356 = vst [vmem:[%s6683_s21 + $0x130] sm:$0xff] %v4292_v23  ;;  %v3975_v50 = vadd.f32 %v3974_v48, %v7219_v52  ;;  %v4098_v16 = vadd.f32 %v4097_v12, %v7231_v34  ;;  %v3976_v49 = vpop.f32.mrb[81].mxu0  ;;  %v4099_v25 = vpop.f32.mrb[61].mxu1  ;;  %v4170_v42 = vld [vmem:[%s6522_s15 + $0x160] sm:$0xff]  ;;  %v4180_v5 = vld [vmem:[%s6522_s15 + $0x1b0] sm:$0xff] }
 0x64e   : > { %4347 = vst [vmem:[%s6683_s21 + $0xe8] sm:$0xff] %v4283_v32  ;;  %4357 = vst [vmem:[%s6683_s21 + $0x138] sm:$0xff] %v4293_v3  ;;  %v3977_v51 = vadd.f32 %v3976_v49, %v7221_v28  ;;  %v4100_v39 = vadd.f32 %v4099_v25, %v7233_v24  ;;  %v3978_v62 = vpop.f32.mrb[82].mxu0  ;;  %v4101_v35 = vpop.f32.mrb[62].mxu1 }
 0x64f   : > { %v4222_v29 = vadd.f32 %v4158_v20, %v3975_v50  ;;  %v4232_v61 = vadd.f32 %v4168_v60, %v4098_v16  ;;  %v3979_v4 = vadd.f32 %v3978_v62, %v7219_v52  ;;  %v4102_v17 = vadd.f32 %v4101_v35, %v7231_v34  ;;  %v3980_v6 = vpop.f32.mrb[83].mxu0  ;;  %v4103_v7 = vpop.f32.mrb[63].mxu1  ;;  %v4171_v20 = vld [vmem:[%s6522_s15 + $0x168] sm:$0xff]  ;;  %v4181_v60 = vld [vmem:[%s6522_s15 + $0x1b8] sm:$0xff] }
 0x650   : > { %v4223_v43 = vadd.f32 %v4159_v13, %v3977_v51  ;;  %v4233_v36 = vadd.f32 %v4169_v46, %v4100_v39  ;;  %v3981_v18 = vadd.f32 %v3980_v6, %v7221_v28  ;;  %v4104_v44 = vadd.f32 %v4103_v7, %v7233_v24 }
 0x651   : > { %v4286_v8 = vmax.f32 %v4222_v29, 0.0  ;;  %v4296_v57 = vmax.f32 %v4232_v61, 0.0  ;;  %v4226_v53 = vadd.f32 %v4162_v11, %v3979_v4  ;;  %v4236_v15 = vadd.f32 %v4172_v37, %v4102_v17 }
 0x652   : > { %v4287_v58 = vmax.f32 %v4223_v43, 0.0  ;;  %v4297_v54 = vmax.f32 %v4233_v36, 0.0  ;;  %v4227_v55 = vadd.f32 %v4163_v22, %v3981_v18  ;;  %v4237_v31 = vadd.f32 %v4173_v45, %v4104_v44  ;;  %v4174_v22 = vld [vmem:[%s6522_s15 + $0x180] sm:$0xff]  ;;  %v4184_v45 = vld [vmem:[%s6522_s15 + $0x1d0] sm:$0xff]  ;;  %v4175_v44 = vld [vmem:[%s6522_s15 + $0x188] sm:$0xff] }
 0x653   : > { %4350 = vst [vmem:[%s6683_s21 + $0x100] sm:$0xff] %v4286_v8  ;;  %4360 = vst [vmem:[%s6683_s21 + $0x150] sm:$0xff] %v4296_v57  ;;  %v4290_v47 = vmax.f32 %v4226_v53, 0.0  ;;  %v4300_v41 = vmax.f32 %v4236_v15, 0.0  ;;  %v4185_v57 = vld [vmem:[%s6522_s15 + $0x1d8] sm:$0xff] }
 0x654   : > { %4351 = vst [vmem:[%s6683_s21 + $0x108] sm:$0xff] %v4287_v58  ;;  %4361 = vst [vmem:[%s6683_s21 + $0x158] sm:$0xff] %v4297_v54  ;;  %v4291_v2 = vmax.f32 %v4227_v55, 0.0  ;;  %v4301_v9 = vmax.f32 %v4237_v31, 0.0  ;;  %v3984_v0 = vpop.f32.mrb[84].mxu0  ;;  %v4107_v26 = vpop.f32.mrb[64].mxu1 }
 0x655   : > { %4354 = vst [vmem:[%s6683_s21 + $0x120] sm:$0xff] %v4290_v47  ;;  %4364 = vst [vmem:[%s6683_s21 + $0x170] sm:$0xff] %v4300_v41  ;;  %v3985_v30 = vadd.f32 %v3984_v0, %v7219_v52  ;;  %v4108_v10 = vadd.f32 %v4107_v26, %v7231_v34  ;;  %v3986_v14 = vpop.f32.mrb[85].mxu0  ;;  %v4109_v38 = vpop.f32.mrb[65].mxu1  ;;  %v4178_v54 = vld [vmem:[%s6522_s15 + $0x1a0] sm:$0xff]  ;;  %v4188_v31 = vld [vmem:[%s6522_s15 + $0x1f0] sm:$0xff] }
 0x656   : > { %4355 = vst [vmem:[%s6683_s21 + $0x128] sm:$0xff] %v4291_v2  ;;  %4365 = vst [vmem:[%s6683_s21 + $0x178] sm:$0xff] %v4301_v9  ;;  %v3987_v33 = vadd.f32 %v3986_v14, %v7221_v28  ;;  %v4110_v40 = vadd.f32 %v4109_v38, %v7233_v24  ;;  %v3988_v59 = vpop.f32.mrb[86].mxu0  ;;  %v4111_v1 = vpop.f32.mrb[66].mxu1 }
 0x657   : > { %v4230_v63 = vadd.f32 %v4166_v19, %v3985_v30  ;;  %v4240_v23 = vadd.f32 %v4176_v27, %v4108_v10  ;;  %v3989_v32 = vadd.f32 %v3988_v59, %v7219_v52  ;;  %v4112_v3 = vadd.f32 %v4111_v1, %v7231_v34  ;;  %v3990_v48 = vpop.f32.mrb[87].mxu0  ;;  %v4113_v12 = vpop.f32.mrb[67].mxu1  ;;  %v4179_v19 = vld [vmem:[%s6522_s15 + $0x1a8] sm:$0xff]  ;;  %v4189_v27 = vld [vmem:[%s6522_s15 + $0x1f8] sm:$0xff] }
 0x658   : > { %v4231_v50 = vadd.f32 %v4167_v56, %v3987_v33  ;;  %v4241_v16 = vadd.f32 %v4177_v21, %v4110_v40  ;;  %v3991_v49 = vadd.f32 %v3990_v48, %v7221_v28  ;;  %v4114_v13 = vadd.f32 %v4113_v12, %v7233_v24 }
 0x659   : > { %v4294_v25 = vmax.f32 %v4230_v63, 0.0  ;;  %v4304_v46 = vmax.f32 %v4240_v23, 0.0  ;;  %v4234_v51 = vadd.f32 %v4170_v42, %v3989_v32  ;;  %v4244_v39 = vadd.f32 %v4180_v5, %v4112_v3 }
 0x65a   : > { %v4295_v62 = vmax.f32 %v4231_v50, 0.0  ;;  %v4305_v11 = vmax.f32 %v4241_v16, 0.0  ;;  %v4235_v35 = vadd.f32 %v4171_v20, %v3991_v49  ;;  %v4245_v37 = vadd.f32 %v4181_v60, %v4114_v13  ;;  %v4182_v20 = vld [vmem:[%s6522_s15 + $0x1c0] sm:$0xff]  ;;  %v4183_v50 = vld [vmem:[%s6522_s15 + $0x1c8] sm:$0xff] }
 0x65b   : > { %4358 = vst [vmem:[%s6683_s21 + $0x140] sm:$0xff] %v4294_v25  ;;  %4368 = vst [vmem:[%s6683_s21 + $0x190] sm:$0xff] %v4304_v46  ;;  %v4298_v29 = vmax.f32 %v4234_v51, 0.0  ;;  %v4308_v61 = vmax.f32 %v4244_v39, 0.0  ;;  %v4186_v13 = vld [vmem:[%s6522_s15 + $0x1e0] sm:$0xff]  ;;  %v4187_v39 = vld [vmem:[%s6522_s15 + $0x1e8] sm:$0xff] }
 0x65c   : > { %4359 = vst [vmem:[%s6683_s21 + $0x148] sm:$0xff] %v4295_v62  ;;  %4369 = vst [vmem:[%s6683_s21 + $0x198] sm:$0xff] %v4305_v11  ;;  %v4299_v4 = vmax.f32 %v4235_v35, 0.0  ;;  %v4309_v17 = vmax.f32 %v4245_v37, 0.0  ;;  %v3994_v6 = vpop.f32.mrb[88].mxu0  ;;  %v4117_v7 = vpop.f32.mrb[68].mxu1 }
 0x65d   : > { %4362 = vst [vmem:[%s6683_s21 + $0x160] sm:$0xff] %v4298_v29  ;;  %4372 = vst [vmem:[%s6683_s21 + $0x1b0] sm:$0xff] %v4308_v61  ;;  %v3995_v43 = vadd.f32 %v3994_v6, %v7219_v52  ;;  %v4118_v36 = vadd.f32 %v4117_v7, %v7231_v34  ;;  %v3996_v18 = vpop.f32.mrb[89].mxu0  ;;  %v4119_v8 = vpop.f32.mrb[69].mxu1 }
 0x65e   : > { %4363 = vst [vmem:[%s6683_s21 + $0x168] sm:$0xff] %v4299_v4  ;;  %4373 = vst [vmem:[%s6683_s21 + $0x1b8] sm:$0xff] %v4309_v17  ;;  %v3997_v53 = vadd.f32 %v3996_v18, %v7221_v28  ;;  %v4120_v15 = vadd.f32 %v4119_v8, %v7233_v24  ;;  %v3998_v58 = vpop.f32.mrb[90].mxu0  ;;  %v4121_v55 = vpop.f32.mrb[70].mxu1 }
 0x65f   : > { %v4238_v47 = vadd.f32 %v4174_v22, %v3995_v43  ;;  %v4248_v41 = vadd.f32 %v4184_v45, %v4118_v36  ;;  %v3999_v2 = vadd.f32 %v3998_v58, %v7219_v52  ;;  %v4122_v9 = vadd.f32 %v4121_v55, %v7231_v34  ;;  %v4000_v0 = vpop.f32.mrb[91].mxu0  ;;  %v4123_v26 = vpop.f32.mrb[71].mxu1  ;;  %v4128_v22 = vld [vmem:[%s6522_s15 + $0x10] sm:$0xff]  ;;  %v4129_v45 = vld [vmem:[%s6522_s15 + $0x18] sm:$0xff] }
 0x660   : > { %v4239_v30 = vadd.f32 %v4175_v44, %v3997_v53  ;;  %v4249_v10 = vadd.f32 %v4185_v57, %v4120_v15  ;;  %v4001_v14 = vadd.f32 %v4000_v0, %v7221_v28  ;;  %v4124_v56 = vadd.f32 %v4123_v26, %v7233_v24  ;;  %v4132_v36 = vld [vmem:[%s6522_s15 + $0x30] sm:$0xff]  ;;  %v4133_v57 = vld [vmem:[%s6522_s15 + $0x38] sm:$0xff] }
 0x661   : > { %v4302_v38 = vmax.f32 %v4238_v47, 0.0  ;;  %v4312_v21 = vmax.f32 %v4248_v41, 0.0  ;;  %v4242_v33 = vadd.f32 %v4178_v54, %v3999_v2  ;;  %v4252_v40 = vadd.f32 %v4188_v31, %v4122_v9  ;;  %v4136_v9 = vld [vmem:[%s6522_s15 + $0x50] sm:$0xff]  ;;  %v4137_v26 = vld [vmem:[%s6522_s15 + $0x58] sm:$0xff] }
 0x662   : > { %v4303_v59 = vmax.f32 %v4239_v30, 0.0  ;;  %v4313_v42 = vmax.f32 %v4249_v10, 0.0  ;;  %v4243_v1 = vadd.f32 %v4179_v19, %v4001_v14  ;;  %v4253_v5 = vadd.f32 %v4189_v27, %v4124_v56  ;;  %v4140_v10 = vld [vmem:[%s6522_s15 + $0x70] sm:$0xff] }
 0x663   : > { %4366 = vst [vmem:[%s6683_s21 + $0x180] sm:$0xff] %v4302_v38  ;;  %4376 = vst [vmem:[%s6683_s21 + $0x1d0] sm:$0xff] %v4312_v21  ;;  %v4306_v63 = vmax.f32 %v4242_v33, 0.0  ;;  %v4316_v23 = vmax.f32 %v4252_v40, 0.0  ;;  %v4141_v21 = vld [vmem:[%s6522_s15 + $0x78] sm:$0xff]  ;;  %s7431_s15 = scalar_lea.sflag [#allocation6], %s352_s3 }
 0x664   : > { %4367 = vst [vmem:[%s6683_s21 + $0x188] sm:$0xff] %v4303_v59  ;;  %4377 = vst [vmem:[%s6683_s21 + $0x1d8] sm:$0xff] %v4313_v42  ;;  %v4307_v32 = vmax.f32 %v4243_v1, 0.0  ;;  %v4317_v3 = vmax.f32 %v4253_v5, 0.0  ;;  %v4004_v48 = vpop.f32.mrb[92].mxu0 }
 0x665   : > { %4370 = vst [vmem:[%s6683_s21 + $0x1a0] sm:$0xff] %v4306_v63  ;;  %4380 = vst [vmem:[%s6683_s21 + $0x1f0] sm:$0xff] %v4316_v23  ;;  %v4005_v12 = vadd.f32 %v4004_v48, %v7219_v52  ;;  %v4006_v60 = vpop.f32.mrb[93].mxu0 }
 0x666   : > { %4371 = vst [vmem:[%s6683_s21 + $0x1a8] sm:$0xff] %v4307_v32  ;;  %4381 = vst [vmem:[%s6683_s21 + $0x1f8] sm:$0xff] %v4317_v3  ;;  %v4007_v16 = vadd.f32 %v4006_v60, %v7221_v28  ;;  %v4008_v49 = vpop.f32.mrb[94].mxu0 }
 0x667   : > { %v4246_v25 = vadd.f32 %v4182_v20, %v4005_v12  ;;  %v4009_v46 = vadd.f32 %v4008_v49, %v7219_v52  ;;  %v4010_v51 = vpop.f32.mrb[95].mxu0 }
 0x668   : > { %v4247_v62 = vadd.f32 %v4183_v50, %v4007_v16  ;;  %v4011_v11 = vadd.f32 %v4010_v51, %v7221_v28 }
 0x669   : > { %v4310_v35 = vmax.f32 %v4246_v25, 0.0  ;;  %v4250_v37 = vadd.f32 %v4186_v13, %v4009_v46 }
 0x66a   : > { %v4311_v29 = vmax.f32 %v4247_v62, 0.0  ;;  %v4251_v61 = vadd.f32 %v4187_v39, %v4011_v11 }
 0x66b   : > { %4374 = vst [vmem:[%s6683_s21 + $0x1c0] sm:$0xff] %v4310_v35  ;;  %v4314_v4 = vmax.f32 %v4250_v37, 0.0 }
 0x66c   : > { %4375 = vst [vmem:[%s6683_s21 + $0x1c8] sm:$0xff] %v4311_v29  ;;  %v4315_v17 = vmax.f32 %v4251_v61, 0.0  ;;  %v4047_v6 = vpop.f32.mrb[96].mxu0 }
 0x66d   : > { %4378 = vst [vmem:[%s6683_s21 + $0x1e0] sm:$0xff] %v4314_v4  ;;  %v4048_v52 = vadd.f32 %v4047_v6, %v7231_v34  ;;  %v4049_v7 = vpop.f32.mrb[97].mxu0 }
 0x66e   : > { %4379 = vst [vmem:[%s6683_s21 + $0x1e8] sm:$0xff] %v4315_v17  ;;  %v4050_v28 = vadd.f32 %v4049_v7, %v7233_v24  ;;  %v4051_v43 = vpop.f32.mrb[98].mxu0 }
 0x66f   : > { %v4192_v18 = vadd.f32 %v4128_v22, %v4048_v52  ;;  %v4052_v44 = vadd.f32 %v4051_v43, %v7231_v34  ;;  %v4053_v8 = vpop.f32.mrb[99].mxu0 }
 0x670   : > { %v4193_v53 = vadd.f32 %v4129_v45, %v4050_v28  ;;  %v4054_v15 = vadd.f32 %v4053_v8, %v7233_v24 }
 0x671   : > { %v4256_v58 = vmax.f32 %v4192_v18, 0.0  ;;  %v4196_v54 = vadd.f32 %v4132_v36, %v4052_v44 }
 0x672   : > { %v4257_v55 = vmax.f32 %v4193_v53, 0.0  ;;  %v4197_v31 = vadd.f32 %v4133_v57, %v4054_v15 }
 0x673   : > { %4320 = vst [vmem:[%s6683_s21 + $0x10] sm:$0xff] %v4256_v58  ;;  %v4260_v47 = vmax.f32 %v4196_v54, 0.0 }
 0x674   : > { %4321 = vst [vmem:[%s6683_s21 + $0x18] sm:$0xff] %v4257_v55  ;;  %v4261_v41 = vmax.f32 %v4197_v31, 0.0  ;;  %v4057_v2 = vpop.f32.mrb[100].mxu0 }
 0x675   : > { %4324 = vst [vmem:[%s6683_s21 + $0x30] sm:$0xff] %v4260_v47  ;;  %v4058_v0 = vadd.f32 %v4057_v2, %v7231_v34  ;;  %v4059_v19 = vpop.f32.mrb[101].mxu0 }
 0x676   : > { %4325 = vst [vmem:[%s6683_s21 + $0x38] sm:$0xff] %v4261_v41  ;;  %v4060_v27 = vadd.f32 %v4059_v19, %v7233_v24  ;;  %v4061_v30 = vpop.f32.mrb[102].mxu0 }
 0x677   : > { %v4200_v14 = vadd.f32 %v4136_v9, %v4058_v0  ;;  %v4062_v56 = vadd.f32 %v4061_v30, %v7231_v34  ;;  %v4063_v38 = vpop.f32.mrb[103].mxu0 }
 0x678   : > { %v4201_v33 = vadd.f32 %v4137_v26, %v4060_v27  ;;  %v4064_v40 = vadd.f32 %v4063_v38, %v7233_v24 }
 0x679   : > { %v4264_v59 = vmax.f32 %v4200_v14, 0.0  ;;  %v4204_v42 = vadd.f32 %v4140_v10, %v4062_v56 }
 0x67a   : > { %v4265_v1 = vmax.f32 %v4201_v33, 0.0  ;;  %v4205_v5 = vadd.f32 %v4141_v21, %v4064_v40 }
 0x67b   : > { %4328 = vst [vmem:[%s6683_s21 + $0x50] sm:$0xff] %v4264_v59  ;;  %v4268_v63 = vmax.f32 %v4204_v42, 0.0 }
 0x67c   : > { %4329 = vst [vmem:[%s6683_s21 + $0x58] sm:$0xff] %v4265_v1  ;;  %v4269_v34 = vmax.f32 %v4205_v5, 0.0 }
 0x67d   : > { %4332 = vst [vmem:[%s6683_s21 + $0x70] sm:$0xff] %v4268_v63 }
 0x67e   : > { %4333 = vst [vmem:[%s6683_s21 + $0x78] sm:$0xff] %v4269_v34 }
 0x67f   : > { %5961 = shalt.err (!%p5958_p7)
}
 0x680   : > { %s5962_s3 = scalar_lea.hbm %s7422_s18, 8192  ;;  %s5966_s16 = scalar_lea.hbm %s7546_s1, 32768 }
 0x681   : > { %p5963_p3 = scmp.ne.s32.totalorder %s7422_s18, %s5962_s3  ;;  %p5967_p11 = scmp.lt.u32.totalorder %s7422_s18, %s7546_s1 }
 0x682   : > { %p5968_p10 = scmp.lt.u32.totalorder %s5966_s16, %s5962_s3  ;;  %p5970_p9 = scmp.lt.u32.totalorder %s5962_s3, %s7422_s18 }
 0x683   : > { %p5964_p0 = pnand %p5963_p3, %p7547_p5 }
 0x684   : > { %p5969_p2 = por %p5968_p10, %p5967_p11 }
 0x685   : > { %p5965_p1 = pneg %p5964_p0 }
 0x686   : > { %p5971_p13 = por %p5970_p9, %p5969_p2 }
 0x688   : > { %p5972_p6 = pnand %p5971_p13, %p5965_p1 }
 0x68a   : > { %5975 = shalt.err (!%p5972_p6)
}
 0x68b   : > { %s6092_s30 = smov 512   ;;  %s6093_s24 = smov 32  }
 0x68c   : > { %5482 = dma.vmem_to_hbm [thread:$0]  (%p7547_p5), %s7424_s8, 8192, %s7422_s18, %s7431_s15, %s6092_s30, %s6092_s30, %s6093_s24  }
 0x68d PF: > { %s7548_s20 = sld [smem:[#allocation17_spill]]  ;;  %s7549_s13 = sld [smem:[#allocation20_spill]] }
 0x68e   : > { %p5509_p8 = scmp.ge.s32.totalorder %s6078_s11, 2 }
 0x693   : > { %s4414_s23 = sand.u32 1, %s7548_s20   ;;  %p7550_p12 = scmp.ne.s32.totalorder %s7549_s13, 0 }
 0x694   : > { %s4415_s12 = scalar_lea.sflag [#allocation6], %s4414_s23 }
 0x695   : > { %p5499_p4 = pnand %p5509_p8, %p7550_p12 }
 0x697   : > { %6033 = dma.done.wait (!%p5499_p4), %s4415_s12, 8192  }
 0x698   : > { %6035 = vsyncadd (!%p5499_p4), %s4415_s12, 4294959104  ;;  %s25_s11 = sadd.s32 1, %s6078_s11   ;;  %s7551_s24 = smov %s6042_s25 }
 0x699   : > { %p22_p7 = scmp.ge.s32.totalorder %s25_s11, 6   ;;  %s7552_s25 = smov %s6046_s26 }
 0x69a   : > { %s7553_s26 = smov %s6332_s27  ;;  %s7554_s27 = smov %s6054_s28 }
 0x69b   : > { %s7555_s28 = smov %s6058_s29  ;;  %s7556_s29 = smov %s6327_s7 }
 0x69c   : > { %s7557_s30 = smov %s6070_s9  ;;  %s7558_s8 = smov %s6074_s10 }
 0x69d   : > { %s7559_s9 = smov %s7562_s2  ;;  %s7560_s10 = smov %s7566_s4 }
 0x69e   :  { %24 = sbr.rel (!%p22_p7) target bundleno = 18 (0x12), region = 121 }
 0x6a5   :  { %4420 = vsyncpa [#allocation5], 1 }
 0x6a6   :  { %4422 = vsyncpa [#allocation5 + $0x1], 1 }
 0x6a7   :  { %4423 = vsyncpa [#allocation8], 1 }
 0x6a8   :  { %4424 = vsyncpa [#allocation11], 1 }
 0x6a9   :  { %4425 = vsyncpa [#allocation6], 1 }
 0x6aa   :  { %4427 = vsyncpa [#allocation6 + $0x1], 1 }

</bundles_post_ra>
